<compile_context>
chip_gen: v7x
topology: tpu7x:2x2x1
jax: 0.10.0
libtpu: 0.0.40
codegen_flags: <defaults>
</compile_context>

<pallas_src>
import functools
import math

import jax
import jax.numpy as jnp
from jax import lax
from jax.experimental import pallas as pl
from jax.experimental.pallas import tpu as pltpu

EPS = 1e-5  # PyTorch GroupNorm default eps


def _round_up(n, m):
    return ((n + m - 1) // m) * m


# --------------------------------------------------------------------------
# Fused DownBlock kernel: one grid step == one batch element.
# --------------------------------------------------------------------------
def _down_block_kernel(H, W, G, PAD, cp_in, cp_out, identity_sc, has_attn,
                       mm_dtype, scale, approx_recip, kv_chunks, *refs):
    HW = H * W
    it = iter(refs)
    x_ref = next(it)
    g1_ref = next(it); b1_ref = next(it); w1_ref = next(it); cb1_ref = next(it)
    g2_ref = next(it); b2_ref = next(it); w2_ref = next(it); cb2_ref = next(it)
    if not identity_sc:
        ws_ref = next(it); bs_ref = next(it)
    if has_attn:
        wq_ref = next(it); bq_ref = next(it)
        wk_ref = next(it); bk_ref = next(it)
        wv_ref = next(it); bv_ref = next(it)
        wo_ref = next(it); bo_ref = next(it)
    gmi_ref = next(it); gmiT_ref = next(it)
    gmo_ref = next(it); gmoT_ref = next(it)
    out_ref = next(it)
    pad_ref = next(it)     # (HW + 2*PAD, cp_max) mm_dtype -- conv halo, shared
    col_ref = next(it)     # (HW, 9*cp_max)       mm_dtype -- im2col patches, shared

    x = x_ref[0]                                           # (HW, Cin) f32

    # Column-wrap masks for the flattened-spatial +/-1 shifts (hoisted; reused by
    # both convs and all dy taps).
    col_idx = lax.broadcasted_iota(jnp.int32, (HW, 1), 0) % W
    mask_l = col_idx >= 1          # ox = -1 stays inside the image row
    mask_r = col_idx < (W - 1)     # ox = +1 stays inside the image row
    # 2-row selector used to stack the GroupNorm statistics without a concatenate.
    row2 = lax.broadcasted_iota(jnp.int32, (2, 1), 0)

    def gn_swish(h, gmap, gmapT, gamma, beta):
        # GroupNorm over (spatial, channels-in-group), then swish.  Group stats via
        # one-hot channel->group matmuls; sum / sum-of-squares share ONE (2,C)x(C,G)
        # push and the broadcast-back shares ONE (2,G)x(G,C) push (halves the
        # degenerate-M MXU pushes per review).
        C = h.shape[1]
        inv_n = 1.0 / float(HW * (C // G))
        s = jnp.sum(h, axis=0, keepdims=True)                         # (1, C)
        sq = jnp.sum(h * h, axis=0, keepdims=True)                    # (1, C)
        stats = jnp.where(row2 == 0, s, sq)                           # (2, C)
        stats_g = jnp.dot(stats, gmap,
                          preferred_element_type=jnp.float32) * inv_n  # (2, G)
        mean_g = stats_g[0:1, :]
        msq_g = stats_g[1:2, :]
        # TODO(synk): one-pass E[x^2]-E[x]^2 in f32; switch to two-pass centering if
        # production activations carry large means (catastrophic cancellation risk).
        rstd_g = lax.rsqrt(msq_g - mean_g * mean_g + EPS)             # (1, G)
        back = jnp.where(row2 == 0, mean_g, rstd_g)                   # (2, G)
        back_c = jnp.dot(back, gmapT,
                         preferred_element_type=jnp.float32)          # (2, C)
        a = back_c[1:2, :] * gamma
        b = beta - back_c[0:1, :] * a
        hn = h * a + b
        return hn * jax.nn.sigmoid(hn)

    def conv3x3(h, Cp, w_ref, bias):
        # 3x3 SAME conv via im2col: one (HW, 9*Cp) x (9*Cp, Cout) MXU matmul.
        # Halo + patch scratch are mm_dtype and shared between the two convs.
        C = h.shape[1]
        hc = h.astype(mm_dtype)
        if Cp != C:
            # Tap slots are padded to a 128-lane boundary.  Zero the whole used halo
            # slab so the pad columns [C, Cp) read back as zeros; the matching extra
            # weight rows are zero (see _pad_conv_weight), and every tap store below
            # is a lane-aligned full-Cp-wide store.
            pad_ref[:, pl.ds(0, Cp)] = jnp.zeros((HW + 2 * PAD, Cp), mm_dtype)
        else:
            # Zero only the top/bottom halo margins (interior fully overwritten);
            # re-done every grid step (scratch persists across steps / megacore split).
            zmargin = jnp.zeros((PAD, Cp), mm_dtype)
            pad_ref[pl.ds(0, PAD), pl.ds(0, Cp)] = zmargin
            pad_ref[pl.ds(PAD + HW, PAD), pl.ds(0, Cp)] = zmargin
        pad_ref[pl.ds(PAD, HW), pl.ds(0, C)] = hc
        for dy in range(3):
            base = PAD + (dy - 1) * W
            for dx in range(3):
                t = dy * 3 + dx
                if dy == 1 and dx == 1 and Cp == C:
                    sh = hc                       # center tap == h; skip halo reload
                else:
                    sh = pad_ref[pl.ds(base + (dx - 1), HW), pl.ds(0, Cp)]
                    if dx == 0:
                        sh = jnp.where(mask_l, sh, 0.0)
                    elif dx == 2:
                        sh = jnp.where(mask_r, sh, 0.0)
                col_ref[:, t * Cp:(t + 1) * Cp] = sh
        patches = col_ref[:, :9 * Cp]                                 # mm_dtype
        return jnp.dot(patches, w_ref[...],
                       preferred_element_type=jnp.float32) + bias

    # ---- ResidualBlock ----
    h1 = gn_swish(x, gmi_ref[...], gmiT_ref[...], g1_ref[...], b1_ref[...])
    c1 = conv3x3(h1, cp_in, w1_ref, cb1_ref[...])
    h2 = gn_swish(c1, gmo_ref[...], gmoT_ref[...], g2_ref[...], b2_ref[...])
    # TODO(synk): nn.Dropout treated as identity (inference mode, no RNG state).
    c2 = conv3x3(h2, cp_out, w2_ref, cb2_ref[...])

    if identity_sc:
        h = c2 + x                                          # nn.Identity shortcut
    else:
        h = (c2
             + jnp.dot(x.astype(mm_dtype), ws_ref[...],
                       preferred_element_type=jnp.float32)
             + bs_ref[...])

    # ---- AttentionBlock (n_heads=1, d_k=C) ----
    # NOTE: the torch AttentionBlock defines self.norm but never calls it in
    # forward(); reproduced faithfully (no norm applied here).
    if has_attn:
        C = h.shape[1]
        xm = h.astype(mm_dtype)
        q = jnp.dot(xm, wq_ref[...], preferred_element_type=jnp.float32) + bq_ref[...]
        k = jnp.dot(xm, wk_ref[...], preferred_element_type=jnp.float32) + bk_ref[...]
        v = jnp.dot(xm, wv_ref[...], preferred_element_type=jnp.float32) + bv_ref[...]
        q = (q * scale).astype(mm_dtype)     # scale folded into q: (HW,C), not (HW,HW)
        kb = k.astype(mm_dtype)
        vb = v.astype(mm_dtype)
        # dot_general contracts dim 1 of both operands so Mosaic feeds k through the
        # MXU transposed-rhs path (no explicit XLU transpose of k).
        dn = (((1,), (1,)), ((), ()))
        if len(kv_chunks) == 1:
            s = lax.dot_general(q, kb, dn, preferred_element_type=jnp.float32)
            m = jnp.max(s, axis=-1, keepdims=True)
            e = jnp.exp(s - m)
            l = jnp.sum(e, axis=-1, keepdims=True)
            r = jnp.dot(e.astype(mm_dtype), vb, preferred_element_type=jnp.float32)
        else:
            # Online softmax over KV chunks: never materializes the (HW, HW) scores.
            m = jnp.full((HW, 1), -jnp.inf, jnp.float32)
            l = jnp.zeros((HW, 1), jnp.float32)
            r = jnp.zeros((HW, C), jnp.float32)
            for (st, sz) in kv_chunks:
                kj = lax.slice_in_dim(kb, st, st + sz, axis=0)
                vj = lax.slice_in_dim(vb, st, st + sz, axis=0)
                s = lax.dot_general(q, kj, dn, preferred_element_type=jnp.float32)
                m_new = jnp.maximum(m, jnp.max(s, axis=-1, keepdims=True))
                alpha = jnp.exp(m - m_new)
                p = jnp.exp(s - m_new)
                l = alpha * l + jnp.sum(p, axis=-1, keepdims=True)
                r = alpha * r + jnp.dot(p.astype(mm_dtype), vj,
                                        preferred_element_type=jnp.float32)
                m = m_new
        r = r * pl.reciprocal(l, approx=approx_recip)
        r = jnp.dot(r.astype(mm_dtype), wo_ref[...],
                    preferred_element_type=jnp.float32) + bo_ref[...]
        out_ref[0] = r + h
    else:
        out_ref[0] = h


# --------------------------------------------------------------------------
# Wrapper
# --------------------------------------------------------------------------
def _group_onehot(C, G):
    cpg = C // G
    return (jnp.arange(C)[:, None] // cpg == jnp.arange(G)[None, :]).astype(jnp.float32)


def _whole(shape):
    nd = len(shape)
    return pl.BlockSpec(shape, lambda b, _nd=nd: (0,) * _nd)


def _pad_conv_weight(w, Cp):
    # (3,3,C,Cout) -> (9*Cp, Cout): zero rows inserted so each tap slot is Cp wide
    # (lane-aligned tap offsets in the im2col patch buffer).
    _, _, C, Cout = w.shape
    w9 = w.reshape(9, C, Cout)
    if Cp != C:
        w9 = jnp.concatenate([w9, jnp.zeros((9, Cp - C, Cout), w.dtype)], axis=1)
    return w9.reshape(9 * Cp, Cout)


def _kv_chunks(HW, max_chunk=512):
    # Static KV chunking for the attention online-softmax (single chunk == exact path).
    if HW <= max_chunk:
        return ((0, HW),)
    for c in range(max_chunk, 7, -1):
        if HW % c == 0 and c % 8 == 0:
            return tuple((i * c, c) for i in range(HW // c))
    return ((0, HW),)


def down_block_forward_nhwc(x_nhwc, p, *, n_groups=32, has_attn=True,
                            mm_dtype=jnp.bfloat16):
    """DownBlock forward on NHWC input (native layout; no relayout round trip)."""
    B, H, W, Cin = x_nhwc.shape
    Cout = p["w1"].shape[-1]
    HW = H * W
    PAD = _round_up(W + 1, 8)     # halo rows; PAD >= W+1 => shifted reads never go OOB
    cp_in = _round_up(Cin, 128)   # lane-aligned im2col tap slots
    cp_out = _round_up(Cout, 128)
    cp_max = max(cp_in, cp_out)
    identity_sc = (Cin == Cout)
    mm = jnp.dtype(mm_dtype)
    approx_recip = (mm == jnp.dtype(jnp.bfloat16))
    scale = float(Cout) ** -0.5
    kv_chunks = _kv_chunks(HW)

    x_flat = x_nhwc.reshape(B, HW, Cin).astype(jnp.float32)
    gmi = _group_onehot(Cin, n_groups)
    gmo = _group_onehot(Cout, n_groups)
    cast = lambda w: w.astype(mm)

    operands = [
        x_flat,
        p["g1"].reshape(1, Cin), p["b1"].reshape(1, Cin),
        cast(_pad_conv_weight(p["w1"], cp_in)), p["cb1"].reshape(1, Cout),
        p["g2"].reshape(1, Cout), p["b2"].reshape(1, Cout),
        cast(_pad_conv_weight(p["w2"], cp_out)), p["cb2"].reshape(1, Cout),
    ]
    in_specs = [
        pl.BlockSpec((1, HW, Cin), lambda b: (b, 0, 0)),      # x (per-batch block)
        _whole((1, Cin)), _whole((1, Cin)),                   # gn1 gamma/beta
        _whole((9 * cp_in, Cout)), _whole((1, Cout)),         # conv1 w (im2col) / b
        _whole((1, Cout)), _whole((1, Cout)),                 # gn2 gamma/beta
        _whole((9 * cp_out, Cout)), _whole((1, Cout)),        # conv2 w (im2col) / b
    ]
    if not identity_sc:
        operands += [cast(p["ws"]), p["bs"].reshape(1, Cout)]
        in_specs += [_whole((Cin, Cout)), _whole((1, Cout))]
    if has_attn:
        operands += [cast(p["wq"]), p["bq"].reshape(1, Cout),
                     cast(p["wk"]), p["bk"].reshape(1, Cout),
                     cast(p["wv"]), p["bv"].reshape(1, Cout),
                     cast(p["wo"]), p["bo"].reshape(1, Cout)]
        in_specs += [_whole((Cout, Cout)), _whole((1, Cout))] * 4
    operands += [gmi, gmi.T, gmo, gmo.T]
    in_specs += [_whole((Cin, n_groups)), _whole((n_groups, Cin)),
                 _whole((Cout, n_groups)), _whole((n_groups, Cout))]
    # TODO(synk): mark the constant-index weight operands single-buffered
    # (pipeline_mode=pl.Buffered(1)) once verified on the target JAX version; today
    # they are needlessly double-buffered (VMEM-only cost at production C on v7x).

    scratch_shapes = [
        pltpu.VMEM((HW + 2 * PAD, cp_max), mm),   # shared conv halo buffer (mm_dtype)
        pltpu.VMEM((HW, 9 * cp_max), mm),         # shared im2col patch buffer (mm_dtype)
    ]

    # Explicit VMEM budget: double-buffered blocks + scratch + live-intermediate slack,
    # clamped to v7x's 64 MiB physical ceiling (v5e/v6e have 128 MiB; their default
    # scoped limits of 16/32 MiB are too small beyond toy shapes).
    blk_bytes = HW * Cin * 4 + HW * Cout * 4                       # x block + out block
    const_bytes = sum(int(op.size) * op.dtype.itemsize for op in operands[1:])
    scratch_bytes = ((HW + 2 * PAD) * cp_max + HW * 9 * cp_max) * mm.itemsize
    live_bytes = 10 * HW * max(Cin, Cout) * 4 \
        + 2 * HW * max(sz for _, sz in kv_chunks) * 4
    est = 2 * (blk_bytes + const_bytes) + scratch_bytes + live_bytes + (4 << 20)
    vmem_limit = int(min(max(est, 32 << 20), 64 << 20))

    kernel = functools.partial(_down_block_kernel, H, W, n_groups, PAD, cp_in, cp_out,
                               identity_sc, has_attn, mm, scale, approx_recip,
                               kv_chunks)

    out = pl.pallas_call(
        kernel,
        out_shape=jax.ShapeDtypeStruct((B, HW, Cout), jnp.float32),
        grid_spec=pltpu.PrefetchScalarGridSpec(
            num_scalar_prefetch=0,
            grid=(B,),
            in_specs=in_specs,
            out_specs=pl.BlockSpec((1, HW, Cout), lambda b: (b, 0, 0)),
            scratch_shapes=scratch_shapes,
        ),
        # Batch axis is independent -> parallel (shards over v7x's 2 TensorCores;
        # plain serial loop on v5e/v6e, where the store-slot/VMEM changes dominate).
        # TODO(synk): add a row-strip spatial grid axis for production HW on v7x.
        compiler_params=pltpu.CompilerParams(
            dimension_semantics=("parallel",),
            vmem_limit_bytes=vmem_limit),
    )(*operands)

    return out.reshape(B, H, W, Cout)


def down_block_forward(x_nchw, p, *, n_groups=32, has_attn=True,
                       mm_dtype=jnp.bfloat16):
    """NCHW adapter (PyTorch parity).  Prefer down_block_forward_nhwc end-to-end:
    the two transposes below are full HBM relayout passes outside the kernel."""
    y = down_block_forward_nhwc(jnp.transpose(x_nchw, (0, 2, 3, 1)), p,
                                n_groups=n_groups, has_attn=has_attn,
                                mm_dtype=mm_dtype)
    return jnp.transpose(y, (0, 3, 1, 2))


# --------------------------------------------------------------------------
# Deterministic parameter init + pure-JAX reference (for correctness check)
# --------------------------------------------------------------------------
def init_params(key, Cin, Cout, has_attn=True):
    ks = jax.random.split(key, 18)
    n = lambda k, s, sc=0.05: sc * jax.random.normal(k, s, jnp.float32)
    p = dict(
        g1=1.0 + n(ks[0], (Cin,), 0.1), b1=n(ks[1], (Cin,), 0.1),
        w1=n(ks[2], (3, 3, Cin, Cout)), cb1=n(ks[3], (Cout,), 0.1),
        g2=1.0 + n(ks[4], (Cout,), 0.1), b2=n(ks[5], (Cout,), 0.1),
        w2=n(ks[6], (3, 3, Cout, Cout)), cb2=n(ks[7], (Cout,), 0.1),
    )
    if Cin != Cout:
        p["ws"] = n(ks[8], (Cin, Cout))
        p["bs"] = n(ks[9], (Cout,), 0.1)
    if has_attn:
        p.update(wq=n(ks[10], (Cout, Cout)), bq=n(ks[11], (Cout,), 0.1),
                 wk=n(ks[12], (Cout, Cout)), bk=n(ks[13], (Cout,), 0.1),
                 wv=n(ks[14], (Cout, Cout)), bv=n(ks[15], (Cout,), 0.1),
                 wo=n(ks[16], (Cout, Cout)), bo=n(ks[17], (Cout,), 0.1))
    return p


def reference(x, p, n_groups=32, has_attn=True):
    def gn(h, gamma, beta):
        B, C, H, W = h.shape
        hg = h.reshape(B, n_groups, C // n_groups, H, W)
        mu = hg.mean(axis=(2, 3, 4), keepdims=True)
        var = hg.var(axis=(2, 3, 4), keepdims=True)
        hn = ((hg - mu) / jnp.sqrt(var + EPS)).reshape(B, C, H, W)
        return hn * gamma[None, :, None, None] + beta[None, :, None, None]

    swish = lambda h: h * jax.nn.sigmoid(h)

    def conv3(h, w, b):  # w: [3,3,Cin,Cout]
        wo = jnp.transpose(w, (3, 2, 0, 1))  # OIHW
        y = lax.conv_general_dilated(h, wo, (1, 1), ((1, 1), (1, 1)),
                                     dimension_numbers=("NCHW", "OIHW", "NCHW"))
        return y + b[None, :, None, None]

    h = conv3(swish(gn(x, p["g1"], p["b1"])), p["w1"], p["cb1"])
    h = conv3(swish(gn(h, p["g2"], p["b2"])), p["w2"], p["cb2"])
    if "ws" in p:
        h = h + jnp.einsum("bchw,cd->bdhw", x, p["ws"]) + p["bs"][None, :, None, None]
    else:
        h = h + x
    if has_attn:
        B, C, H, W = h.shape
        xs = h.reshape(B, C, H * W).transpose(0, 2, 1)
        q = xs @ p["wq"] + p["bq"]
        k = xs @ p["wk"] + p["bk"]
        v = xs @ p["wv"] + p["bv"]
        a = jax.nn.softmax(jnp.einsum("bid,bjd->bij", q, k) * (C ** -0.5), axis=-1)
        r = jnp.einsum("bij,bjd->bid", a, v) @ p["wo"] + p["bo"] + xs
        h = r.transpose(0, 2, 1).reshape(B, C, H, W)
    return h


if __name__ == "__main__":
    B, Cin, Cout, H, W = 2, 32, 64, 8, 8      # time_channels is unused by forward()
    key = jax.random.PRNGKey(0)
    kx, kp = jax.random.split(key)
    x = jax.random.normal(kx, (B, Cin, H, W), jnp.float32)   # NCHW, like PyTorch
    params = init_params(kp, Cin, Cout, has_attn=True)

    with jax.default_matmul_precision("highest"):
        y_ref = reference(x, params, has_attn=True)

    # 1) exact-math path (f32 matmuls) -- tight check against the f32 reference.
    y32 = jax.block_until_ready(
        down_block_forward(x, params, has_attn=True, mm_dtype=jnp.float32))
    assert y32.shape == (B, Cout, H, W) and y32.dtype == jnp.float32
    if not bool(jnp.allclose(y32, y_ref, atol=1e-3, rtol=1e-3)):
        raise AssertionError(
            f"f32 path mismatch, max abs err = {float(jnp.max(jnp.abs(y32 - y_ref)))}")

    # 2) perf path (bf16 MXU operands, f32 accumulation) -- bf16-level tolerance.
    ybf = jax.block_until_ready(
        down_block_forward(x, params, has_attn=True, mm_dtype=jnp.bfloat16))
    if not bool(jnp.allclose(ybf, y_ref, atol=3e-2, rtol=3e-2)):
        raise AssertionError(
            f"bf16 path mismatch, max abs err = {float(jnp.max(jnp.abs(ybf - y_ref)))}")

    # 3) identity-shortcut + no-attention static branch (Cin == Cout, has_attn=False).
    params_id = init_params(jax.random.PRNGKey(1), Cout, Cout, has_attn=False)
    x2 = jax.random.normal(jax.random.PRNGKey(2), (B, Cout, H, W), jnp.float32)
    with jax.default_matmul_precision("highest"):
        y_ref_id = reference(x2, params_id, has_attn=False)
    yid = jax.block_until_ready(
        down_block_forward(x2, params_id, has_attn=False, mm_dtype=jnp.float32))
    if not bool(jnp.allclose(yid, y_ref_id, atol=1e-3, rtol=1e-3)):
        raise AssertionError(
            "identity/no-attn path mismatch, max abs err = "
            f"{float(jnp.max(jnp.abs(yid - y_ref_id)))}")

    # 4) native NHWC entry point (no relayout) agrees with the NCHW adapter.
    ynhwc = jax.block_until_ready(
        down_block_forward_nhwc(jnp.transpose(x, (0, 2, 3, 1)), params,
                                has_attn=True, mm_dtype=jnp.float32))
    if not bool(jnp.allclose(jnp.transpose(ynhwc, (0, 3, 1, 2)), y32)):
        raise AssertionError("NHWC entry point disagrees with NCHW adapter")

    print("KERNEL_OK")
</pallas_src>

<mosaic_0001>
module attributes {stable_mosaic.version = 11 : i64} {
  func.func @_down_block_kernel(%arg0: i32, %arg1: memref<1x64x32xf32, #tpu.memory_space<vmem>>, %arg2: memref<1x32xf32, #tpu.memory_space<vmem>>, %arg3: memref<1x32xf32, #tpu.memory_space<vmem>>, %arg4: memref<1152x64xf32, #tpu.memory_space<vmem>>, %arg5: memref<1x64xf32, #tpu.memory_space<vmem>>, %arg6: memref<1x64xf32, #tpu.memory_space<vmem>>, %arg7: memref<1x64xf32, #tpu.memory_space<vmem>>, %arg8: memref<1152x64xf32, #tpu.memory_space<vmem>>, %arg9: memref<1x64xf32, #tpu.memory_space<vmem>>, %arg10: memref<32x64xf32, #tpu.memory_space<vmem>>, %arg11: memref<1x64xf32, #tpu.memory_space<vmem>>, %arg12: memref<64x64xf32, #tpu.memory_space<vmem>>, %arg13: memref<1x64xf32, #tpu.memory_space<vmem>>, %arg14: memref<64x64xf32, #tpu.memory_space<vmem>>, %arg15: memref<1x64xf32, #tpu.memory_space<vmem>>, %arg16: memref<64x64xf32, #tpu.memory_space<vmem>>, %arg17: memref<1x64xf32, #tpu.memory_space<vmem>>, %arg18: memref<64x64xf32, #tpu.memory_space<vmem>>, %arg19: memref<1x64xf32, #tpu.memory_space<vmem>>, %arg20: memref<32x32xf32, #tpu.memory_space<vmem>>, %arg21: memref<32x32xf32, #tpu.memory_space<vmem>>, %arg22: memref<64x32xf32, #tpu.memory_space<vmem>>, %arg23: memref<32x64xf32, #tpu.memory_space<vmem>>, %arg24: memref<1x64x64xf32, #tpu.memory_space<vmem>>, %arg25: memref<96x128xf32, #tpu.memory_space<vmem>>, %arg26: memref<64x1152xf32, #tpu.memory_space<vmem>>) attributes {dimension_semantics = [#tpu.dimension_semantics<parallel>], iteration_bounds = array<i64: 2>, scalar_prefetch = 0 : i64, scratch_operands = 2 : i64, tpu.core_type = #tpu.core_type<tc>, window_params = [{transform_indices = @transform_0, window_bounds = array<i64: 1, 64, 32>}, {pipeline_mode = #tpu.pipeline_mode<synchronous>, transform_indices = @transform_1, window_bounds = array<i64: 1, 32>}, {pipeline_mode = #tpu.pipeline_mode<synchronous>, transform_indices = @transform_2, window_bounds = array<i64: 1, 32>}, {pipeline_mode = #tpu.pipeline_mode<synchronous>, transform_indices = @transform_3, window_bounds = array<i64: 1152, 64>}, {pipeline_mode = #tpu.pipeline_mode<synchronous>, transform_indices = @transform_4, window_bounds = array<i64: 1, 64>}, {pipeline_mode = #tpu.pipeline_mode<synchronous>, transform_indices = @transform_5, window_bounds = array<i64: 1, 64>}, {pipeline_mode = #tpu.pipeline_mode<synchronous>, transform_indices = @transform_6, window_bounds = array<i64: 1, 64>}, {pipeline_mode = #tpu.pipeline_mode<synchronous>, transform_indices = @transform_7, window_bounds = array<i64: 1152, 64>}, {pipeline_mode = #tpu.pipeline_mode<synchronous>, transform_indices = @transform_8, window_bounds = array<i64: 1, 64>}, {pipeline_mode = #tpu.pipeline_mode<synchronous>, transform_indices = @transform_9, window_bounds = array<i64: 32, 64>}, {pipeline_mode = #tpu.pipeline_mode<synchronous>, transform_indices = @transform_10, window_bounds = array<i64: 1, 64>}, {pipeline_mode = #tpu.pipeline_mode<synchronous>, transform_indices = @transform_11, window_bounds = array<i64: 64, 64>}, {pipeline_mode = #tpu.pipeline_mode<synchronous>, transform_indices = @transform_12, window_bounds = array<i64: 1, 64>}, {pipeline_mode = #tpu.pipeline_mode<synchronous>, transform_indices = @transform_13, window_bounds = array<i64: 64, 64>}, {pipeline_mode = #tpu.pipeline_mode<synchronous>, transform_indices = @transform_14, window_bounds = array<i64: 1, 64>}, {pipeline_mode = #tpu.pipeline_mode<synchronous>, transform_indices = @transform_15, window_bounds = array<i64: 64, 64>}, {pipeline_mode = #tpu.pipeline_mode<synchronous>, transform_indices = @transform_16, window_bounds = array<i64: 1, 64>}, {pipeline_mode = #tpu.pipeline_mode<synchronous>, transform_indices = @transform_17, window_bounds = array<i64: 64, 64>}, {pipeline_mode = #tpu.pipeline_mode<synchronous>, transform_indices = @transform_18, window_bounds = array<i64: 1, 64>}, {pipeline_mode = #tpu.pipeline_mode<synchronous>, transform_indices = @transform_19, window_bounds = array<i64: 32, 32>}, {pipeline_mode = #tpu.pipeline_mode<synchronous>, transform_indices = @transform_20, window_bounds = array<i64: 32, 32>}, {pipeline_mode = #tpu.pipeline_mode<synchronous>, transform_indices = @transform_21, window_bounds = array<i64: 64, 32>}, {pipeline_mode = #tpu.pipeline_mode<synchronous>, transform_indices = @transform_22, window_bounds = array<i64: 32, 64>}, {transform_indices = @transform_23, window_bounds = array<i64: 1, 64, 64>}]} {
    %c0 = arith.constant 0 : index
    %c0_0 = arith.constant 0 : index
    %c0_1 = arith.constant 0 : index
    %0 = vector.load %arg1[%c0, %c0_0, %c0_1] : memref<1x64x32xf32, #tpu.memory_space<vmem>>, vector<1x64x32xf32>
    %1 = vector.shape_cast %0 : vector<1x64x32xf32> to vector<64x32xf32>
    %2 = tpu.iota {dimensions = array<i32: 0>} : vector<64x1xi32>
    %c8_i32 = arith.constant 8 : i32
    %c0_i32 = arith.constant 0 : i32
    %3 = arith.cmpi eq, %c8_i32, %c0_i32 : i32
    %c1_i32 = arith.constant 1 : i32
    %4 = arith.select %3, %c1_i32, %c8_i32 : i32
    %5 = vector.broadcast %4 : i32 to vector<64x1xi32>
    %6 = arith.remsi %2, %5 : vector<64x1xi32>
    %c0_i32_2 = arith.constant 0 : i32
    %7 = vector.broadcast %c0_i32_2 : i32 to vector<64x1xi32>
    %8 = arith.cmpi ne, %6, %7 : vector<64x1xi32>
    %c0_i32_3 = arith.constant 0 : i32
    %9 = vector.broadcast %c0_i32_3 : i32 to vector<64x1xi32>
    %10 = arith.cmpi slt, %6, %9 : vector<64x1xi32>
    %c0_i32_4 = arith.constant 0 : i32
    %11 = arith.cmpi slt, %4, %c0_i32_4 : i32
    %12 = vector.broadcast %11 : i1 to vector<64x1xi1>
    %13 = vector.broadcast %12 : vector<64x1xi1> to vector<64x1xi1>
    %14 = arith.xori %10, %13 : vector<64x1xi1>
    %15 = arith.andi %14, %8 : vector<64x1xi1>
    %16 = vector.broadcast %4 : i32 to vector<64x1xi32>
    %17 = arith.addi %6, %16 : vector<64x1xi32>
    %18 = arith.select %15, %17, %6 : vector<64x1xi1>, vector<64x1xi32>
    %c1_i32_5 = arith.constant 1 : i32
    %19 = vector.broadcast %c1_i32_5 : i32 to vector<64x1xi32>
    %20 = arith.cmpi sge, %18, %19 : vector<64x1xi32>
    %c7_i32 = arith.constant 7 : i32
    %21 = vector.broadcast %c7_i32 : i32 to vector<64x1xi32>
    %22 = arith.cmpi slt, %18, %21 : vector<64x1xi32>
    %23 = tpu.iota {dimensions = array<i32: 0>} : vector<2x1xi32>
    %c0_6 = arith.constant 0 : index
    %c0_7 = arith.constant 0 : index
    %24 = vector.load %arg20[%c0_6, %c0_7] : memref<32x32xf32, #tpu.memory_space<vmem>>, vector<32x32xf32>
    %c0_8 = arith.constant 0 : index
    %c0_9 = arith.constant 0 : index
    %25 = vector.load %arg21[%c0_8, %c0_9] : memref<32x32xf32, #tpu.memory_space<vmem>>, vector<32x32xf32>
    %c0_10 = arith.constant 0 : index
    %c0_11 = arith.constant 0 : index
    %26 = vector.load %arg2[%c0_10, %c0_11] : memref<1x32xf32, #tpu.memory_space<vmem>>, vector<1x32xf32>
    %c0_12 = arith.constant 0 : index
    %c0_13 = arith.constant 0 : index
    %27 = vector.load %arg3[%c0_12, %c0_13] : memref<1x32xf32, #tpu.memory_space<vmem>>, vector<1x32xf32>
    %cst = arith.constant dense<0.000000e+00> : vector<32xf32>
    %28 = vector.multi_reduction <add>, %1, %cst [0] : vector<64x32xf32> to vector<32xf32>
    %29 = vector.shape_cast %28 : vector<32xf32> to vector<1x32xf32>
    %30 = arith.mulf %1, %1 : vector<64x32xf32>
    %cst_14 = arith.constant dense<0.000000e+00> : vector<32xf32>
    %31 = vector.multi_reduction <add>, %30, %cst_14 [0] : vector<64x32xf32> to vector<32xf32>
    %32 = vector.shape_cast %31 : vector<32xf32> to vector<1x32xf32>
    %c0_i32_15 = arith.constant 0 : i32
    %33 = vector.broadcast %c0_i32_15 : i32 to vector<2x1xi32>
    %34 = arith.cmpi eq, %23, %33 : vector<2x1xi32>
    %35 = vector.shape_cast %34 : vector<2x1xi1> to vector<2x1xi1>
    %36 = vector.broadcast %35 : vector<2x1xi1> to vector<2x32xi1>
    %37 = vector.shape_cast %29 : vector<1x32xf32> to vector<1x32xf32>
    %38 = vector.broadcast %37 : vector<1x32xf32> to vector<2x32xf32>
    %39 = vector.shape_cast %32 : vector<1x32xf32> to vector<1x32xf32>
    %40 = vector.broadcast %39 : vector<1x32xf32> to vector<2x32xf32>
    %41 = arith.select %36, %38, %40 : vector<2x32xi1>, vector<2x32xf32>
    %cst_16 = arith.constant dense<0.000000e+00> : vector<2x32xf32>
    %42 = tpu.matmul %41, %24, %cst_16 {dimension_numbers = #tpu.dot_dimension_numbers<[1], [0], [0], [1], [0, 0, 1, 1], [], []>} : vector<2x32xf32>, vector<32x32xf32>, vector<2x32xf32> -> vector<2x32xf32>
    %cst_17 = arith.constant 1.562500e-02 : f32
    %43 = vector.broadcast %cst_17 : f32 to vector<2x32xf32>
    %44 = arith.mulf %42, %43 : vector<2x32xf32>
    %45 = vector.extract_strided_slice %44 {offsets = [0, 0], sizes = [1, 32], strides = [1, 1]} : vector<2x32xf32> to vector<1x32xf32>
    %46 = vector.extract_strided_slice %44 {offsets = [1, 0], sizes = [1, 32], strides = [1, 1]} : vector<2x32xf32> to vector<1x32xf32>
    %47 = arith.mulf %45, %45 : vector<1x32xf32>
    %48 = arith.subf %46, %47 : vector<1x32xf32>
    %cst_18 = arith.constant 9.99999974E-6 : f32
    %49 = vector.broadcast %cst_18 : f32 to vector<1x32xf32>
    %50 = arith.addf %48, %49 : vector<1x32xf32>
    %51 = math.rsqrt %50 : vector<1x32xf32>
    %c0_i32_19 = arith.constant 0 : i32
    %52 = vector.broadcast %c0_i32_19 : i32 to vector<2x1xi32>
    %53 = arith.cmpi eq, %23, %52 : vector<2x1xi32>
    %54 = vector.shape_cast %53 : vector<2x1xi1> to vector<2x1xi1>
    %55 = vector.broadcast %54 : vector<2x1xi1> to vector<2x32xi1>
    %56 = vector.shape_cast %45 : vector<1x32xf32> to vector<1x32xf32>
    %57 = vector.broadcast %56 : vector<1x32xf32> to vector<2x32xf32>
    %58 = vector.shape_cast %51 : vector<1x32xf32> to vector<1x32xf32>
    %59 = vector.broadcast %58 : vector<1x32xf32> to vector<2x32xf32>
    %60 = arith.select %55, %57, %59 : vector<2x32xi1>, vector<2x32xf32>
    %cst_20 = arith.constant dense<0.000000e+00> : vector<2x32xf32>
    %61 = tpu.matmul %60, %25, %cst_20 {dimension_numbers = #tpu.dot_dimension_numbers<[1], [0], [0], [1], [0, 0, 1, 1], [], []>} : vector<2x32xf32>, vector<32x32xf32>, vector<2x32xf32> -> vector<2x32xf32>
    %62 = vector.extract_strided_slice %61 {offsets = [1, 0], sizes = [1, 32], strides = [1, 1]} : vector<2x32xf32> to vector<1x32xf32>
    %63 = arith.mulf %62, %26 : vector<1x32xf32>
    %64 = vector.extract_strided_slice %61 {offsets = [0, 0], sizes = [1, 32], strides = [1, 1]} : vector<2x32xf32> to vector<1x32xf32>
    %65 = arith.mulf %64, %63 : vector<1x32xf32>
    %66 = arith.subf %27, %65 : vector<1x32xf32>
    %67 = vector.broadcast %63 : vector<1x32xf32> to vector<64x32xf32>
    %68 = arith.mulf %1, %67 : vector<64x32xf32>
    %69 = vector.broadcast %66 : vector<1x32xf32> to vector<64x32xf32>
    %70 = arith.addf %68, %69 : vector<64x32xf32>
    %71 = arith.negf %70 : vector<64x32xf32>
    %72 = math.exp %71 : vector<64x32xf32>
    %cst_21 = arith.constant 1.000000e+00 : f32
    %73 = vector.broadcast %cst_21 : f32 to vector<64x32xf32>
    %74 = arith.addf %73, %72 : vector<64x32xf32>
    %75 = arith.divf %73, %74 : vector<64x32xf32>
    %76 = arith.mulf %70, %75 : vector<64x32xf32>
    %c0_22 = arith.constant 0 : index
    %c0_23 = arith.constant 0 : index
    %77 = vector.load %arg5[%c0_22, %c0_23] : memref<1x64xf32, #tpu.memory_space<vmem>>, vector<1x64xf32>
    %cst_24 = arith.constant 0.000000e+00 : f32
    %78 = vector.broadcast %cst_24 : f32 to vector<96x128xf32>
    %c0_25 = arith.constant 0 : index
    %c0_26 = arith.constant 0 : index
    %79 = vector.load %arg25[%c0_25, %c0_26] : memref<96x128xf32, #tpu.memory_space<vmem>>, vector<96x128xf32>
    tpu.vector_store %arg25[%c0_25, %c0_26], %78 {strides = array<i32>} : memref<96x128xf32, #tpu.memory_space<vmem>>, vector<96x128xf32>,
    %c16 = arith.constant 16 : index
    %c0_27 = arith.constant 0 : index
    %80 = vector.load %arg25[%c16, %c0_27] : memref<96x128xf32, #tpu.memory_space<vmem>>, vector<64x32xf32>
    tpu.vector_store %arg25[%c16, %c0_27], %76 {strides = array<i32>} : memref<96x128xf32, #tpu.memory_space<vmem>>, vector<64x32xf32>,
    %c7 = arith.constant 7 : index
    %c0_28 = arith.constant 0 : index
    %81 = vector.load %arg25[%c7, %c0_28] : memref<96x128xf32, #tpu.memory_space<vmem>>, vector<64x128xf32>
    %cst_29 = arith.constant 0.000000e+00 : f32
    %82 = vector.shape_cast %20 : vector<64x1xi1> to vector<64x1xi1>
    %83 = vector.broadcast %82 : vector<64x1xi1> to vector<64x128xi1>
    %84 = vector.broadcast %cst_29 : f32 to vector<64x128xf32>
    %85 = arith.select %83, %81, %84 : vector<64x128xi1>, vector<64x128xf32>
    %c0_30 = arith.constant 0 : index
    %c0_31 = arith.constant 0 : index
    %86 = vector.load %arg26[%c0_30, %c0_31] : memref<64x1152xf32, #tpu.memory_space<vmem>>, vector<64x128xf32>
    tpu.vector_store %arg26[%c0_30, %c0_31], %85 {strides = array<i32>} : memref<64x1152xf32, #tpu.memory_space<vmem>>, vector<64x128xf32>,
    %c8 = arith.constant 8 : index
    %c0_32 = arith.constant 0 : index
    %87 = vector.load %arg25[%c8, %c0_32] : memref<96x128xf32, #tpu.memory_space<vmem>>, vector<64x128xf32>
    %c0_33 = arith.constant 0 : index
    %c128 = arith.constant 128 : index
    %88 = vector.load %arg26[%c0_33, %c128] : memref<64x1152xf32, #tpu.memory_space<vmem>>, vector<64x128xf32>
    tpu.vector_store %arg26[%c0_33, %c128], %87 {strides = array<i32>} : memref<64x1152xf32, #tpu.memory_space<vmem>>, vector<64x128xf32>,
    %c9 = arith.constant 9 : index
    %c0_34 = arith.constant 0 : index
    %89 = vector.load %arg25[%c9, %c0_34] : memref<96x128xf32, #tpu.memory_space<vmem>>, vector<64x128xf32>
    %cst_35 = arith.constant 0.000000e+00 : f32
    %90 = vector.shape_cast %22 : vector<64x1xi1> to vector<64x1xi1>
    %91 = vector.broadcast %90 : vector<64x1xi1> to vector<64x128xi1>
    %92 = vector.broadcast %cst_35 : f32 to vector<64x128xf32>
    %93 = arith.select %91, %89, %92 : vector<64x128xi1>, vector<64x128xf32>
    %c0_36 = arith.constant 0 : index
    %c256 = arith.constant 256 : index
    %94 = vector.load %arg26[%c0_36, %c256] : memref<64x1152xf32, #tpu.memory_space<vmem>>, vector<64x128xf32>
    tpu.vector_store %arg26[%c0_36, %c256], %93 {strides = array<i32>} : memref<64x1152xf32, #tpu.memory_space<vmem>>, vector<64x128xf32>,
    %c15 = arith.constant 15 : index
    %c0_37 = arith.constant 0 : index
    %95 = vector.load %arg25[%c15, %c0_37] : memref<96x128xf32, #tpu.memory_space<vmem>>, vector<64x128xf32>
    %cst_38 = arith.constant 0.000000e+00 : f32
    %96 = vector.shape_cast %20 : vector<64x1xi1> to vector<64x1xi1>
    %97 = vector.broadcast %96 : vector<64x1xi1> to vector<64x128xi1>
    %98 = vector.broadcast %cst_38 : f32 to vector<64x128xf32>
    %99 = arith.select %97, %95, %98 : vector<64x128xi1>, vector<64x128xf32>
    %c0_39 = arith.constant 0 : index
    %c384 = arith.constant 384 : index
    %100 = vector.load %arg26[%c0_39, %c384] : memref<64x1152xf32, #tpu.memory_space<vmem>>, vector<64x128xf32>
    tpu.vector_store %arg26[%c0_39, %c384], %99 {strides = array<i32>} : memref<64x1152xf32, #tpu.memory_space<vmem>>, vector<64x128xf32>,
    %c16_40 = arith.constant 16 : index
    %c0_41 = arith.constant 0 : index
    %101 = vector.load %arg25[%c16_40, %c0_41] : memref<96x128xf32, #tpu.memory_space<vmem>>, vector<64x128xf32>
    %c0_42 = arith.constant 0 : index
    %c512 = arith.constant 512 : index
    %102 = vector.load %arg26[%c0_42, %c512] : memref<64x1152xf32, #tpu.memory_space<vmem>>, vector<64x128xf32>
    tpu.vector_store %arg26[%c0_42, %c512], %101 {strides = array<i32>} : memref<64x1152xf32, #tpu.memory_space<vmem>>, vector<64x128xf32>,
    %c17 = arith.constant 17 : index
    %c0_43 = arith.constant 0 : index
    %103 = vector.load %arg25[%c17, %c0_43] : memref<96x128xf32, #tpu.memory_space<vmem>>, vector<64x128xf32>
    %cst_44 = arith.constant 0.000000e+00 : f32
    %104 = vector.shape_cast %22 : vector<64x1xi1> to vector<64x1xi1>
    %105 = vector.broadcast %104 : vector<64x1xi1> to vector<64x128xi1>
    %106 = vector.broadcast %cst_44 : f32 to vector<64x128xf32>
    %107 = arith.select %105, %103, %106 : vector<64x128xi1>, vector<64x128xf32>
    %c0_45 = arith.constant 0 : index
    %c640 = arith.constant 640 : index
    %108 = vector.load %arg26[%c0_45, %c640] : memref<64x1152xf32, #tpu.memory_space<vmem>>, vector<64x128xf32>
    tpu.vector_store %arg26[%c0_45, %c640], %107 {strides = array<i32>} : memref<64x1152xf32, #tpu.memory_space<vmem>>, vector<64x128xf32>,
    %c23 = arith.constant 23 : index
    %c0_46 = arith.constant 0 : index
    %109 = vector.load %arg25[%c23, %c0_46] : memref<96x128xf32, #tpu.memory_space<vmem>>, vector<64x128xf32>
    %cst_47 = arith.constant 0.000000e+00 : f32
    %110 = vector.shape_cast %20 : vector<64x1xi1> to vector<64x1xi1>
    %111 = vector.broadcast %110 : vector<64x1xi1> to vector<64x128xi1>
    %112 = vector.broadcast %cst_47 : f32 to vector<64x128xf32>
    %113 = arith.select %111, %109, %112 : vector<64x128xi1>, vector<64x128xf32>
    %c0_48 = arith.constant 0 : index
    %c768 = arith.constant 768 : index
    %114 = vector.load %arg26[%c0_48, %c768] : memref<64x1152xf32, #tpu.memory_space<vmem>>, vector<64x128xf32>
    tpu.vector_store %arg26[%c0_48, %c768], %113 {strides = array<i32>} : memref<64x1152xf32, #tpu.memory_space<vmem>>, vector<64x128xf32>,
    %c24 = arith.constant 24 : index
    %c0_49 = arith.constant 0 : index
    %115 = vector.load %arg25[%c24, %c0_49] : memref<96x128xf32, #tpu.memory_space<vmem>>, vector<64x128xf32>
    %c0_50 = arith.constant 0 : index
    %c896 = arith.constant 896 : index
    %116 = vector.load %arg26[%c0_50, %c896] : memref<64x1152xf32, #tpu.memory_space<vmem>>, vector<64x128xf32>
    tpu.vector_store %arg26[%c0_50, %c896], %115 {strides = array<i32>} : memref<64x1152xf32, #tpu.memory_space<vmem>>, vector<64x128xf32>,
    %c25 = arith.constant 25 : index
    %c0_51 = arith.constant 0 : index
    %117 = vector.load %arg25[%c25, %c0_51] : memref<96x128xf32, #tpu.memory_space<vmem>>, vector<64x128xf32>
    %cst_52 = arith.constant 0.000000e+00 : f32
    %118 = vector.shape_cast %22 : vector<64x1xi1> to vector<64x1xi1>
    %119 = vector.broadcast %118 : vector<64x1xi1> to vector<64x128xi1>
    %120 = vector.broadcast %cst_52 : f32 to vector<64x128xf32>
    %121 = arith.select %119, %117, %120 : vector<64x128xi1>, vector<64x128xf32>
    %c0_53 = arith.constant 0 : index
    %c1024 = arith.constant 1024 : index
    %122 = vector.load %arg26[%c0_53, %c1024] : memref<64x1152xf32, #tpu.memory_space<vmem>>, vector<64x128xf32>
    tpu.vector_store %arg26[%c0_53, %c1024], %121 {strides = array<i32>} : memref<64x1152xf32, #tpu.memory_space<vmem>>, vector<64x128xf32>,
    %c0_54 = arith.constant 0 : index
    %c0_55 = arith.constant 0 : index
    %123 = vector.load %arg26[%c0_54, %c0_55] : memref<64x1152xf32, #tpu.memory_space<vmem>>, vector<64x1152xf32>
    %c0_56 = arith.constant 0 : index
    %c0_57 = arith.constant 0 : index
    %124 = vector.load %arg4[%c0_56, %c0_57] : memref<1152x64xf32, #tpu.memory_space<vmem>>, vector<1152x64xf32>
    %cst_58 = arith.constant dense<0.000000e+00> : vector<64x64xf32>
    %125 = tpu.matmul %123, %124, %cst_58 {dimension_numbers = #tpu.dot_dimension_numbers<[1], [0], [0], [1], [0, 0, 1, 1], [], []>} : vector<64x1152xf32>, vector<1152x64xf32>, vector<64x64xf32> -> vector<64x64xf32>
    %126 = vector.broadcast %77 : vector<1x64xf32> to vector<64x64xf32>
    %127 = arith.addf %125, %126 : vector<64x64xf32>
    %c0_59 = arith.constant 0 : index
    %c0_60 = arith.constant 0 : index
    %128 = vector.load %arg22[%c0_59, %c0_60] : memref<64x32xf32, #tpu.memory_space<vmem>>, vector<64x32xf32>
    %c0_61 = arith.constant 0 : index
    %c0_62 = arith.constant 0 : index
    %129 = vector.load %arg23[%c0_61, %c0_62] : memref<32x64xf32, #tpu.memory_space<vmem>>, vector<32x64xf32>
    %c0_63 = arith.constant 0 : index
    %c0_64 = arith.constant 0 : index
    %130 = vector.load %arg6[%c0_63, %c0_64] : memref<1x64xf32, #tpu.memory_space<vmem>>, vector<1x64xf32>
    %c0_65 = arith.constant 0 : index
    %c0_66 = arith.constant 0 : index
    %131 = vector.load %arg7[%c0_65, %c0_66] : memref<1x64xf32, #tpu.memory_space<vmem>>, vector<1x64xf32>
    %cst_67 = arith.constant dense<0.000000e+00> : vector<64xf32>
    %132 = vector.multi_reduction <add>, %127, %cst_67 [0] : vector<64x64xf32> to vector<64xf32>
    %133 = vector.shape_cast %132 : vector<64xf32> to vector<1x64xf32>
    %134 = arith.mulf %127, %127 : vector<64x64xf32>
    %cst_68 = arith.constant dense<0.000000e+00> : vector<64xf32>
    %135 = vector.multi_reduction <add>, %134, %cst_68 [0] : vector<64x64xf32> to vector<64xf32>
    %136 = vector.shape_cast %135 : vector<64xf32> to vector<1x64xf32>
    %c0_i32_69 = arith.constant 0 : i32
    %137 = vector.broadcast %c0_i32_69 : i32 to vector<2x1xi32>
    %138 = arith.cmpi eq, %23, %137 : vector<2x1xi32>
    %139 = vector.shape_cast %138 : vector<2x1xi1> to vector<2x1xi1>
    %140 = vector.broadcast %139 : vector<2x1xi1> to vector<2x64xi1>
    %141 = vector.shape_cast %133 : vector<1x64xf32> to vector<1x64xf32>
    %142 = vector.broadcast %141 : vector<1x64xf32> to vector<2x64xf32>
    %143 = vector.shape_cast %136 : vector<1x64xf32> to vector<1x64xf32>
    %144 = vector.broadcast %143 : vector<1x64xf32> to vector<2x64xf32>
    %145 = arith.select %140, %142, %144 : vector<2x64xi1>, vector<2x64xf32>
    %cst_70 = arith.constant dense<0.000000e+00> : vector<2x32xf32>
    %146 = tpu.matmul %145, %128, %cst_70 {dimension_numbers = #tpu.dot_dimension_numbers<[1], [0], [0], [1], [0, 0, 1, 1], [], []>} : vector<2x64xf32>, vector<64x32xf32>, vector<2x32xf32> -> vector<2x32xf32>
    %cst_71 = arith.constant 7.812500e-03 : f32
    %147 = vector.broadcast %cst_71 : f32 to vector<2x32xf32>
    %148 = arith.mulf %146, %147 : vector<2x32xf32>
    %149 = vector.extract_strided_slice %148 {offsets = [0, 0], sizes = [1, 32], strides = [1, 1]} : vector<2x32xf32> to vector<1x32xf32>
    %150 = vector.extract_strided_slice %148 {offsets = [1, 0], sizes = [1, 32], strides = [1, 1]} : vector<2x32xf32> to vector<1x32xf32>
    %151 = arith.mulf %149, %149 : vector<1x32xf32>
    %152 = arith.subf %150, %151 : vector<1x32xf32>
    %cst_72 = arith.constant 9.99999974E-6 : f32
    %153 = vector.broadcast %cst_72 : f32 to vector<1x32xf32>
    %154 = arith.addf %152, %153 : vector<1x32xf32>
    %155 = math.rsqrt %154 : vector<1x32xf32>
    %c0_i32_73 = arith.constant 0 : i32
    %156 = vector.broadcast %c0_i32_73 : i32 to vector<2x1xi32>
    %157 = arith.cmpi eq, %23, %156 : vector<2x1xi32>
    %158 = vector.shape_cast %157 : vector<2x1xi1> to vector<2x1xi1>
    %159 = vector.broadcast %158 : vector<2x1xi1> to vector<2x32xi1>
    %160 = vector.shape_cast %149 : vector<1x32xf32> to vector<1x32xf32>
    %161 = vector.broadcast %160 : vector<1x32xf32> to vector<2x32xf32>
    %162 = vector.shape_cast %155 : vector<1x32xf32> to vector<1x32xf32>
    %163 = vector.broadcast %162 : vector<1x32xf32> to vector<2x32xf32>
    %164 = arith.select %159, %161, %163 : vector<2x32xi1>, vector<2x32xf32>
    %cst_74 = arith.constant dense<0.000000e+00> : vector<2x64xf32>
    %165 = tpu.matmul %164, %129, %cst_74 {dimension_numbers = #tpu.dot_dimension_numbers<[1], [0], [0], [1], [0, 0, 1, 1], [], []>} : vector<2x32xf32>, vector<32x64xf32>, vector<2x64xf32> -> vector<2x64xf32>
    %166 = vector.extract_strided_slice %165 {offsets = [1, 0], sizes = [1, 64], strides = [1, 1]} : vector<2x64xf32> to vector<1x64xf32>
    %167 = arith.mulf %166, %130 : vector<1x64xf32>
    %168 = vector.extract_strided_slice %165 {offsets = [0, 0], sizes = [1, 64], strides = [1, 1]} : vector<2x64xf32> to vector<1x64xf32>
    %169 = arith.mulf %168, %167 : vector<1x64xf32>
    %170 = arith.subf %131, %169 : vector<1x64xf32>
    %171 = vector.broadcast %167 : vector<1x64xf32> to vector<64x64xf32>
    %172 = arith.mulf %127, %171 : vector<64x64xf32>
    %173 = vector.broadcast %170 : vector<1x64xf32> to vector<64x64xf32>
    %174 = arith.addf %172, %173 : vector<64x64xf32>
    %175 = arith.negf %174 : vector<64x64xf32>
    %176 = math.exp %175 : vector<64x64xf32>
    %cst_75 = arith.constant 1.000000e+00 : f32
    %177 = vector.broadcast %cst_75 : f32 to vector<64x64xf32>
    %178 = arith.addf %177, %176 : vector<64x64xf32>
    %179 = arith.divf %177, %178 : vector<64x64xf32>
    %180 = arith.mulf %174, %179 : vector<64x64xf32>
    %c0_76 = arith.constant 0 : index
    %c0_77 = arith.constant 0 : index
    %181 = vector.load %arg9[%c0_76, %c0_77] : memref<1x64xf32, #tpu.memory_space<vmem>>, vector<1x64xf32>
    %cst_78 = arith.constant 0.000000e+00 : f32
    %182 = vector.broadcast %cst_78 : f32 to vector<96x128xf32>
    %c0_79 = arith.constant 0 : index
    %c0_80 = arith.constant 0 : index
    %183 = vector.load %arg25[%c0_79, %c0_80] : memref<96x128xf32, #tpu.memory_space<vmem>>, vector<96x128xf32>
    tpu.vector_store %arg25[%c0_79, %c0_80], %182 {strides = array<i32>} : memref<96x128xf32, #tpu.memory_space<vmem>>, vector<96x128xf32>,
    %c16_81 = arith.constant 16 : index
    %c0_82 = arith.constant 0 : index
    %184 = vector.load %arg25[%c16_81, %c0_82] : memref<96x128xf32, #tpu.memory_space<vmem>>, vector<64x64xf32>
    tpu.vector_store %arg25[%c16_81, %c0_82], %180 {strides = array<i32>} : memref<96x128xf32, #tpu.memory_space<vmem>>, vector<64x64xf32>,
    %c7_83 = arith.constant 7 : index
    %c0_84 = arith.constant 0 : index
    %185 = vector.load %arg25[%c7_83, %c0_84] : memref<96x128xf32, #tpu.memory_space<vmem>>, vector<64x128xf32>
    %cst_85 = arith.constant 0.000000e+00 : f32
    %186 = vector.shape_cast %20 : vector<64x1xi1> to vector<64x1xi1>
    %187 = vector.broadcast %186 : vector<64x1xi1> to vector<64x128xi1>
    %188 = vector.broadcast %cst_85 : f32 to vector<64x128xf32>
    %189 = arith.select %187, %185, %188 : vector<64x128xi1>, vector<64x128xf32>
    %c0_86 = arith.constant 0 : index
    %c0_87 = arith.constant 0 : index
    %190 = vector.load %arg26[%c0_86, %c0_87] : memref<64x1152xf32, #tpu.memory_space<vmem>>, vector<64x128xf32>
    tpu.vector_store %arg26[%c0_86, %c0_87], %189 {strides = array<i32>} : memref<64x1152xf32, #tpu.memory_space<vmem>>, vector<64x128xf32>,
    %c8_88 = arith.constant 8 : index
    %c0_89 = arith.constant 0 : index
    %191 = vector.load %arg25[%c8_88, %c0_89] : memref<96x128xf32, #tpu.memory_space<vmem>>, vector<64x128xf32>
    %c0_90 = arith.constant 0 : index
    %c128_91 = arith.constant 128 : index
    %192 = vector.load %arg26[%c0_90, %c128_91] : memref<64x1152xf32, #tpu.memory_space<vmem>>, vector<64x128xf32>
    tpu.vector_store %arg26[%c0_90, %c128_91], %191 {strides = array<i32>} : memref<64x1152xf32, #tpu.memory_space<vmem>>, vector<64x128xf32>,
    %c9_92 = arith.constant 9 : index
    %c0_93 = arith.constant 0 : index
    %193 = vector.load %arg25[%c9_92, %c0_93] : memref<96x128xf32, #tpu.memory_space<vmem>>, vector<64x128xf32>
    %cst_94 = arith.constant 0.000000e+00 : f32
    %194 = vector.shape_cast %22 : vector<64x1xi1> to vector<64x1xi1>
    %195 = vector.broadcast %194 : vector<64x1xi1> to vector<64x128xi1>
    %196 = vector.broadcast %cst_94 : f32 to vector<64x128xf32>
    %197 = arith.select %195, %193, %196 : vector<64x128xi1>, vector<64x128xf32>
    %c0_95 = arith.constant 0 : index
    %c256_96 = arith.constant 256 : index
    %198 = vector.load %arg26[%c0_95, %c256_96] : memref<64x1152xf32, #tpu.memory_space<vmem>>, vector<64x128xf32>
    tpu.vector_store %arg26[%c0_95, %c256_96], %197 {strides = array<i32>} : memref<64x1152xf32, #tpu.memory_space<vmem>>, vector<64x128xf32>,
    %c15_97 = arith.constant 15 : index
    %c0_98 = arith.constant 0 : index
    %199 = vector.load %arg25[%c15_97, %c0_98] : memref<96x128xf32, #tpu.memory_space<vmem>>, vector<64x128xf32>
    %cst_99 = arith.constant 0.000000e+00 : f32
    %200 = vector.shape_cast %20 : vector<64x1xi1> to vector<64x1xi1>
    %201 = vector.broadcast %200 : vector<64x1xi1> to vector<64x128xi1>
    %202 = vector.broadcast %cst_99 : f32 to vector<64x128xf32>
    %203 = arith.select %201, %199, %202 : vector<64x128xi1>, vector<64x128xf32>
    %c0_100 = arith.constant 0 : index
    %c384_101 = arith.constant 384 : index
    %204 = vector.load %arg26[%c0_100, %c384_101] : memref<64x1152xf32, #tpu.memory_space<vmem>>, vector<64x128xf32>
    tpu.vector_store %arg26[%c0_100, %c384_101], %203 {strides = array<i32>} : memref<64x1152xf32, #tpu.memory_space<vmem>>, vector<64x128xf32>,
    %c16_102 = arith.constant 16 : index
    %c0_103 = arith.constant 0 : index
    %205 = vector.load %arg25[%c16_102, %c0_103] : memref<96x128xf32, #tpu.memory_space<vmem>>, vector<64x128xf32>
    %c0_104 = arith.constant 0 : index
    %c512_105 = arith.constant 512 : index
    %206 = vector.load %arg26[%c0_104, %c512_105] : memref<64x1152xf32, #tpu.memory_space<vmem>>, vector<64x128xf32>
    tpu.vector_store %arg26[%c0_104, %c512_105], %205 {strides = array<i32>} : memref<64x1152xf32, #tpu.memory_space<vmem>>, vector<64x128xf32>,
    %c17_106 = arith.constant 17 : index
    %c0_107 = arith.constant 0 : index
    %207 = vector.load %arg25[%c17_106, %c0_107] : memref<96x128xf32, #tpu.memory_space<vmem>>, vector<64x128xf32>
    %cst_108 = arith.constant 0.000000e+00 : f32
    %208 = vector.shape_cast %22 : vector<64x1xi1> to vector<64x1xi1>
    %209 = vector.broadcast %208 : vector<64x1xi1> to vector<64x128xi1>
    %210 = vector.broadcast %cst_108 : f32 to vector<64x128xf32>
    %211 = arith.select %209, %207, %210 : vector<64x128xi1>, vector<64x128xf32>
    %c0_109 = arith.constant 0 : index
    %c640_110 = arith.constant 640 : index
    %212 = vector.load %arg26[%c0_109, %c640_110] : memref<64x1152xf32, #tpu.memory_space<vmem>>, vector<64x128xf32>
    tpu.vector_store %arg26[%c0_109, %c640_110], %211 {strides = array<i32>} : memref<64x1152xf32, #tpu.memory_space<vmem>>, vector<64x128xf32>,
    %c23_111 = arith.constant 23 : index
    %c0_112 = arith.constant 0 : index
    %213 = vector.load %arg25[%c23_111, %c0_112] : memref<96x128xf32, #tpu.memory_space<vmem>>, vector<64x128xf32>
    %cst_113 = arith.constant 0.000000e+00 : f32
    %214 = vector.shape_cast %20 : vector<64x1xi1> to vector<64x1xi1>
    %215 = vector.broadcast %214 : vector<64x1xi1> to vector<64x128xi1>
    %216 = vector.broadcast %cst_113 : f32 to vector<64x128xf32>
    %217 = arith.select %215, %213, %216 : vector<64x128xi1>, vector<64x128xf32>
    %c0_114 = arith.constant 0 : index
    %c768_115 = arith.constant 768 : index
    %218 = vector.load %arg26[%c0_114, %c768_115] : memref<64x1152xf32, #tpu.memory_space<vmem>>, vector<64x128xf32>
    tpu.vector_store %arg26[%c0_114, %c768_115], %217 {strides = array<i32>} : memref<64x1152xf32, #tpu.memory_space<vmem>>, vector<64x128xf32>,
    %c24_116 = arith.constant 24 : index
    %c0_117 = arith.constant 0 : index
    %219 = vector.load %arg25[%c24_116, %c0_117] : memref<96x128xf32, #tpu.memory_space<vmem>>, vector<64x128xf32>
    %c0_118 = arith.constant 0 : index
    %c896_119 = arith.constant 896 : index
    %220 = vector.load %arg26[%c0_118, %c896_119] : memref<64x1152xf32, #tpu.memory_space<vmem>>, vector<64x128xf32>
    tpu.vector_store %arg26[%c0_118, %c896_119], %219 {strides = array<i32>} : memref<64x1152xf32, #tpu.memory_space<vmem>>, vector<64x128xf32>,
    %c25_120 = arith.constant 25 : index
    %c0_121 = arith.constant 0 : index
    %221 = vector.load %arg25[%c25_120, %c0_121] : memref<96x128xf32, #tpu.memory_space<vmem>>, vector<64x128xf32>
    %cst_122 = arith.constant 0.000000e+00 : f32
    %222 = vector.shape_cast %22 : vector<64x1xi1> to vector<64x1xi1>
    %223 = vector.broadcast %222 : vector<64x1xi1> to vector<64x128xi1>
    %224 = vector.broadcast %cst_122 : f32 to vector<64x128xf32>
    %225 = arith.select %223, %221, %224 : vector<64x128xi1>, vector<64x128xf32>
    %c0_123 = arith.constant 0 : index
    %c1024_124 = arith.constant 1024 : index
    %226 = vector.load %arg26[%c0_123, %c1024_124] : memref<64x1152xf32, #tpu.memory_space<vmem>>, vector<64x128xf32>
    tpu.vector_store %arg26[%c0_123, %c1024_124], %225 {strides = array<i32>} : memref<64x1152xf32, #tpu.memory_space<vmem>>, vector<64x128xf32>,
    %c0_125 = arith.constant 0 : index
    %c0_126 = arith.constant 0 : index
    %227 = vector.load %arg26[%c0_125, %c0_126] : memref<64x1152xf32, #tpu.memory_space<vmem>>, vector<64x1152xf32>
    %c0_127 = arith.constant 0 : index
    %c0_128 = arith.constant 0 : index
    %228 = vector.load %arg8[%c0_127, %c0_128] : memref<1152x64xf32, #tpu.memory_space<vmem>>, vector<1152x64xf32>
    %cst_129 = arith.constant dense<0.000000e+00> : vector<64x64xf32>
    %229 = tpu.matmul %227, %228, %cst_129 {dimension_numbers = #tpu.dot_dimension_numbers<[1], [0], [0], [1], [0, 0, 1, 1], [], []>} : vector<64x1152xf32>, vector<1152x64xf32>, vector<64x64xf32> -> vector<64x64xf32>
    %230 = vector.broadcast %181 : vector<1x64xf32> to vector<64x64xf32>
    %231 = arith.addf %229, %230 : vector<64x64xf32>
    %c0_130 = arith.constant 0 : index
    %c0_131 = arith.constant 0 : index
    %232 = vector.load %arg10[%c0_130, %c0_131] : memref<32x64xf32, #tpu.memory_space<vmem>>, vector<32x64xf32>
    %cst_132 = arith.constant dense<0.000000e+00> : vector<64x64xf32>
    %233 = tpu.matmul %1, %232, %cst_132 {dimension_numbers = #tpu.dot_dimension_numbers<[1], [0], [0], [1], [0, 0, 1, 1], [], []>} : vector<64x32xf32>, vector<32x64xf32>, vector<64x64xf32> -> vector<64x64xf32>
    %234 = arith.addf %231, %233 : vector<64x64xf32>
    %c0_133 = arith.constant 0 : index
    %c0_134 = arith.constant 0 : index
    %235 = vector.load %arg11[%c0_133, %c0_134] : memref<1x64xf32, #tpu.memory_space<vmem>>, vector<1x64xf32>
    %236 = vector.broadcast %235 : vector<1x64xf32> to vector<64x64xf32>
    %237 = arith.addf %234, %236 : vector<64x64xf32>
    %c0_135 = arith.constant 0 : index
    %c0_136 = arith.constant 0 : index
    %238 = vector.load %arg12[%c0_135, %c0_136] : memref<64x64xf32, #tpu.memory_space<vmem>>, vector<64x64xf32>
    %cst_137 = arith.constant dense<0.000000e+00> : vector<64x64xf32>
    %239 = tpu.matmul %237, %238, %cst_137 {dimension_numbers = #tpu.dot_dimension_numbers<[1], [0], [0], [1], [0, 0, 1, 1], [], []>} : vector<64x64xf32>, vector<64x64xf32>, vector<64x64xf32> -> vector<64x64xf32>
    %c0_138 = arith.constant 0 : index
    %c0_139 = arith.constant 0 : index
    %240 = vector.load %arg13[%c0_138, %c0_139] : memref<1x64xf32, #tpu.memory_space<vmem>>, vector<1x64xf32>
    %241 = vector.broadcast %240 : vector<1x64xf32> to vector<64x64xf32>
    %242 = arith.addf %239, %241 : vector<64x64xf32>
    %c0_140 = arith.constant 0 : index
    %c0_141 = arith.constant 0 : index
    %243 = vector.load %arg14[%c0_140, %c0_141] : memref<64x64xf32, #tpu.memory_space<vmem>>, vector<64x64xf32>
    %cst_142 = arith.constant dense<0.000000e+00> : vector<64x64xf32>
    %244 = tpu.matmul %237, %243, %cst_142 {dimension_numbers = #tpu.dot_dimension_numbers<[1], [0], [0], [1], [0, 0, 1, 1], [], []>} : vector<64x64xf32>, vector<64x64xf32>, vector<64x64xf32> -> vector<64x64xf32>
    %c0_143 = arith.constant 0 : index
    %c0_144 = arith.constant 0 : index
    %245 = vector.load %arg15[%c0_143, %c0_144] : memref<1x64xf32, #tpu.memory_space<vmem>>, vector<1x64xf32>
    %246 = vector.broadcast %245 : vector<1x64xf32> to vector<64x64xf32>
    %247 = arith.addf %244, %246 : vector<64x64xf32>
    %c0_145 = arith.constant 0 : index
    %c0_146 = arith.constant 0 : index
    %248 = vector.load %arg16[%c0_145, %c0_146] : memref<64x64xf32, #tpu.memory_space<vmem>>, vector<64x64xf32>
    %cst_147 = arith.constant dense<0.000000e+00> : vector<64x64xf32>
    %249 = tpu.matmul %237, %248, %cst_147 {dimension_numbers = #tpu.dot_dimension_numbers<[1], [0], [0], [1], [0, 0, 1, 1], [], []>} : vector<64x64xf32>, vector<64x64xf32>, vector<64x64xf32> -> vector<64x64xf32>
    %c0_148 = arith.constant 0 : index
    %c0_149 = arith.constant 0 : index
    %250 = vector.load %arg17[%c0_148, %c0_149] : memref<1x64xf32, #tpu.memory_space<vmem>>, vector<1x64xf32>
    %251 = vector.broadcast %250 : vector<1x64xf32> to vector<64x64xf32>
    %252 = arith.addf %249, %251 : vector<64x64xf32>
    %cst_150 = arith.constant 1.250000e-01 : f32
    %253 = vector.broadcast %cst_150 : f32 to vector<64x64xf32>
    %254 = arith.mulf %242, %253 : vector<64x64xf32>
    %cst_151 = arith.constant dense<0.000000e+00> : vector<64x64xf32>
    %255 = tpu.matmul %254, %247, %cst_151 {dimension_numbers = #tpu.dot_dimension_numbers<[1], [1], [0], [0], [0, 0, 1, 0], [], []>} : vector<64x64xf32>, vector<64x64xf32>, vector<64x64xf32> -> vector<64x64xf32>
    %cst_152 = arith.constant dense<0xFF800000> : vector<64xf32>
    %256 = vector.multi_reduction <maximumf>, %255, %cst_152 [1] : vector<64x64xf32> to vector<64xf32>
    %257 = vector.shape_cast %256 : vector<64xf32> to vector<64x1xf32>
    %258 = vector.broadcast %257 : vector<64x1xf32> to vector<64x64xf32>
    %259 = arith.subf %255, %258 : vector<64x64xf32>
    %260 = math.exp %259 : vector<64x64xf32>
    %cst_153 = arith.constant dense<0.000000e+00> : vector<64xf32>
    %261 = vector.multi_reduction <add>, %260, %cst_153 [1] : vector<64x64xf32> to vector<64xf32>
    %262 = vector.shape_cast %261 : vector<64xf32> to vector<64x1xf32>
    %cst_154 = arith.constant dense<0.000000e+00> : vector<64x64xf32>
    %263 = tpu.matmul %260, %252, %cst_154 {dimension_numbers = #tpu.dot_dimension_numbers<[1], [0], [0], [1], [0, 0, 1, 1], [], []>} : vector<64x64xf32>, vector<64x64xf32>, vector<64x64xf32> -> vector<64x64xf32>
    %264 = tpu.reciprocal %262 : vector<64x1xf32> -> vector<64x1xf32>
    %265 = vector.broadcast %264 : vector<64x1xf32> to vector<64x64xf32>
    %266 = arith.mulf %263, %265 : vector<64x64xf32>
    %c0_155 = arith.constant 0 : index
    %c0_156 = arith.constant 0 : index
    %267 = vector.load %arg18[%c0_155, %c0_156] : memref<64x64xf32, #tpu.memory_space<vmem>>, vector<64x64xf32>
    %cst_157 = arith.constant dense<0.000000e+00> : vector<64x64xf32>
    %268 = tpu.matmul %266, %267, %cst_157 {dimension_numbers = #tpu.dot_dimension_numbers<[1], [0], [0], [1], [0, 0, 1, 1], [], []>} : vector<64x64xf32>, vector<64x64xf32>, vector<64x64xf32> -> vector<64x64xf32>
    %c0_158 = arith.constant 0 : index
    %c0_159 = arith.constant 0 : index
    %269 = vector.load %arg19[%c0_158, %c0_159] : memref<1x64xf32, #tpu.memory_space<vmem>>, vector<1x64xf32>
    %270 = vector.broadcast %269 : vector<1x64xf32> to vector<64x64xf32>
    %271 = arith.addf %268, %270 : vector<64x64xf32>
    %272 = arith.addf %271, %237 : vector<64x64xf32>
    %c0_160 = arith.constant 0 : index
    %c0_161 = arith.constant 0 : index
    %c0_162 = arith.constant 0 : index
    %273 = vector.load %arg24[%c0_160, %c0_161, %c0_162] : memref<1x64x64xf32, #tpu.memory_space<vmem>>, vector<1x64x64xf32>
    %274 = vector.shape_cast %273 : vector<1x64x64xf32> to vector<64x64xf32>
    %275 = vector.shape_cast %272 : vector<64x64xf32> to vector<1x64x64xf32>
    tpu.vector_store %arg24[%c0_160, %c0_161, %c0_162], %275 {strides = array<i32>} : memref<1x64x64xf32, #tpu.memory_space<vmem>>, vector<1x64x64xf32>,
    return
  }
  func.func @transform_0(%arg0: i32) -> (i32, i32, i32) {
    %c0_i32 = arith.constant 0 : i32
    %c0_i32_0 = arith.constant 0 : i32
    %c0_i32_1 = arith.constant 0 : i32
    return %arg0, %c0_i32, %c0_i32_0 : i32, i32, i32
  }
  func.func @transform_1(%arg0: i32) -> (i32, i32) {
    %c0_i32 = arith.constant 0 : i32
    %c0_i32_0 = arith.constant 0 : i32
    %c0_i32_1 = arith.constant 0 : i32
    return %c0_i32, %c0_i32_0 : i32, i32
  }
  func.func @transform_2(%arg0: i32) -> (i32, i32) {
    %c0_i32 = arith.constant 0 : i32
    %c0_i32_0 = arith.constant 0 : i32
    %c0_i32_1 = arith.constant 0 : i32
    return %c0_i32, %c0_i32_0 : i32, i32
  }
  func.func @transform_3(%arg0: i32) -> (i32, i32) {
    %c0_i32 = arith.constant 0 : i32
    %c0_i32_0 = arith.constant 0 : i32
    %c0_i32_1 = arith.constant 0 : i32
    return %c0_i32, %c0_i32_0 : i32, i32
  }
  func.func @transform_4(%arg0: i32) -> (i32, i32) {
    %c0_i32 = arith.constant 0 : i32
    %c0_i32_0 = arith.constant 0 : i32
    %c0_i32_1 = arith.constant 0 : i32
    return %c0_i32, %c0_i32_0 : i32, i32
  }
  func.func @transform_5(%arg0: i32) -> (i32, i32) {
    %c0_i32 = arith.constant 0 : i32
    %c0_i32_0 = arith.constant 0 : i32
    %c0_i32_1 = arith.constant 0 : i32
    return %c0_i32, %c0_i32_0 : i32, i32
  }
  func.func @transform_6(%arg0: i32) -> (i32, i32) {
    %c0_i32 = arith.constant 0 : i32
    %c0_i32_0 = arith.constant 0 : i32
    %c0_i32_1 = arith.constant 0 : i32
    return %c0_i32, %c0_i32_0 : i32, i32
  }
  func.func @transform_7(%arg0: i32) -> (i32, i32) {
    %c0_i32 = arith.constant 0 : i32
    %c0_i32_0 = arith.constant 0 : i32
    %c0_i32_1 = arith.constant 0 : i32
    return %c0_i32, %c0_i32_0 : i32, i32
  }
  func.func @transform_8(%arg0: i32) -> (i32, i32) {
    %c0_i32 = arith.constant 0 : i32
    %c0_i32_0 = arith.constant 0 : i32
    %c0_i32_1 = arith.constant 0 : i32
    return %c0_i32, %c0_i32_0 : i32, i32
  }
  func.func @transform_9(%arg0: i32) -> (i32, i32) {
    %c0_i32 = arith.constant 0 : i32
    %c0_i32_0 = arith.constant 0 : i32
    %c0_i32_1 = arith.constant 0 : i32
    return %c0_i32, %c0_i32_0 : i32, i32
  }
  func.func @transform_10(%arg0: i32) -> (i32, i32) {
    %c0_i32 = arith.constant 0 : i32
    %c0_i32_0 = arith.constant 0 : i32
    %c0_i32_1 = arith.constant 0 : i32
    return %c0_i32, %c0_i32_0 : i32, i32
  }
  func.func @transform_11(%arg0: i32) -> (i32, i32) {
    %c0_i32 = arith.constant 0 : i32
    %c0_i32_0 = arith.constant 0 : i32
    %c0_i32_1 = arith.constant 0 : i32
    return %c0_i32, %c0_i32_0 : i32, i32
  }
  func.func @transform_12(%arg0: i32) -> (i32, i32) {
    %c0_i32 = arith.constant 0 : i32
    %c0_i32_0 = arith.constant 0 : i32
    %c0_i32_1 = arith.constant 0 : i32
    return %c0_i32, %c0_i32_0 : i32, i32
  }
  func.func @transform_13(%arg0: i32) -> (i32, i32) {
    %c0_i32 = arith.constant 0 : i32
    %c0_i32_0 = arith.constant 0 : i32
    %c0_i32_1 = arith.constant 0 : i32
    return %c0_i32, %c0_i32_0 : i32, i32
  }
  func.func @transform_14(%arg0: i32) -> (i32, i32) {
    %c0_i32 = arith.constant 0 : i32
    %c0_i32_0 = arith.constant 0 : i32
    %c0_i32_1 = arith.constant 0 : i32
    return %c0_i32, %c0_i32_0 : i32, i32
  }
  func.func @transform_15(%arg0: i32) -> (i32, i32) {
    %c0_i32 = arith.constant 0 : i32
    %c0_i32_0 = arith.constant 0 : i32
    %c0_i32_1 = arith.constant 0 : i32
    return %c0_i32, %c0_i32_0 : i32, i32
  }
  func.func @transform_16(%arg0: i32) -> (i32, i32) {
    %c0_i32 = arith.constant 0 : i32
    %c0_i32_0 = arith.constant 0 : i32
    %c0_i32_1 = arith.constant 0 : i32
    return %c0_i32, %c0_i32_0 : i32, i32
  }
  func.func @transform_17(%arg0: i32) -> (i32, i32) {
    %c0_i32 = arith.constant 0 : i32
    %c0_i32_0 = arith.constant 0 : i32
    %c0_i32_1 = arith.constant 0 : i32
    return %c0_i32, %c0_i32_0 : i32, i32
  }
  func.func @transform_18(%arg0: i32) -> (i32, i32) {
    %c0_i32 = arith.constant 0 : i32
    %c0_i32_0 = arith.constant 0 : i32
    %c0_i32_1 = arith.constant 0 : i32
    return %c0_i32, %c0_i32_0 : i32, i32
  }
  func.func @transform_19(%arg0: i32) -> (i32, i32) {
    %c0_i32 = arith.constant 0 : i32
    %c0_i32_0 = arith.constant 0 : i32
    %c0_i32_1 = arith.constant 0 : i32
    return %c0_i32, %c0_i32_0 : i32, i32
  }
  func.func @transform_20(%arg0: i32) -> (i32, i32) {
    %c0_i32 = arith.constant 0 : i32
    %c0_i32_0 = arith.constant 0 : i32
    %c0_i32_1 = arith.constant 0 : i32
    return %c0_i32, %c0_i32_0 : i32, i32
  }
  func.func @transform_21(%arg0: i32) -> (i32, i32) {
    %c0_i32 = arith.constant 0 : i32
    %c0_i32_0 = arith.constant 0 : i32
    %c0_i32_1 = arith.constant 0 : i32
    return %c0_i32, %c0_i32_0 : i32, i32
  }
  func.func @transform_22(%arg0: i32) -> (i32, i32) {
    %c0_i32 = arith.constant 0 : i32
    %c0_i32_0 = arith.constant 0 : i32
    %c0_i32_1 = arith.constant 0 : i32
    return %c0_i32, %c0_i32_0 : i32, i32
  }
  func.func @transform_23(%arg0: i32) -> (i32, i32, i32) {
    %c0_i32 = arith.constant 0 : i32
    %c0_i32_0 = arith.constant 0 : i32
    %c0_i32_1 = arith.constant 0 : i32
    return %arg0, %c0_i32, %c0_i32_0 : i32, i32, i32
  }
}

</mosaic_0001>

<bundles_post_ra>
// kernel: tpu_custom_call.1
= control target key start
LH: loop header
LB: loop body
LE: loop exit
PB: predicated region body
PF: predicated region fallthrough
CT: control target
= control target key end

     0   :  { %s8675_s0 = inlined_call_operand.vmem [shape: f32[2,64,32], index: 0, kind: input, shape index: {}]   ;;  %s8676_s1 = inlined_call_operand.vmem [shape: f32[1,32], index: 1, kind: input, shape index: {}]   ;;  %s8677_s2 = inlined_call_operand.vmem [shape: f32[1,32], index: 2, kind: input, shape index: {}]   ;;  %s8678_s3 = inlined_call_operand.vmem [shape: f32[1152,64], index: 3, kind: input, shape index: {}]   ;;  %s8679_s4 = inlined_call_operand.vmem [shape: f32[1,64], index: 4, kind: input, shape index: {}]   ;;  %s8680_s5 = inlined_call_operand.vmem [shape: f32[1,64], index: 5, kind: input, shape index: {}]   ;;  %s8681_s6 = inlined_call_operand.vmem [shape: f32[1,64], index: 6, kind: input, shape index: {}]   ;;  %s8682_s7 = inlined_call_operand.vmem [shape: f32[1152,64], index: 7, kind: input, shape index: {}]   ;;  %s8683_s8 = inlined_call_operand.vmem [shape: f32[1,64], index: 8, kind: input, shape index: {}]   ;;  %s8684_s9 = inlined_call_operand.vmem [shape: f32[32,64], index: 9, kind: input, shape index: {}]   ;;  %s8685_s10 = inlined_call_operand.vmem [shape: f32[1,64], index: 10, kind: input, shape index: {}]   ;;  %s8686_s11 = inlined_call_operand.vmem [shape: f32[64,64], index: 11, kind: input, shape index: {}]   ;;  %s8687_s12 = inlined_call_operand.vmem [shape: f32[1,64], index: 12, kind: input, shape index: {}]   ;;  %s8688_s13 = inlined_call_operand.vmem [shape: f32[64,64], index: 13, kind: input, shape index: {}]   ;;  %s8689_s14 = inlined_call_operand.vmem [shape: f32[1,64], index: 14, kind: input, shape index: {}]   ;;  %s8690_s15 = inlined_call_operand.vmem [shape: f32[64,64], index: 15, kind: input, shape index: {}]   ;;  %s8691_s16 = inlined_call_operand.vmem [shape: f32[1,64], index: 16, kind: input, shape index: {}]   ;;  %s8692_s17 = inlined_call_operand.vmem [shape: f32[64,64], index: 17, kind: input, shape index: {}]   ;;  %s8693_s18 = inlined_call_operand.vmem [shape: f32[1,64], index: 18, kind: input, shape index: {}]   ;;  %s8694_s19 = inlined_call_operand.vmem [shape: f32[32,32], index: 19, kind: input, shape index: {}]   ;;  %s8695_s20 = inlined_call_operand.vmem [shape: f32[32,32], index: 20, kind: input, shape index: {}]   ;;  %s8696_s21 = inlined_call_operand.vmem [shape: f32[64,32], index: 21, kind: input, shape index: {}]   ;;  %s8697_s22 = inlined_call_operand.vmem [shape: f32[32,64], index: 22, kind: input, shape index: {}]   ;;  %s8698_s23 = inlined_call_operand.hbm [shape: f32[2,64,64], index: 23, kind: output, shape index: {}]  }
   0x1   :  { %8718 = sst [smem:[#allocation12_spill]] %s8675_s0 }
   0x2   :  { %8719 = sst [smem:[#allocation13_spill]] %s8676_s1 }
   0x3   :  { %8720 = sst [smem:[#allocation14_spill]] %s8677_s2 }
   0x4   :  { %8721 = sst [smem:[#allocation15_spill]] %s8678_s3 }
   0x5   :  { %8722 = sst [smem:[#allocation16_spill]] %s8679_s4 }
   0x6   :  { %8723 = sst [smem:[#allocation17_spill]] %s8680_s5 }
   0x7   :  { %8724 = sst [smem:[#allocation18_spill]] %s8681_s6 }
   0x8   :  { %8725 = sst [smem:[#allocation19_spill]] %s8682_s7 }
   0x9   :  { %8726 = sst [smem:[#allocation20_spill]] %s8694_s19 }
   0xa   :  { %8727 = sst [smem:[#allocation21_spill]] %s8695_s20 }
   0xb   :  { %28 = vsyncpa [#allocation5], 0 }
   0xc   :  { %30 = vsyncpa [#allocation5 + $0x1], 0  ;;  %s6577_s4 = smov 0   ;;  %s6579_s30 = smov 0  }
   0xd   :  { %s6581_s24 = smov 0   ;;  %s6583_s25 = smov 0  }
   0xe LB: > { %8728 = sst [smem:[#allocation7_spill]] %s6437_s4  ;;  %s6598_s5 = sadd.s32 4294967295, %s6449_s25   ;;  %s6449_s25 = sphi %s6583_s25, %s8865_s25   ;;  %s6445_s24 = sphi %s6581_s24, %s8867_s24   ;;  %s6441_s30 = sphi %s6579_s30, %s8869_s30   ;;  %s6437_s4 = sphi %s6577_s4, %s8868_s4  }
   0xf   : > { %8729 = sst [smem:[#allocation8_spill]] %s6445_s24  ;;  %s4589_s1 = sadd.s32 4294967294, %s6449_s25  }
  0x10   : > { %s6602_s26 = sadd.s32 1, %s6449_s25   ;;  %s531_s2 = sadd.s32 1, %s6445_s24 }
  0x11   : > { %8730 = sst [smem:[#allocation9_spill]] %s6602_s26  ;;  %s528_s6 = ssub.s32 %s6449_s25, %s6602_s26 }
  0x12   : > { %p541_p0 = scmp.ne.s32.totalorder %s6445_s24, %s6441_s30  ;;  %p529_p1 = scmp.eq.s32.totalorder %s528_s6, 0 }
  0x13   : > { %p542_p2 = scmp.eq.s32.totalorder %s6598_s5, 1  ;;  %p547_p3 = scmp.ne.s32.totalorder %s6441_s30, %s6437_s4 }
  0x14   : > { %p548_p4 = scmp.eq.s32.totalorder %s4589_s1, 1  ;;  %p4592_p7 = scmp.ge.s32.totalorder %s6449_s25, 1 }
  0x15   : > { %s6613_s27 = scalar_select %p529_p1, %s6445_s24, %s531_s2  }
  0x16   : > { %p6615_p5 = por %p542_p2, %p541_p0  ;;  %p6619_p6 = por %p548_p4, %p547_p3 }
  0x17   : > { %8731 = sst [smem:[#allocation10_spill]] %s6613_s27  ;;  %p640_p8 = scmp.lt.s32.totalorder %s6449_s25, 3 }
  0x18   : > { %s8733_s28 = scalar_select %p6619_p6, 1, 0 }
  0x19   : > { %p641_p9 = pnand %p4592_p7, %p640_p8 }
  0x1a   : > { %8734 = sst [smem:[#allocation11_spill]] %s8733_s28  ;;  %s8735_s19 = sld [smem:[#allocation20_spill]] (!%p641_p9)  ;;  %v6451_v3 = vmov (!%p641_p9), 0.0|0.0   ;;  %vm8708_vm0 = vmmov (!%p641_p9), 0   ;;  %v6453_v6 = vmov (!%p641_p9), 0.0   ;;  %vm8706_vm1 = vcmask (!%p641_p9), 261120  }
  0x1b   : > { %644 = sbr.rel (%p641_p9) target bundleno = 2765 (0xacd), region = 112  ;;  %5748 = vmatprep.subr.bf16.mxu0 (!%p641_p9), %v6451_v3  ;;  %5428 = vmatprep.mubr.msk.f32.mxu0 (!%p641_p9), %vm8708_vm0, %v6453_v6  ;;  %1161 = vst [vmem:[#allocation2] sm:$0xff] (!%p641_p9), %v6453_v6  ;;  %1162 = vst [vmem:[#allocation2 + $0x8] sm:$0xff] (!%p641_p9), %v6453_v6  ;;  %p704_p10 = scmp.lt.s32.totalorder (!%p641_p9), %s6598_s5, 1  ;;  %v717_v58 = vlaneseq (!%p641_p9) }
  0x1c   : > { %1163 = vst [vmem:[#allocation2 + $0x10] sm:$0xff] (!%p641_p9), %v6453_v6  ;;  %1164 = vst [vmem:[#allocation2 + $0x18] sm:$0xff] (!%p641_p9), %v6453_v6  ;;  %5754 = vmatprep.subr.bf16.mxu1 (!%p641_p9), %v6451_v3  ;;  %5439 = vmatprep.mubr.msk.f32.mxu1 (!%p641_p9), %vm8708_vm0, %v6453_v6  ;;  %s8736_s0 = sld [smem:[#allocation12_spill]] (!%p641_p9)  ;;  %s8737_s20 = sld [smem:[#allocation21_spill]] (!%p641_p9) }
  0x1d   : > { %1165 = vst [vmem:[#allocation2 + $0x20] sm:$0xff] (!%p641_p9), %v6453_v6  ;;  %1166 = vst [vmem:[#allocation2 + $0x28] sm:$0xff] (!%p641_p9), %v6453_v6  ;;  %v6727_v63 = vshrl.u32 (!%p641_p9), %v717_v58, 7  ;;  %s8738_s6 = sld [smem:[#allocation15_spill]] (!%p641_p9)  ;;  %s8741_s3 = sld [smem:[#allocation13_spill]] (!%p641_p9) }
  0x1e   : > { %1167 = vst [vmem:[#allocation2 + $0x30] sm:$0xff] (!%p641_p9), %v6453_v6  ;;  %1168 = vst [vmem:[#allocation2 + $0x38] sm:$0xff] (!%p641_p9), %v6453_v6  ;;  %s8742_s26 = sld [smem:[#allocation14_spill]] (!%p641_p9)  ;;  %s8778_s4 = sld [smem:[#allocation17_spill]] (!%p641_p9) }
  0x1f   : > { %1169 = vst [vmem:[#allocation2 + $0x40] sm:$0xff] (!%p641_p9), %v6453_v6  ;;  %1170 = vst [vmem:[#allocation2 + $0x48] sm:$0xff] (!%p641_p9), %v6453_v6  ;;  %vm8707_vm2 = vcmp.eq.s32.totalorder (!%p641_p9), %v6727_v63, 0  ;;  %s8779_s2 = sld [smem:[#allocation18_spill]] (!%p641_p9) }
  0x20   : > { %v838_v0 = vld [vmem:[%s8735_s19] sm:$0xff] (!%p641_p9)  ;;  %v839_v1 = vld [vmem:[%s8735_s19 + $0x8] sm:$0xff] (!%p641_p9)  ;;  %v840_v2 = vld [vmem:[%s8735_s19 + $0x10] sm:$0xff] (!%p641_p9)  ;;  %1171 = vst [vmem:[#allocation2 + $0x50] sm:$0xff] (!%p641_p9), %v6453_v6 }
  0x21   : > { %v5749_v4 = vpack.c.bf16 (!%p641_p9), %v839_v1, %v838_v0  ;;  %v841_v5 = vld [vmem:[%s8735_s19 + $0x18] sm:$0xff] (!%p641_p9)  ;;  %1172 = vst [vmem:[#allocation2 + $0x58] sm:$0xff] (!%p641_p9), %v6453_v6  ;;  %s6454_s19 = smov (!%p641_p9), [#allocation4]  }
  0x22   : > { %v5752_v7 = vpack.c.bf16 %v841_v5, %v840_v2  ;;  %s705_s24 = scalar_select %p704_p10, %s6598_s5, 1 }
  0x23   : > { %5750 = vmatpush3.bf16.msra.mxu0 %v5749_v4 }
  0x24   : > { %5751 = vmatprep.subr.bf16.mxu0 %v6451_v3  ;;  %s4694_s27 = sshll.u32 %s705_s24, 6 }
  0x25   : > { %s6661_s1 = scalar_lea.vmem %s8736_s0, %s4694_s27 }
  0x26   : > { %v6664_v8 = vld [vmem:[%s6661_s1] sm:$0xff]  ;;  %v6667_v9 = vld [vmem:[%s6661_s1 + $0x8] sm:$0xff]  ;;  %v6670_v10 = vld [vmem:[%s6661_s1 + $0x10] sm:$0xff] }
  0x27   : > { %5753 = vmatpush3.bf16.msra.mxu0 %v5752_v7  ;;  %v6673_v11 = vld [vmem:[%s6661_s1 + $0x18] sm:$0xff]  ;;  %v849_v12 = vsel %vm8706_vm1, %v6664_v8, 0.0  ;;  %v850_v13 = vsel %vm8706_vm1, %v6667_v9, 0.0  ;;  %v852_v14 = vsel %vm8706_vm1, %v6670_v10, 0.0  ;;  %v870_v15 = vmul.f32 %v6664_v8, %v6664_v8  ;;  %v6684_v16 = vld [vmem:[%s6661_s1 + $0x20] sm:$0xff]  ;;  %v6693_v21 = vld [vmem:[%s6661_s1 + $0x28] sm:$0xff] }
  0x28   : > { %v851_v17 = vadd.f32 %v850_v13, %v849_v12  ;;  %v854_v18 = vsel %vm8706_vm1, %v6673_v11, 0.0  ;;  %v871_v19 = vmul.f32 %v6667_v9, %v6667_v9  ;;  %v872_v20 = vmul.f32 %v6670_v10, %v6670_v10  ;;  %v6704_v28 = vld [vmem:[%s6661_s1 + $0x30] sm:$0xff]  ;;  %v6713_v35 = vld [vmem:[%s6661_s1 + $0x38] sm:$0xff]  ;;  %v842_v7 = vld [vmem:[%s8737_s20] sm:$0xff] }
  0x29   : > { %v873_v23 = vmul.f32 %v6673_v11, %v6673_v11  ;;  %v856_v24 = vsel %vm8706_vm1, %v6684_v16, 0.0  ;;  %v874_v25 = vmul.f32 %v6684_v16, %v6684_v16  ;;  %v878_v26 = vsel %vm8706_vm1, %v870_v15, 0.0  ;;  %v843_v12 = vld [vmem:[%s8737_s20 + $0x8] sm:$0xff]  ;;  %v844_v13 = vld [vmem:[%s8737_s20 + $0x10] sm:$0xff]  ;;  %v845_v15 = vld [vmem:[%s8737_s20 + $0x18] sm:$0xff] }
  0x2a   : > { %v853_v22 = vadd.f32 %v852_v14, %v851_v17  ;;  %v879_v27 = vsel %vm8706_vm1, %v871_v19, 0.0  ;;  %v881_v31 = vsel %vm8706_vm1, %v872_v20, 0.0  ;;  %v858_v32 = vsel %vm8706_vm1, %v6693_v21, 0.0 }
  0x2b   : > { %v880_v30 = vadd.f32 %v879_v27, %v878_v26  ;;  %v875_v33 = vmul.f32 %v6693_v21, %v6693_v21  ;;  %v883_v34 = vsel %vm8706_vm1, %v873_v23, 0.0  ;;  %v860_v38 = vsel %vm8706_vm1, %v6704_v28, 0.0 }
  0x2c   : > { %v855_v29 = vadd.f32 %v854_v18, %v853_v22  ;;  %v876_v39 = vmul.f32 %v6704_v28, %v6704_v28  ;;  %v885_v40 = vsel %vm8706_vm1, %v874_v25, 0.0  ;;  %v862_v43 = vsel %vm8706_vm1, %v6713_v35, 0.0 }
  0x2d   : > { %v882_v37 = vadd.f32 %v881_v31, %v880_v30  ;;  %v877_v44 = vmul.f32 %v6713_v35, %v6713_v35  ;;  %v887_v45 = vsel %vm8706_vm1, %v875_v33, 0.0  ;;  %v5755_v14 = vpack.c.bf16 %v843_v12, %v842_v7  ;;  %v1493_v33 = vld [vmem:[%s8738_s6 + $0x80] sm:$0xff]  ;;  %v1484_v7 = vld [vmem:[%s8738_s6 + $0x38] sm:$0xff] }
  0x2e   : > { %v857_v36 = vadd.f32 %v856_v24, %v855_v29  ;;  %v889_v48 = vsel %vm8706_vm1, %v876_v39, 0.0  ;;  %v5758_v17 = vpack.c.bf16 %v845_v15, %v844_v13  ;;  %v6748_v26 = vsub.s32 0, %v6727_v63  ;;  %v1529_v12 = vld [vmem:[%s8738_s6 + $0x1a0] sm:$0xff] }
  0x2f   : > { %v884_v42 = vadd.f32 %v883_v34, %v882_v37  ;;  %v891_v51 = vsel %vm8706_vm1, %v877_v44, 0.0  ;;  %5756 = vmatpush3.bf16.msra.mxu1 %v5755_v14  ;;  %v6751_v27 = vsub.s32 1, %v6727_v63  ;;  %v1494_v34 = vld [vmem:[%s8738_s6 + $0x88] sm:$0xff]  ;;  %v1477_v37 = vld [vmem:[%s8738_s6] sm:$0xff]  ;;  %v1480_v44 = vld [vmem:[%s8738_s6 + $0x18] sm:$0xff] }
  0x30   : > { %v859_v41 = vadd.f32 %v858_v32, %v857_v36  ;;  %5757 = vmatprep.subr.bf16.mxu1 %v6451_v3  ;;  %v5760_v36 = vpack.c.bf16 %v1494_v34, %v1493_v33  ;;  %v1530_v14 = vld [vmem:[%s8738_s6 + $0x1a8] sm:$0xff]  ;;  %v1513_v15 = vld [vmem:[%s8738_s6 + $0x120] sm:$0xff]  ;;  %v1516_v33 = vld [vmem:[%s8738_s6 + $0x138] sm:$0xff] }
  0x31   : > { %v886_v47 = vadd.f32 %v885_v40, %v884_v42  ;;  %v1495_v40 = vld [vmem:[%s8738_s6 + $0x90] sm:$0xff] }
  0x32   : > { %v861_v46 = vadd.f32 %v860_v38, %v859_v41  ;;  %v1478_v38 = vld [vmem:[%s8738_s6 + $0x8] sm:$0xff]  ;;  %5761 = vmatprep.subr.bf16.mxu0 %v5760_v36  ;;  %v1496_v41 = vld [vmem:[%s8738_s6 + $0x98] sm:$0xff] }
  0x33   : > { %v888_v50 = vadd.f32 %v887_v45, %v886_v47  ;;  %5759 = vmatpush3.bf16.msra.mxu1 %v5758_v17  ;;  %v5762_v39 = vpack.c.bf16 %v1478_v38, %v1477_v37  ;;  %v5764_v42 = vpack.c.bf16 %v1496_v41, %v1495_v40  ;;  %v1525_v45 = vld [vmem:[%s8738_s6 + $0x180] sm:$0xff]  ;;  %v1526_v47 = vld [vmem:[%s8738_s6 + $0x188] sm:$0xff]  ;;  %v1503_v37 = vld [vmem:[%s8738_s6 + $0xd0] sm:$0xff] }
  0x34   : > { %v863_v49 = vadd.f32 %v862_v43, %v861_v46  ;;  %v1479_v43 = vld [vmem:[%s8738_s6 + $0x10] sm:$0xff]  ;;  %v1514_v17 = vld [vmem:[%s8738_s6 + $0x128] sm:$0xff]  ;;  %v1504_v38 = vld [vmem:[%s8738_s6 + $0xd8] sm:$0xff] }
  0x35   : > { %v890_v53 = vadd.f32 %v889_v48, %v888_v50  ;;  %v5766_v46 = vpack.c.bf16 %v1480_v44, %v1479_v43  ;;  %v1509_v48 = vld [vmem:[%s8738_s6 + $0x100] sm:$0xff]  ;;  %v5792_v50 = vpack.c.bf16 %v1526_v47, %v1525_v45  ;;  %v1487_v40 = vld [vmem:[%s8738_s6 + $0x50] sm:$0xff]  ;;  %v1488_v41 = vld [vmem:[%s8738_s6 + $0x58] sm:$0xff] }
  0x36   : > { %v864_v52 = vrot.slane %v863_v49, 4  ;;  %v5782_v43 = vpack.c.bf16 %v1488_v41, %v1487_v40  ;;  %v1534_v44 = vld [vmem:[%s8738_s6 + $0x1c8] sm:$0xff]  ;;  %v1517_v45 = vld [vmem:[%s8738_s6 + $0x140] sm:$0xff]  ;;  %v1544_v41 = vld [vmem:[%s8738_s6 + $0x218] sm:$0xff] }
  0x37   : > { %v892_v55 = vadd.f32 %v891_v51, %v890_v53  ;;  %v1498_v53 = vld [vmem:[%s8738_s6 + $0xa8] sm:$0xff]  ;;  %5793 = vmatprep.subr.bf16.mxu1 %v5792_v50 }
  0x38   : > { %v865_v54 = vadd.f32 %v864_v52, %v863_v49  ;;  %v1510_v49 = vld [vmem:[%s8738_s6 + $0x108] sm:$0xff]  ;;  %v1497_v52 = vld [vmem:[%s8738_s6 + $0xa0] sm:$0xff] }
  0x39   : > { %v893_v57 = vrot.slane %v892_v55, 4  ;;  %v5794_v51 = vpack.c.bf16 %v1510_v49, %v1509_v48  ;;  %v1505_v49 = vld [vmem:[%s8738_s6 + $0xe0] sm:$0xff]  ;;  %v1506_v50 = vld [vmem:[%s8738_s6 + $0xe8] sm:$0xff] }
  0x3a   : > { %v866_v56 = vrot.slane %v865_v54, 2 }
  0x3b   : > { %v894_v60 = vadd.f32 %v893_v57, %v892_v55  ;;  %v1481_v55 = vld [vmem:[%s8738_s6 + $0x20] sm:$0xff]  ;;  %v1527_v57 = vld [vmem:[%s8738_s6 + $0x190] sm:$0xff] }
  0x3c   : > { %v867_v59 = vadd.f32 %v866_v56, %v865_v54  ;;  %v5768_v54 = vpack.c.bf16 %v1498_v53, %v1497_v52  ;;  %v1482_v56 = vld [vmem:[%s8738_s6 + $0x28] sm:$0xff]  ;;  %v1489_v52 = vld [vmem:[%s8738_s6 + $0x60] sm:$0xff] }
  0x3d   : > { %v895_v62 = vrot.slane %v894_v60, 2  ;;  %v5770_v58 = vpack.c.bf16 %v1482_v56, %v1481_v55  ;;  %v1490_v53 = vld [vmem:[%s8738_s6 + $0x68] sm:$0xff]  ;;  %v1536_v56 = vld [vmem:[%s8738_s6 + $0x1d8] sm:$0xff] }
  0x3e   : > { %v868_v61 = vrot.slane %v867_v59, 1  ;;  %v5786_v55 = vpack.c.bf16 %v1490_v53, %v1489_v52  ;;  %v1564_v52 = vld [vmem:[%s8738_s6 + $0x2b8] sm:$0xff] }
  0x3f   : > { %v896_v0 = vadd.f32 %v895_v62, %v894_v60  ;;  %v1511_v60 = vld [vmem:[%s8738_s6 + $0x110] sm:$0xff] }
  0x40   : > { %v869_v1 = vadd.f32 %v868_v61, %v867_v59  ;;  %v1528_v59 = vld [vmem:[%s8738_s6 + $0x198] sm:$0xff] }
  0x41   : > { %v897_v2 = vrot.slane %v896_v0, 1  ;;  %v1512_v61 = vld [vmem:[%s8738_s6 + $0x118] sm:$0xff]  ;;  %v5796_v62 = vpack.c.bf16 %v1528_v59, %v1527_v57  ;;  %v1519_v57 = vld [vmem:[%s8738_s6 + $0x150] sm:$0xff] }
  0x43   : > { %v898_v4 = vadd.f32 %v897_v2, %v896_v0  ;;  %v5798_v0 = vpack.c.bf16 %v1512_v61, %v1511_v60  ;;  %v1500_v2 = vld [vmem:[%s8738_s6 + $0xb8] sm:$0xff]  ;;  %v1507_v61 = vld [vmem:[%s8738_s6 + $0xf0] sm:$0xff] }
  0x45   : > { %v902_v5 = vsel %vm8707_vm2, %v869_v1, %v898_v4  ;;  %v1499_v1 = vld [vmem:[%s8738_s6 + $0xb0] sm:$0xff] }
  0x46   : > { %5429 = vmatmul.mubr.msk.f32.vlgmr.msra.gmra.mrb[0].mxu0 %vm8706_vm1, %v902_v5  ;;  %v5772_v4 = vpack.c.bf16 %v1500_v2, %v1499_v1  ;;  %v1483_v5 = vld [vmem:[%s8738_s6 + $0x30] sm:$0xff]  ;;  %v1492_v2 = vld [vmem:[%s8738_s6 + $0x78] sm:$0xff] }
  0x47   : > { %1691 = vmatprep.mubr.f32.mxu0 %v6453_v6  ;;  %5763 = vmatpush3.bf16.msra.mxu0 %v5762_v39  ;;  %v5774_v13 = vpack.c.bf16 %v1484_v7, %v1483_v5  ;;  %v5780_v39 = vpack.c.bf16 %v1504_v38, %v1503_v37  ;;  %v1491_v1 = vld [vmem:[%s8738_s6 + $0x70] sm:$0xff]  ;;  %v1538_v7 = vld [vmem:[%s8738_s6 + $0x1e8] sm:$0xff]  ;;  %v1560_v38 = vld [vmem:[%s8738_s6 + $0x298] sm:$0xff] }
  0x48   : > { %5765 = vmatprep.subr.bf16.mxu0 %v5764_v42  ;;  %v1533_v42 = vld [vmem:[%s8738_s6 + $0x1c0] sm:$0xff]  ;;  %v5790_v5 = vpack.c.bf16 %v1492_v2, %v1491_v1  ;;  %v1559_v37 = vld [vmem:[%s8738_s6 + $0x290] sm:$0xff]  ;;  %v1568_v1 = vld [vmem:[%s8738_s6 + $0x2d8] sm:$0xff] }
  0x49   : > { %v5808_v47 = vpack.c.bf16 %v1534_v44, %v1533_v42  ;;  %v5828_v40 = vpack.c.bf16 %v1560_v38, %v1559_v37  ;;  %v1589_v42 = vld [vmem:[%s8738_s6 + $0x380] sm:$0xff] }
  0x4a   : > { %v4598_v37 = vld [vmem:[%s8741_s3] ss:$0 sm:$0xff]  ;;  %s8774_s3 = sld [smem:[#allocation16_spill]] }
  0x4b   : > { %5767 = vmatpush3.bf16.msra.mxu0 %v5766_v46  ;;  %v1518_v46 = vld [vmem:[%s8738_s6 + $0x148] sm:$0xff] }
  0x4c   : > { %5769 = vmatprep.subr.bf16.mxu0 %v5768_v54  ;;  %v5810_v48 = vpack.c.bf16 %v1518_v46, %v1517_v45  ;;  %v1535_v54 = vld [vmem:[%s8738_s6 + $0x1d0] sm:$0xff]  ;;  %v1561_v46 = vld [vmem:[%s8738_s6 + $0x2a0] sm:$0xff] }
  0x4d   : > { %v5812_v59 = vpack.c.bf16 %v1536_v56, %v1535_v54  ;;  %v1548_v56 = vld [vmem:[%s8738_s6 + $0x238] sm:$0xff] }
  0x4f   : > { %5771 = vmatpush3.bf16.msra.mxu0 %v5770_v58  ;;  %v1520_v58 = vld [vmem:[%s8738_s6 + $0x158] sm:$0xff] }
  0x50   : > { %5773 = vmatprep.subr.bf16.mxu0 %v5772_v4  ;;  %v5814_v60 = vpack.c.bf16 %v1520_v58, %v1519_v57  ;;  %v1537_v4 = vld [vmem:[%s8738_s6 + $0x1e0] sm:$0xff]  ;;  %v1566_v58 = vld [vmem:[%s8738_s6 + $0x2c8] sm:$0xff] }
  0x51   : > { %v1565_v57 = vld [vmem:[%s8738_s6 + $0x2c0] sm:$0xff] }
  0x53   : > { %5775 = vmatpush3.bf16.msra.mxu0 %v5774_v13  ;;  %v1522_v13 = vld [vmem:[%s8738_s6 + $0x168] sm:$0xff] }
 0x119   : > { %v972_v18 = vpop.f32.mrb[0].mxu0 }
 0x11a   : > { %v976_v19 = vmul.f32 0.015625, %v972_v18  ;;  %v5430_v20 = vpop.f32.mrb[1].mxu0  ;;  %v5800_v18 = vpack.c.bf16 %v1530_v14, %v1529_v12  ;;  %v1521_v12 = vld [vmem:[%s8738_s6 + $0x160] sm:$0xff]  ;;  %v5816_v14 = vpack.c.bf16 %v1538_v7, %v1537_v4  ;;  %v1552_v7 = vld [vmem:[%s8738_s6 + $0x258] sm:$0xff] }
 0x11b   : > { %v1501_v20 = vld [vmem:[%s8738_s6 + $0xc0] sm:$0xff] }
 0x11c   : > { %v977_v22 = vmul.f32 %v976_v19, %v976_v19  ;;  %v987_v30 = vrot.slane %v976_v19, %v6748_v26 }
 0x11e   : > { %v979_v23 = vrot.slane %v977_v22, 7  ;;  %v1502_v22 = vld [vmem:[%s8738_s6 + $0xc8] sm:$0xff] }
 0x120   : > { %v981_v24 = vsub.f32 %v976_v19, %v979_v23  ;;  %v5802_v19 = vpack.c.bf16 %v1514_v17, %v1513_v15  ;;  %v5776_v23 = vpack.c.bf16 %v1502_v22, %v1501_v20  ;;  %v5818_v15 = vpack.c.bf16 %v1522_v13, %v1521_v12  ;;  %v1558_v20 = vld [vmem:[%s8738_s6 + $0x288] sm:$0xff]  ;;  %v1569_v12 = vld [vmem:[%s8738_s6 + $0x2e0] sm:$0xff] }
 0x121   : > { %v730_v17 = vand.u32 7, %v6727_v63  ;;  %v1570_v13 = vld [vmem:[%s8738_s6 + $0x2e8] sm:$0xff] }
 0x122   : > { %v982_v25 = vadd.f32 1e-05, %v981_v24  ;;  %v1485_v24 = vld [vmem:[%s8738_s6 + $0x40] sm:$0xff]  ;;  %5777 = vmatprep.subr.bf16.mxu0 %v5776_v23  ;;  %v1539_v23 = vld [vmem:[%s8738_s6 + $0x1f0] sm:$0xff] }
 0x123   : > { %vm6957_vm3 = vcmp.ge.s32.totalorder %v730_v17, 1  ;;  %vm7126_vm5 = vcmp.lt.s32.totalorder %v730_v17, 7 }
 0x124   : > { %6278 = vrsqrt.f32 %v982_v25  ;;  %v1486_v25 = vld [vmem:[%s8738_s6 + $0x48] sm:$0xff] }
 0x12e   : > { %v6279_v29 = vpop.eup %6278 }
 0x12f   : > { %v991_v31 = vrot.slane %v6279_v29, %v6751_v27  ;;  %v1531_v29 = vld [vmem:[%s8738_s6 + $0x1b0] sm:$0xff] }
 0x131   : > { %v992_v32 = vsel %vm8707_vm2, %v987_v30, %v991_v31  ;;  %v5778_v30 = vpack.c.bf16 %v1486_v25, %v1485_v24  ;;  %v1532_v31 = vld [vmem:[%s8738_s6 + $0x1b8] sm:$0xff]  ;;  %v1541_v25 = vld [vmem:[%s8738_s6 + $0x200] sm:$0xff] }
 0x132   : > { %5440 = vmatmul.mubr.msk.f32.vlgmr.msra.gmra.mrb[0].mxu1 %vm8706_vm1, %v992_v32  ;;  %v1515_v32 = vld [vmem:[%s8738_s6 + $0x130] sm:$0xff]  ;;  %v5804_v34 = vpack.c.bf16 %v1532_v31, %v1531_v29  ;;  %v1540_v24 = vld [vmem:[%s8738_s6 + $0x1f8] sm:$0xff]  ;;  %v1542_v31 = vld [vmem:[%s8738_s6 + $0x208] sm:$0xff] }
 0x133   : > { %5795 = vmatpush3.bf16.msra.mxu1 %v5794_v51  ;;  %v5806_v36 = vpack.c.bf16 %v1516_v33, %v1515_v32  ;;  %5779 = vmatpush3.bf16.msra.mxu0 %v5778_v30  ;;  %v5784_v51 = vpack.c.bf16 %v1506_v50, %v1505_v49  ;;  %v5820_v30 = vpack.c.bf16 %v1540_v24, %v1539_v23  ;;  %v1523_v32 = vld [vmem:[%s8738_s6 + $0x170] sm:$0xff]  ;;  %v1524_v33 = vld [vmem:[%s8738_s6 + $0x178] sm:$0xff]  ;;  %v1546_v49 = vld [vmem:[%s8738_s6 + $0x228] sm:$0xff] }
 0x134   : > { %5797 = vmatprep.subr.bf16.mxu1 %v5796_v62  ;;  %5781 = vmatprep.subr.bf16.mxu0 %v5780_v39  ;;  %v1508_v62 = vld [vmem:[%s8738_s6 + $0xf8] sm:$0xff]  ;;  %v1543_v39 = vld [vmem:[%s8738_s6 + $0x210] sm:$0xff] }
 0x135   : > { %v5830_v44 = vpack.c.bf16 %v1544_v41, %v1543_v39 }
 0x137   : > { %5799 = vmatpush3.bf16.msra.mxu1 %v5798_v0  ;;  %5783 = vmatpush3.bf16.msra.mxu0 %v5782_v43  ;;  %v5788_v0 = vpack.c.bf16 %v1508_v62, %v1507_v61  ;;  %v1590_v43 = vld [vmem:[%s8738_s6 + $0x388] sm:$0xff]  ;;  %v1549_v61 = vld [vmem:[%s8738_s6 + $0x240] sm:$0xff] }
 0x138   : > { %5801 = vmatprep.subr.bf16.mxu1 %v5800_v18  ;;  %5785 = vmatprep.subr.bf16.mxu0 %v5784_v51  ;;  %v1181_v18 = vld [vmem:[#allocation2 + $0x7] sm:$0xff]  ;;  %v5856_v45 = vpack.c.bf16 %v1590_v43, %v1589_v42  ;;  %v1563_v51 = vld [vmem:[%s8738_s6 + $0x2b0] sm:$0xff]  ;;  %v847_v42 = vld [vmem:[%s8742_s26] sm:$0x1] }
 0x139   : > { %2476 = vst [vmem:[#allocation2] sm:$0xff] %v6453_v6  ;;  %v5836_v54 = vpack.c.bf16 %v1564_v52, %v1563_v51  ;;  %v1550_v62 = vld [vmem:[%s8738_s6 + $0x248] sm:$0xff] }
 0x13a   : > { %v5842_v2 = vpack.c.bf16 %v1550_v62, %v1549_v61 }
 0x13b   : > { %5803 = vmatpush3.bf16.msra.mxu1 %v5802_v19  ;;  %5787 = vmatpush3.bf16.msra.mxu0 %v5786_v55  ;;  %v1557_v19 = vld [vmem:[%s8738_s6 + $0x280] sm:$0xff]  ;;  %v1547_v55 = vld [vmem:[%s8738_s6 + $0x230] sm:$0xff] }
 0x13c   : > { %5805 = vmatprep.subr.bf16.mxu1 %v5804_v34  ;;  %5789 = vmatprep.subr.bf16.mxu0 %v5788_v0  ;;  %v5824_v22 = vpack.c.bf16 %v1558_v20, %v1557_v19  ;;  %v5826_v34 = vpack.c.bf16 %v1542_v31, %v1541_v25  ;;  %v1567_v0 = vld [vmem:[%s8738_s6 + $0x2d0] sm:$0xff]  ;;  %v1554_v19 = vld [vmem:[%s8738_s6 + $0x268] sm:$0xff]  ;;  %v1605_v31 = vld [vmem:[%s8738_s6 + $0x400] sm:$0xff] }
 0x13d   : > { %v5844_v4 = vpack.c.bf16 %v1568_v1, %v1567_v0  ;;  %v1571_v20 = vld [vmem:[%s8738_s6 + $0x2f0] sm:$0xff] }
 0x13e   : > { %v1555_v25 = vld [vmem:[%s8738_s6 + $0x270] sm:$0xff] }
 0x13f   : > { %5807 = vmatpush3.bf16.msra.mxu1 %v5806_v36  ;;  %5791 = vmatpush3.bf16.msra.mxu0 %v5790_v5  ;;  %v5822_v36 = vpack.c.bf16 %v1524_v33, %v1523_v32  ;;  %v1551_v5 = vld [vmem:[%s8738_s6 + $0x250] sm:$0xff]  ;;  %v1606_v32 = vld [vmem:[%s8738_s6 + $0x408] sm:$0xff] }
 0x140   : > { %5809 = vmatprep.subr.bf16.mxu1 %v5808_v47  ;;  %5825 = vmatprep.subr.bf16.mxu0 %v5824_v22  ;;  %v1562_v47 = vld [vmem:[%s8738_s6 + $0x2a8] sm:$0xff]  ;;  %v1572_v22 = vld [vmem:[%s8738_s6 + $0x2f8] sm:$0xff] }
 0x141   : > { %v5832_v50 = vpack.c.bf16 %v1562_v47, %v1561_v46  ;;  %v5852_v24 = vpack.c.bf16 %v1572_v22, %v1571_v20 }
 0x142   : > { %4696 = vmatmul.mubr.msk.f32.vlgmr.msra.gmra.mrb[2].mxu0 %vm6957_vm3, %v1181_v18  ;;  %v1553_v18 = vld [vmem:[%s8738_s6 + $0x260] sm:$0xff] }
 0x143   : > { %5811 = vmatpush3.bf16.msra.mxu1 %v5810_v48  ;;  %5827 = vmatpush3.bf16.msra.mxu0 %v5826_v34  ;;  %v1545_v48 = vld [vmem:[%s8738_s6 + $0x220] sm:$0xff]  ;;  %v5850_v23 = vpack.c.bf16 %v1554_v19, %v1553_v18  ;;  %v7068_v34 = vpack.c.bf16 %v1606_v32, %v1605_v31  ;;  %v719_v32 = vadd.s32 8, %v6727_v63 }
 0x144   : > { %5813 = vmatprep.subr.bf16.mxu1 %v5812_v59  ;;  %5829 = vmatprep.subr.bf16.mxu0 %v5828_v40  ;;  %v5834_v53 = vpack.c.bf16 %v1546_v49, %v1545_v48  ;;  %v5838_v59 = vpack.c.bf16 %v1548_v56, %v1547_v55 }
 0x147   : > { %5815 = vmatpush3.bf16.msra.mxu1 %v5814_v60  ;;  %5831 = vmatpush3.bf16.msra.mxu0 %v5830_v44  ;;  %v5840_v60 = vpack.c.bf16 %v1566_v58, %v1565_v57 }
 0x148   : > { %5817 = vmatprep.subr.bf16.mxu1 %v5816_v14  ;;  %5833 = vmatprep.subr.bf16.mxu0 %v5832_v50  ;;  %v5846_v14 = vpack.c.bf16 %v1552_v7, %v1551_v5 }
 0x14b   : > { %5819 = vmatpush3.bf16.msra.mxu1 %v5818_v15  ;;  %5835 = vmatpush3.bf16.msra.mxu0 %v5834_v53  ;;  %v5848_v15 = vpack.c.bf16 %v1570_v13, %v1569_v12 }
 0x14c   : > { %5821 = vmatprep.subr.bf16.mxu1 %v5820_v30  ;;  %5837 = vmatprep.subr.bf16.mxu0 %v5836_v54  ;;  %v1556_v30 = vld [vmem:[%s8738_s6 + $0x278] sm:$0xff] }
 0x14d   : > { %v5854_v33 = vpack.c.bf16 %v1556_v30, %v1555_v25 }
 0x14f   : > { %5823 = vmatpush3.bf16.msra.mxu1 %v5822_v36  ;;  %5839 = vmatpush3.bf16.msra.mxu0 %v5838_v59  ;;  %v7071_v36 = vld [vmem:[#allocation2 + $0x51] sm:$0xff] }
 0x150   : > { %5857 = vmatprep.subr.bf16.mxu1 %v5856_v45  ;;  %5841 = vmatprep.subr.bf16.mxu0 %v5840_v60  ;;  %2487 = vst [vmem:[#allocation2 + $0x58] sm:$0xff] %v6453_v6 }
 0x153   : > { %5843 = vmatpush3.bf16.msra.mxu0 %v5842_v2 }
 0x154   : > { %5845 = vmatprep.subr.bf16.mxu0 %v5844_v4 }
 0x157   : > { %5847 = vmatpush3.bf16.msra.mxu0 %v5846_v14 }
 0x158   : > { %5849 = vmatprep.subr.bf16.mxu0 %v5848_v15 }
 0x15b   : > { %5851 = vmatpush3.bf16.msra.mxu0 %v5850_v23 }
 0x15c   : > { %5853 = vmatprep.subr.bf16.mxu0 %v5852_v24 }
 0x15f   : > { %5855 = vmatpush3.bf16.msra.mxu0 %v5854_v33 }
 0x160   : > { %5889 = vmatprep.subr.bf16.mxu0 %v7068_v34 }
 0x205   : > { %v1062_v38 = vpop.f32.mrb[0].mxu1 }
 0x206   : > { %v1072_v39 = vmul.f32 %v4598_v37, %v1062_v38  ;;  %v5441_v40 = vpop.f32.mrb[1].mxu1 }
 0x208   : > { %v1074_v41 = vrot.slane %v1072_v39, 1  ;;  %v1081_v43 = vrot.slane %v1072_v39, %v6751_v27 }
 0x20a   : > { %v1076_v44 = vmul.f32 %v1074_v41, %v1062_v38  ;;  %v1082_v46 = vmul.f32 %v1081_v43, %v6664_v8  ;;  %v1083_v47 = vmul.f32 %v1081_v43, %v6667_v9  ;;  %v1084_v48 = vmul.f32 %v1081_v43, %v6670_v10 }
 0x20b   : > { %v1085_v49 = vmul.f32 %v1081_v43, %v6673_v11  ;;  %v1086_v51 = vmul.f32 %v1081_v43, %v6684_v16  ;;  %v1087_v52 = vmul.f32 %v1081_v43, %v6693_v21  ;;  %v1088_v53 = vmul.f32 %v1081_v43, %v6704_v28 }
 0x20c   : > { %v1077_v45 = vsub.f32 %v847_v42, %v1076_v44  ;;  %v1089_v8 = vmul.f32 %v1081_v43, %v6713_v35  ;;  %v737_v43 = vand.u32 7, %v719_v32  ;;  %v7100_v44 = vadd.s32 16, %v6727_v63 }
 0x20e   : > { %v1094_v50 = vrot.slane %v1077_v45, %v6748_v26  ;;  %vm7120_vm4 = vcmp.ge.s32.totalorder %v737_v43, 1  ;;  %vm7168_vm6 = vcmp.lt.s32.totalorder %v737_v43, 7 }
 0x210   : > { %v1096_v54 = vadd.f32 %v1094_v50, %v1082_v46  ;;  %v1097_v55 = vadd.f32 %v1094_v50, %v1083_v47  ;;  %v1098_v56 = vadd.f32 %v1094_v50, %v1084_v48  ;;  %v1099_v57 = vadd.f32 %v1094_v50, %v1085_v49  ;;  %v1573_v49 = vld [vmem:[%s8738_s6 + $0x300] sm:$0xff] }
 0x211   : > { %v1100_v58 = vadd.f32 %v1094_v50, %v1086_v51  ;;  %v1101_v9 = vadd.f32 %v1094_v50, %v1087_v52  ;;  %v7090_v59 = vadd.f32 %v1094_v50, %v1088_v53  ;;  %v7092_v61 = vadd.f32 %v1094_v50, %v1089_v8  ;;  %v1574_v50 = vld [vmem:[%s8738_s6 + $0x308] sm:$0xff]  ;;  %v1591_v53 = vld [vmem:[%s8738_s6 + $0x390] sm:$0xff] }
 0x212   : > { %v4599_v10 = vmul.f32 -1.442695, %v1096_v54  ;;  %v4600_v11 = vmul.f32 -1.442695, %v1097_v55  ;;  %v4601_v60 = vmul.f32 -1.442695, %v1098_v56 }
 0x213   : > { %v4602_v16 = vmul.f32 -1.442695, %v1099_v57  ;;  %v4603_v21 = vmul.f32 -1.442695, %v1100_v58  ;;  %v4604_v28 = vmul.f32 -1.442695, %v1101_v9 }
 0x214   : > { %6280 = vpow2.f32 %v4599_v10  ;;  %v4605_v62 = vmul.f32 -1.442695, %v7090_v59  ;;  %v4606_v35 = vmul.f32 -1.442695, %v7092_v61  ;;  %v7134_v8 = vld [vmem:[%s8738_s6 + $0x310] sm:$0xff] }
 0x215   : > { %6282 = vpow2.f32 %v4600_v11  ;;  %v5858_v11 = vpack.c.bf16 %v1574_v50, %v1573_v49 }
 0x216   : > { %6284 = vpow2.f32 %v4601_v60  ;;  %v1593_v60 = vld [vmem:[%s8738_s6 + $0x3a0] sm:$0xff] }
 0x217   : > { %6286 = vpow2.f32 %v4602_v16 }
 0x218   : > { %6288 = vpow2.f32 %v4603_v21 }
 0x219   : > { %6290 = vpow2.f32 %v4604_v28  ;;  %v1594_v28 = vld [vmem:[%s8738_s6 + $0x3a8] sm:$0xff] }
 0x21a   : > { %6292 = vpow2.f32 %v4605_v62 }
 0x21b   : > { %6294 = vpow2.f32 %v4606_v35  ;;  %v6379_v35 = vld [vmem:[%s6661_s1] sm:$0xff] }
 0x21e   : > { %v6281_v0 = vpop.eup %6280 }
 0x21f   : > { %v6283_v1 = vpop.eup %6282  ;;  %v1128_v2 = vadd.f32 1.0, %v6281_v0 }
 0x220   : > { %v6285_v4 = vpop.eup %6284  ;;  %v1129_v5 = vadd.f32 1.0, %v6283_v1 }
 0x221   : > { %v6287_v7 = vpop.eup %6286  ;;  %v1130_v12 = vadd.f32 1.0, %v6285_v4  ;;  %6296 = vrcp.f32 %v1128_v2 }
 0x222   : > { %v6289_v13 = vpop.eup %6288  ;;  %v1131_v14 = vadd.f32 1.0, %v6287_v7  ;;  %6298 = vrcp.f32 %v1129_v5 }
 0x223   : > { %v6291_v15 = vpop.eup %6290  ;;  %v1132_v18 = vadd.f32 1.0, %v6289_v13  ;;  %6300 = vrcp.f32 %v1130_v12  ;;  %v1577_v12 = vld [vmem:[%s8738_s6 + $0x320] sm:$0xff]  ;;  %v1578_v13 = vld [vmem:[%s8738_s6 + $0x328] sm:$0xff] }
 0x224   : > { %v6293_v19 = vpop.eup %6292  ;;  %v1133_v20 = vadd.f32 1.0, %v6291_v15  ;;  %6302 = vrcp.f32 %v1131_v14  ;;  %v7197_v14 = vadd.s32 32, %v6727_v63 }
 0x225   : > { %v6295_v22 = vpop.eup %6294  ;;  %v1134_v23 = vadd.f32 1.0, %v6293_v19  ;;  %6304 = vrcp.f32 %v1132_v18 }
 0x226   : > { %v1135_v24 = vadd.f32 1.0, %v6295_v22  ;;  %6306 = vrcp.f32 %v1133_v20  ;;  %v1595_v20 = vld [vmem:[%s8738_s6 + $0x3b0] sm:$0xff]  ;;  %v1596_v22 = vld [vmem:[%s8738_s6 + $0x3b8] sm:$0xff] }
 0x227   : > { %6308 = vrcp.f32 %v1134_v23  ;;  %v5868_v50 = vpack.c.bf16 %v1596_v22, %v1595_v20  ;;  %v1583_v22 = vld [vmem:[%s8738_s6 + $0x350] sm:$0xff] }
 0x228   : > { %6310 = vrcp.f32 %v1135_v24 }
 0x22b   : > { %v6297_v25 = vpop.eup %6296 }
 0x22c   : > { %v6299_v30 = vpop.eup %6298  ;;  %v1152_v31 = vmul.f32 %v6297_v25, %v1096_v54  ;;  %v1592_v54 = vld [vmem:[%s8738_s6 + $0x398] sm:$0xff]  ;;  %v5864_v25 = vpack.c.bf16 %v1594_v28, %v1593_v60  ;;  %v1582_v60 = vld [vmem:[%s8738_s6 + $0x348] sm:$0xff] }
 0x22d   : > { %v6301_v33 = vpop.eup %6300  ;;  %v1153_v37 = vmul.f32 %v6299_v30, %v1097_v55  ;;  %v5860_v21 = vpack.c.bf16 %v1592_v54, %v1591_v53  ;;  %v1597_v53 = vld [vmem:[%s8738_s6 + $0x3c0] sm:$0xff]  ;;  %v1598_v54 = vld [vmem:[%s8738_s6 + $0x3c8] sm:$0xff]  ;;  %v1600_v28 = vld [vmem:[%s8738_s6 + $0x3d8] sm:$0xff] }
 0x22e   : > { %v6303_v38 = vpop.eup %6302  ;;  %1173 = vst.msk [vmem:[#allocation2 + $0x10] sm:$0xff] %vm8706_vm1, %v1152_v31  ;;  %v1154_v39 = vmul.f32 %v6301_v33, %v1098_v56  ;;  %v6380_v33 = vld [vmem:[%s6661_s1 + $0x8] sm:$0xff] }
 0x22f   : > { %v6305_v40 = vpop.eup %6304  ;;  %1174 = vst.msk [vmem:[#allocation2 + $0x18] sm:$0xff] %vm8706_vm1, %v1153_v37  ;;  %v1155_v41 = vmul.f32 %v6303_v38, %v1099_v57  ;;  %v744_v57 = vand.u32 7, %v7100_v44 }
 0x230   : > { %v6307_v42 = vpop.eup %6306  ;;  %1175 = vst.msk [vmem:[#allocation2 + $0x20] sm:$0xff] %vm8706_vm1, %v1154_v39  ;;  %v1156_v45 = vmul.f32 %v6305_v40, %v1100_v58  ;;  %v7139_v58 = vld [vmem:[%s8738_s6 + $0x318] sm:$0xff] }
 0x231   : > { %v6309_v46 = vpop.eup %6308  ;;  %1176 = vst.msk [vmem:[#allocation2 + $0x28] sm:$0xff] %vm8706_vm1, %v1155_v41  ;;  %v1157_v47 = vmul.f32 %v6307_v42, %v1101_v9  ;;  %v7142_v9 = vadd.s32 24, %v6727_v63  ;;  %vm7181_vm7 = vcmp.ge.s32.totalorder %v744_v57, 1  ;;  %v5862_v18 = vpack.c.bf16 %v7139_v58, %v7134_v8  ;;  %v6381_v8 = vld [vmem:[%s6661_s1 + $0x10] sm:$0xff] }
 0x232   : > { %v6311_v48 = vpop.eup %6310  ;;  %1177 = vst.msk [vmem:[#allocation2 + $0x30] sm:$0xff] %vm8706_vm1, %v1156_v45  ;;  %v1158_v51 = vmul.f32 %v6309_v46, %v7090_v59  ;;  %vm7230_vm8 = vcmp.lt.s32.totalorder %v744_v57, 7  ;;  %v758_v41 = vand.u32 7, %v7197_v14  ;;  %v723_v42 = vadd.s32 40, %v6727_v63  ;;  %v3436_v57 = vld [vmem:[%s8684_s9 + $0x8] sm:$0xff] }
 0x233   : > { %v1159_v52 = vmul.f32 %v6311_v48, %v7092_v61  ;;  %1178 = vst.msk [vmem:[#allocation2 + $0x38] sm:$0xff] %vm8706_vm1, %v1157_v47  ;;  %v751_v5 = vand.u32 7, %v7142_v9  ;;  %v5866_v46 = vpack.c.bf16 %v1578_v13, %v1577_v12  ;;  %v724_v9 = vadd.s32 48, %v6727_v63  ;;  %v6382_v12 = vld [vmem:[%s6661_s1 + $0x18] sm:$0xff] }
 0x234   : > { %1179 = vst.msk [vmem:[#allocation2 + $0x40] sm:$0xff] %vm8706_vm1, %v1158_v51  ;;  %v1579_v51 = vld [vmem:[%s8738_s6 + $0x330] sm:$0xff]  ;;  %vm7289_vm10 = vcmp.ge.s32.totalorder %v758_v41, 1  ;;  %v765_v58 = vand.u32 7, %v723_v42  ;;  %vm7324_vm13 = vcmp.lt.s32.totalorder %v758_v41, 7  ;;  %v725_v14 = vadd.s32 56, %v6727_v63 }
 0x235   : > { %1180 = vst.msk [vmem:[#allocation2 + $0x48] sm:$0xff] %vm8706_vm1, %v1159_v52  ;;  %v7146_v17 = vld [vmem:[#allocation2 + $0x10] sm:$0xff]  ;;  %vm7245_vm9 = vcmp.ge.s32.totalorder %v751_v5, 1  ;;  %v1580_v52 = vld [vmem:[%s8738_s6 + $0x338] sm:$0xff]  ;;  %vm7293_vm11 = vcmp.lt.s32.totalorder %v751_v5, 7  ;;  %v772_v13 = vand.u32 7, %v724_v9 }
 0x236   : > { %v1277_v59 = vld [vmem:[#allocation2 + $0xf] sm:$0xff]  ;;  %1696 = vmatprep.mubr.f32.mxu0 %v7146_v17  ;;  %v7155_v61 = vld [vmem:[#allocation2 + $0x17] sm:$0xff]  ;;  %vm7320_vm12 = vcmp.ge.s32.totalorder %v765_v58, 1  ;;  %v1601_v41 = vld [vmem:[%s8738_s6 + $0x3e0] sm:$0xff]  ;;  %vm7355_vm15 = vcmp.lt.s32.totalorder %v765_v58, 7 }
 0x237   : > { %v1237_v10 = vld [vmem:[#allocation2 + $0x9] sm:$0xff]  ;;  %4704 = vmatprep.mubr.msk.f32.mxu1 %vm6957_vm3, %v1277_v59  ;;  %v7157_v16 = vld [vmem:[#allocation2 + $0x11] sm:$0xff]  ;;  %4697 = vmatmul.mubr.msk.f32.gmra.mrb[4].mxu0 %vm7120_vm4, %v1277_v59  ;;  %v7172_v0 = vld [vmem:[#allocation2 + $0x1f] sm:$0xff]  ;;  %v5870_v59 = vpack.c.bf16 %v1580_v52, %v1579_v51  ;;  %vm7351_vm14 = vcmp.ge.s32.totalorder %v772_v13, 1  ;;  %v779_v51 = vand.u32 7, %v725_v14  ;;  %vm7385_vm2 = vcmp.lt.s32.totalorder %v772_v13, 7 }
 0x238   : > { %2477 = vst [vmem:[#allocation2 + $0x8] sm:$0xff] %v6453_v6  ;;  %4705 = vmatmul.mubr.msk.f32.vlgmr.msra.gmra.mrb[2].mxu1 %vm7126_vm5, %v1237_v10  ;;  %v7166_v62 = vld [vmem:[#allocation2 + $0x18] sm:$0xff]  ;;  %2478 = vst [vmem:[#allocation2 + $0x10] sm:$0xff] %v6453_v6  ;;  %v7185_v4 = vld [vmem:[#allocation2 + $0x20] sm:$0xff]  ;;  %v5872_v10 = vpack.c.bf16 %v1598_v54, %v1597_v53 }
 0x239   : > { %v7174_v1 = vld [vmem:[#allocation2 + $0x19] sm:$0xff]  ;;  %1701 = vmatprep.mubr.f32.mxu0 %v7166_v62  ;;  %4706 = vmatprep.mubr.msk.f32.mxu1 %vm7120_vm4, %v7155_v61  ;;  %v7188_v7 = vld [vmem:[#allocation2 + $0x27] sm:$0xff]  ;;  %v7212_v23 = vld [vmem:[#allocation2 + $0x2f] sm:$0xff]  ;;  %vm7381_vm1 = vcmp.ge.s32.totalorder %v779_v51, 1  ;;  %vm7413_vm0 = vcmp.lt.s32.totalorder %v779_v51, 7 }
 0x23a   : > { %v7199_v15 = vld [vmem:[#allocation2 + $0x21] sm:$0xff]  ;;  %2479 = vst [vmem:[#allocation2 + $0x18] sm:$0xff] %v6453_v6  ;;  %5859 = vmatpush3.bf16.msra.mxu1 %v5858_v11  ;;  %v7214_v24 = vld [vmem:[#allocation2 + $0x29] sm:$0xff]  ;;  %v7219_v31 = vld [vmem:[#allocation2 + $0x37] sm:$0xff] }
 0x23b   : > { %v7204_v19 = vld [vmem:[#allocation2 + $0x28] sm:$0xff]  ;;  %2480 = vst [vmem:[#allocation2 + $0x20] sm:$0xff] %v6453_v6  ;;  %5861 = vmatprep.subr.bf16.mxu1 %v5860_v21  ;;  %v7217_v30 = vld [vmem:[#allocation2 + $0x30] sm:$0xff]  ;;  %4698 = vmatmul.mubr.msk.f32.gmra.mrb[6].mxu0 %vm7181_vm7, %v7155_v61  ;;  %v7234_v37 = vld [vmem:[#allocation2 + $0x38] sm:$0xff] }
 0x23c   : > { %v7221_v32 = vld [vmem:[#allocation2 + $0x31] sm:$0xff]  ;;  %2481 = vst [vmem:[#allocation2 + $0x28] sm:$0xff] %v6453_v6  ;;  %4707 = vmatmul.mubr.msk.f32.gmra.mrb[4].mxu1 %vm7168_vm6, %v7157_v16  ;;  %v7236_v38 = vld [vmem:[#allocation2 + $0x3f] sm:$0xff]  ;;  %1706 = vmatprep.mubr.f32.mxu0 %v7185_v4  ;;  %v7253_v44 = vld [vmem:[#allocation2 + $0x47] sm:$0xff] }
 0x23d   : > { %v7238_v39 = vld [vmem:[#allocation2 + $0x39] sm:$0xff]  ;;  %2482 = vst [vmem:[#allocation2 + $0x30] sm:$0xff] %v6453_v6  ;;  %4708 = vmatprep.mubr.msk.f32.mxu1 %vm7181_vm7, %v7172_v0  ;;  %v7255_v45 = vld [vmem:[#allocation2 + $0x41] sm:$0xff]  ;;  %v7258_v47 = vld [vmem:[#allocation2 + $0x49] sm:$0xff] }
 0x23e   : > { %v7251_v43 = vld [vmem:[#allocation2 + $0x40] sm:$0xff]  ;;  %2483 = vst [vmem:[#allocation2 + $0x38] sm:$0xff] %v6453_v6  ;;  %5863 = vmatpush3.bf16.msra.mxu1 %v5862_v18  ;;  %v7260_v48 = vld [vmem:[#allocation2 + $0x48] sm:$0xff]  ;;  %v1599_v21 = vld [vmem:[%s8738_s6 + $0x3d0] sm:$0xff] }
 0x23f   : > { %v7262_v49 = vld [vmem:[#allocation2 + $0x4f] sm:$0xff]  ;;  %2484 = vst [vmem:[#allocation2 + $0x40] sm:$0xff] %v6453_v6  ;;  %5865 = vmatprep.subr.bf16.mxu1 %v5864_v25  ;;  %4699 = vmatmul.mubr.msk.f32.gmra.mrb[8].mxu0 %vm7245_vm9, %v7172_v0  ;;  %v1581_v11 = vld [vmem:[%s8738_s6 + $0x340] sm:$0xff]  ;;  %v5876_v20 = vpack.c.bf16 %v1600_v28, %v1599_v21  ;;  %v1584_v25 = vld [vmem:[%s8738_s6 + $0x358] sm:$0xff] }
 0x240   : > { %2485 = vst [vmem:[#allocation2 + $0x48] sm:$0xff] %v6453_v6  ;;  %2486 = vst [vmem:[#allocation2 + $0x50] sm:$0xff] %v6453_v6  ;;  %4709 = vmatmul.mubr.msk.f32.gmra.mrb[6].mxu1 %vm7230_vm8, %v7174_v1  ;;  %1711 = vmatprep.mubr.f32.mxu0 %v7204_v19  ;;  %v5874_v18 = vpack.c.bf16 %v1582_v60, %v1581_v11  ;;  %v1602_v42 = vld [vmem:[%s8738_s6 + $0x3e8] sm:$0xff]  ;;  %v5878_v52 = vpack.c.bf16 %v1584_v25, %v1583_v22  ;;  %v1585_v54 = vld [vmem:[%s8738_s6 + $0x360] sm:$0xff]  ;;  %v8769_v11 = vmov 0 }
 0x241   : > { %4710 = vmatprep.mubr.msk.f32.mxu1 %vm7245_vm9, %v7188_v7  ;;  %v5880_v53 = vpack.c.bf16 %v1602_v42, %v1601_v41  ;;  %v1586_v9 = vld [vmem:[%s8738_s6 + $0x368] sm:$0xff]  ;;  %v1603_v58 = vld [vmem:[%s8738_s6 + $0x3f0] sm:$0xff]  ;;  %v8770_v11 = vsel %vm7385_vm2, 4294967295, %v8769_v11  ;;  %v1588_v14 = vld [vmem:[%s8738_s6 + $0x378] sm:$0xff] }
 0x242   : > { %5867 = vmatpush3.bf16.msra.mxu1 %v5866_v46  ;;  %v8763_v46 = vmov 0  ;;  %v5882_v60 = vpack.c.bf16 %v1586_v9, %v1585_v54  ;;  %v1587_v28 = vld [vmem:[%s8738_s6 + $0x370] sm:$0xff]  ;;  %v1609_v41 = vld [vmem:[%s8738_s6 + $0x420] sm:$0xff]  ;;  %v1618_v54 = vld [vmem:[%s8738_s6 + $0x468] sm:$0xff] }
 0x243   : > { %5869 = vmatprep.subr.bf16.mxu1 %v5868_v50  ;;  %4700 = vmatmul.mubr.msk.f32.gmra.mrb[10].mxu0 %vm7289_vm10, %v7188_v7  ;;  %v8764_v46 = vsel %vm7351_vm14, 4294967295, %v8763_v46  ;;  %v1607_v13 = vld [vmem:[%s8738_s6 + $0x410] sm:$0xff]  ;;  %v5886_v22 = vpack.c.bf16 %v1588_v14, %v1587_v28  ;;  %v1613_v51 = vld [vmem:[%s8738_s6 + $0x440] sm:$0xff]  ;;  %v1620_v9 = vld [vmem:[%s8738_s6 + $0x478] sm:$0xff] }
 0x244   : > { %4711 = vmatmul.mubr.msk.f32.gmra.mrb[8].mxu1 %vm7293_vm11, %v7199_v15  ;;  %1716 = vmatprep.mubr.f32.mxu0 %v7217_v30  ;;  %v6384_v50 = vld [vmem:[%s6661_s1 + $0x28] sm:$0xff] }
 0x245   : > { %4712 = vmatprep.mubr.msk.f32.mxu1 %vm7289_vm10, %v7212_v23 }
 0x246   : > { %5871 = vmatpush3.bf16.msra.mxu1 %v5870_v59  ;;  %v1604_v59 = vld [vmem:[%s8738_s6 + $0x3f8] sm:$0xff] }
 0x247   : > { %5873 = vmatprep.subr.bf16.mxu1 %v5872_v10  ;;  %4701 = vmatmul.mubr.msk.f32.gmra.mrb[12].mxu0 %vm7320_vm12, %v7212_v23  ;;  %v5884_v21 = vpack.c.bf16 %v1604_v59, %v1603_v58  ;;  %v2671_v56 = vld [vmem:[#allocation2 + $0x51] sm:$0xff] }
 0x248   : > { %4713 = vmatmul.mubr.msk.f32.gmra.mrb[10].mxu1 %vm7324_vm13, %v7214_v24  ;;  %1721 = vmatprep.mubr.f32.mxu0 %v7234_v37  ;;  %v6385_v10 = vld [vmem:[%s6661_s1 + $0x30] sm:$0xff] }
 0x249   : > { %4714 = vmatprep.mubr.msk.f32.mxu1 %vm7320_vm12, %v7219_v31 }
 0x24a   : > { %5875 = vmatpush3.bf16.msra.mxu1 %v5874_v18  ;;  %v1608_v18 = vld [vmem:[%s8738_s6 + $0x418] sm:$0xff] }
 0x24b   : > { %5877 = vmatprep.subr.bf16.mxu1 %v5876_v20  ;;  %4702 = vmatmul.mubr.msk.f32.gmra.mrb[14].mxu0 %vm7351_vm14, %v7219_v31  ;;  %v8771_v20 = vmov 0  ;;  %v5892_v25 = vpack.c.bf16 %v1608_v18, %v1607_v13 }
 0x24c   : > { %4715 = vmatmul.mubr.msk.f32.gmra.mrb[12].mxu1 %vm7355_vm15, %v7221_v32  ;;  %1726 = vmatprep.mubr.f32.mxu0 %v7251_v43  ;;  %v8772_v20 = vsel %vm7413_vm0, 4294967295, %v8771_v20 }
 0x24d   : > { %4716 = vmatprep.mubr.msk.f32.mxu1 %vm7351_vm14, %v7236_v38 }
 0x24e   : > { %5879 = vmatpush3.bf16.msra.mxu1 %v5878_v52  ;;  %v1614_v52 = vld [vmem:[%s8738_s6 + $0x448] sm:$0xff] }
 0x24f   : > { %5881 = vmatprep.subr.bf16.mxu1 %v5880_v53  ;;  %4703 = vmatmul.mubr.msk.f32.gmra.mrb[16].mxu0 %vm7381_vm1, %v7236_v38  ;;  %v1616_v53 = vld [vmem:[%s8738_s6 + $0x458] sm:$0xff] }
 0x250   : > { %4717 = vmatmul.mubr.msk.f32.gmra.mrb[14].mxu1 %vm7385_vm2, %v7238_v39  ;;  %4720 = vmatprep.mubr.msk.f32.mxu0 %vm7126_vm5, %v7157_v16  ;;  %v1610_v16 = vld [vmem:[%s8738_s6 + $0x428] sm:$0xff] }
 0x251   : > { %4718 = vmatprep.mubr.msk.f32.mxu1 %vm7381_vm1, %v7253_v44  ;;  %v5896_v42 = vpack.c.bf16 %v1610_v16, %v1609_v41 }
 0x252   : > { %5883 = vmatpush3.bf16.msra.mxu1 %v5882_v60 }
 0x253   : > { %5885 = vmatprep.subr.bf16.mxu1 %v5884_v21  ;;  %1902 = vmatmul.mubr.f32.vlgmr.msra.gmra.mrb[18].mxu0 %v7146_v17  ;;  %v1611_v17 = vld [vmem:[%s8738_s6 + $0x430] sm:$0xff] }
 0x254   : > { %4719 = vmatmul.mubr.msk.f32.gmra.mrb[16].mxu1 %vm7413_vm0, %v7255_v45  ;;  %5891 = vmatpush3.bf16.msra.mxu0 %v7068_v34  ;;  %v1612_v34 = vld [vmem:[%s8738_s6 + $0x438] sm:$0xff] }
 0x255   : > { %4721 = vmatprep.mubr.msk.f32.mxu0 %vm7168_vm6, %v7174_v1  ;;  %2006 = vmatprep.mubr.f32.mxu1 %v7166_v62 }
 0x256   : > { %5887 = vmatpush3.bf16.msra.mxu1 %v5886_v22  ;;  %5893 = vmatprep.subr.bf16.mxu0 %v5892_v25 }
 0x257   : > { %5920 = vmatprep.subr.bf16.mxu1 %v6451_v3  ;;  %1907 = vmatmul.mubr.f32.gmra.mrb[20].mxu0 %v7166_v62  ;;  %v5900_v62 = vpack.c.bf16 %v1612_v34, %v1611_v17 }
 0x258   : > { %5895 = vmatpush3.bf16.msra.mxu0 %v5892_v25  ;;  %4722 = vmatprep.mubr.msk.f32.mxu0 %vm7230_vm8, %v7199_v15 }
 0x259   : > { %4728 = vmatmul.mubr.msk.f32.vlgmr.msra.gmra.mrb[18].mxu1 %vm6957_vm3, %v7155_v61  ;;  %5897 = vmatprep.subr.bf16.mxu0 %v5896_v42  ;;  %v5904_v61 = vpack.c.bf16 %v1614_v52, %v1613_v51 }
 0x25a   : > { %2011 = vmatprep.mubr.f32.mxu1 %v7185_v4 }
 0x25b   : > { %1912 = vmatmul.mubr.f32.gmra.mrb[22].mxu0 %v7185_v4  ;;  %v1615_v4 = vld [vmem:[%s8738_s6 + $0x450] sm:$0xff] }
 0x25c   : > { %5899 = vmatpush3.bf16.msra.mxu0 %v5896_v42  ;;  %4723 = vmatprep.mubr.msk.f32.mxu0 %vm7293_vm11, %v7214_v24 }
 0x25d   : > { %4729 = vmatmul.mubr.msk.f32.gmra.mrb[20].mxu1 %vm7120_vm4, %v7172_v0  ;;  %5901 = vmatprep.subr.bf16.mxu0 %v5900_v62  ;;  %v5908_v0 = vpack.c.bf16 %v1616_v53, %v1615_v4 }
 0x25e   : > { %2016 = vmatprep.mubr.f32.mxu1 %v7204_v19 }
 0x25f   : > { %1917 = vmatmul.mubr.f32.gmra.mrb[24].mxu0 %v7204_v19  ;;  %v1617_v19 = vld [vmem:[%s8738_s6 + $0x460] sm:$0xff] }
 0x260   : > { %5903 = vmatpush3.bf16.msra.mxu0 %v5900_v62  ;;  %4724 = vmatprep.mubr.msk.f32.mxu0 %vm7324_vm13, %v7221_v32 }
 0x261   : > { %4730 = vmatmul.mubr.msk.f32.gmra.mrb[22].mxu1 %vm7181_vm7, %v7188_v7  ;;  %5905 = vmatprep.subr.bf16.mxu0 %v5904_v61  ;;  %v5912_v7 = vpack.c.bf16 %v1618_v54, %v1617_v19 }
 0x262   : > { %2021 = vmatprep.mubr.f32.mxu1 %v7217_v30 }
 0x263   : > { %1922 = vmatmul.mubr.f32.gmra.mrb[26].mxu0 %v7217_v30  ;;  %v1619_v30 = vld [vmem:[%s8738_s6 + $0x470] sm:$0xff]  ;;  %s6391_s6 = sshll.u32 %s6454_s19, 4  ;;  %s6392_s6 = int_to_ptr.vmem [resolvable:$false] %s6391_s6 }
 0x264   : > { %5907 = vmatpush3.bf16.msra.mxu0 %v5904_v61  ;;  %4725 = vmatprep.mubr.msk.f32.mxu0 %vm7355_vm15, %v7238_v39  ;;  %s6393_s24 = scalar_lea.vmem %s6392_s6, 2048 }
 0x265   : > { %4731 = vmatmul.mubr.msk.f32.gmra.mrb[24].mxu1 %vm7245_vm9, %v7212_v23  ;;  %5909 = vmatprep.subr.bf16.mxu0 %v5908_v0  ;;  %v5916_v23 = vpack.c.bf16 %v1620_v9, %v1619_v30 }
 0x266   : > { %2026 = vmatprep.mubr.f32.mxu1 %v7234_v37 }
 0x267   : > { %1927 = vmatmul.mubr.f32.gmra.mrb[28].mxu0 %v7234_v37 }
 0x268   : > { %5911 = vmatpush3.bf16.msra.mxu0 %v5908_v0  ;;  %4726 = vmatprep.mubr.msk.f32.mxu0 %vm7385_vm2, %v7255_v45 }
 0x269   : > { %4732 = vmatmul.mubr.msk.f32.gmra.mrb[26].mxu1 %vm7289_vm10, %v7219_v31  ;;  %5913 = vmatprep.subr.bf16.mxu0 %v5912_v7  ;;  %v2152_v31 = vld [vmem:[%s8696_s21] sm:$0xff] }
 0x26a   : > { %2031 = vmatprep.mubr.f32.mxu1 %v7251_v43 }
 0x26b   : > { %1932 = vmatmul.mubr.f32.gmra.mrb[30].mxu0 %v7251_v43  ;;  %v2157_v43 = vld [vmem:[%s8696_s21 + $0x28] sm:$0xff] }
 0x26c   : > { %5915 = vmatpush3.bf16.msra.mxu0 %v5912_v7  ;;  %4727 = vmatprep.mubr.msk.f32.mxu0 %vm7413_vm0, %v7258_v47 }
 0x26d   : > { %4733 = vmatmul.mubr.msk.f32.gmra.mrb[28].mxu1 %vm7320_vm12, %v7236_v38  ;;  %5917 = vmatprep.subr.bf16.mxu0 %v5916_v23 }
 0x26e   : > { %2036 = vmatprep.mubr.f32.mxu1 %v7260_v48 }
 0x26f   : > { %1937 = vmatmul.mubr.f32.gmra.mrb[32].mxu0 %v7260_v48 }
 0x270   : > { %5919 = vmatpush3.bf16.msra.mxu0 %v5916_v23  ;;  %5474 = vmatprep.mubr.msk.f32.mxu0 %vm7126_vm5, %v7174_v1  ;;  %v4834_v1 = vpop.f32.mrb[2].mxu0 }
 0x271   : > { %4734 = vmatmul.mubr.msk.f32.gmra.mrb[30].mxu1 %vm7351_vm14, %v7253_v44  ;;  %vm8773_vm14 = vmmov 0   ;;  %v2158_v44 = vld [vmem:[%s8696_s21 + $0x30] sm:$0xff] }
 0x272   : > { %2041 = vmatprep.mubr.f32.mxu1 %v6453_v6 }
 0x273   : > { %5475 = vmatmul.mubr.msk.f32.vlgmr.msra.gmra.mrb[34].mxu0 %vm7168_vm6, %v7199_v15  ;;  %v4835_v15 = vpop.f32.mrb[3].mxu0 }
 0x274   : > { %5477 = vmatprep.mubr.msk.f32.mxu0 %vm7230_vm8, %v7214_v24  ;;  %v4836_v24 = vadd.f32 %v4835_v15, %v4834_v1 }
 0x275   : > { %4735 = vmatmul.mubr.msk.f32.gmra.mrb[32].mxu1 %vm7381_vm1, %v7262_v49  ;;  %v4607_v49 = vld [vmem:[%s8774_s3] ss:$0 sm:$0xff]  ;;  %s8777_s3 = sld [smem:[#allocation19_spill]] }
 0x276   : > { %5502 = vmatprep.mubr.msk.f32.mxu1 %vm8773_vm14, %v6453_v6  ;;  %v1694_v28 = vadd.f32 %v4836_v24, %v4607_v49 }
 0x277   : > { %5478 = vmatmul.mubr.msk.f32.gmra.mrb[36].mxu0 %vm7293_vm11, %v7221_v32  ;;  %v2153_v32 = vld [vmem:[%s8696_s21 + $0x8] sm:$0xff] }
 0x278   : > { %5480 = vmatprep.mubr.msk.f32.mxu0 %vm7324_vm13, %v7238_v39  ;;  %v5921_v37 = vpack.c.bf16 %v2153_v32, %v2152_v31  ;;  %v2156_v39 = vld [vmem:[%s8696_s21 + $0x20] sm:$0xff] }
 0x27a   : > { %5922 = vmatpush3.bf16.msra.mxu1 %v5921_v37 }
 0x27b   : > { %5481 = vmatmul.mubr.msk.f32.gmra.mrb[38].mxu0 %vm7355_vm15, %v7255_v45  ;;  %5923 = vmatprep.subr.bf16.mxu1 %v6451_v3  ;;  %v5927_v45 = vpack.c.bf16 %v2157_v43, %v2156_v39  ;;  %v2897_v29 = vld [vmem:[%s8777_s3 + $0x448] sm:$0xff]  ;;  %v2899_v55 = vld [vmem:[%s8777_s3 + $0x458] sm:$0xff] }
 0x27c   : > { %5483 = vmatprep.mubr.msk.f32.mxu0 %vm7385_vm2, %v7258_v47  ;;  %v2159_v47 = vld [vmem:[%s8696_s21 + $0x38] sm:$0xff]  ;;  %vm8775_vm2 = vcmp.eq.s32.totalorder %v6727_v63, 0  ;;  %v2761_v63 = vld [vmem:[%s8777_s3 + $0x8] sm:$0xff] }
 0x27d   : > { %v5930_v48 = vpack.c.bf16 %v2159_v47, %v2158_v44  ;;  %v2901_v2 = vld [vmem:[%s8777_s3 + $0x468] sm:$0xff]  ;;  %v2903_v40 = vld [vmem:[%s8777_s3 + $0x478] sm:$0xff] }
 0x27f   : > { %5484 = vmatmul.mubr.msk.f32.gmra.mrb[40].mxu0 %vm7413_vm0, %v7071_v36  ;;  %v2154_v36 = vld [vmem:[%s8696_s21 + $0x10] sm:$0xff]  ;;  %vm8717_vm0 = vcmask 523264  }
 0x280   : > { %2974 = vmatprep.mubr.f32.mxu0 %v6453_v6  ;;  %v2155_v6 = vld [vmem:[%s8696_s21 + $0x18] sm:$0xff] }
 0x281   : > { %v5924_v38 = vpack.c.bf16 %v2155_v6, %v2154_v36 }
 0x283   : > { %5925 = vmatpush3.bf16.msra.mxu1 %v5924_v38 }
 0x284   : > { %5926 = vmatprep.subr.bf16.mxu1 %v6451_v3 }
 0x287   : > { %5928 = vmatpush3.bf16.msra.mxu1 %v5927_v45 }
 0x288   : > { %5929 = vmatprep.subr.bf16.mxu1 %v6451_v3 }
 0x28b   : > { %5931 = vmatpush3.bf16.msra.mxu1 %v5930_v48 }
 0x28c   : > { %5932 = vmatprep.subr.bf16.mxu1 %v6451_v3 }
 0x30a   : > { %v4837_v58 = vpop.f32.mrb[4].mxu0 }
 0x30b   : > { %v4890_v59 = vpop.f32.mrb[2].mxu1  ;;  %v4838_v60 = vpop.f32.mrb[5].mxu0 }
 0x30c   : > { %v4891_v21 = vpop.f32.mrb[3].mxu1  ;;  %v4839_v14 = vadd.f32 %v4838_v60, %v4837_v58 }
 0x30d   : > { %v4892_v13 = vadd.f32 %v4891_v21, %v4890_v59 }
 0x30e   : > { %v4840_v22 = vpop.f32.mrb[6].mxu0  ;;  %v1699_v42 = vadd.f32 %v4839_v14, %v4607_v49 }
 0x30f   : > { %v1799_v18 = vadd.f32 %v4892_v13, %v1694_v28  ;;  %v4893_v25 = vpop.f32.mrb[4].mxu1  ;;  %v4841_v41 = vpop.f32.mrb[7].mxu0 }
 0x310   : > { %v4894_v16 = vpop.f32.mrb[5].mxu1  ;;  %v4842_v17 = vadd.f32 %v4841_v41, %v4840_v22 }
 0x311   : > { %v4895_v34 = vadd.f32 %v4894_v16, %v4893_v25 }
 0x312   : > { %v4843_v51 = vpop.f32.mrb[8].mxu0  ;;  %v1704_v53 = vadd.f32 %v4842_v17, %v4607_v49 }
 0x313   : > { %v1804_v62 = vadd.f32 %v4895_v34, %v1699_v42  ;;  %v4896_v52 = vpop.f32.mrb[6].mxu1  ;;  %v4844_v61 = vpop.f32.mrb[9].mxu0 }
 0x314   : > { %v4897_v4 = vpop.f32.mrb[7].mxu1  ;;  %v4845_v0 = vadd.f32 %v4844_v61, %v4843_v51 }
 0x315   : > { %v4898_v19 = vadd.f32 %v4897_v4, %v4896_v52 }
 0x316   : > { %v4846_v7 = vpop.f32.mrb[10].mxu0  ;;  %v1709_v1 = vadd.f32 %v4845_v0, %v4607_v49 }
 0x317   : > { %v1809_v54 = vadd.f32 %v4898_v19, %v1704_v53  ;;  %v4899_v30 = vpop.f32.mrb[8].mxu1  ;;  %v4847_v9 = vpop.f32.mrb[11].mxu0 }
 0x318   : > { %v4900_v23 = vpop.f32.mrb[9].mxu1  ;;  %v4848_v15 = vadd.f32 %v4847_v9, %v4846_v7 }
 0x319   : > { %v4901_v24 = vadd.f32 %v4900_v23, %v4899_v30 }
 0x31a   : > { %v4849_v32 = vpop.f32.mrb[12].mxu0  ;;  %v1714_v38 = vadd.f32 %v4848_v15, %v4607_v49 }
 0x31b   : > { %v1814_v31 = vadd.f32 %v4901_v24, %v1709_v1  ;;  %v4902_v37 = vpop.f32.mrb[10].mxu1  ;;  %v4850_v36 = vpop.f32.mrb[13].mxu0 }
 0x31c   : > { %v4903_v6 = vpop.f32.mrb[11].mxu1  ;;  %v4851_v39 = vadd.f32 %v4850_v36, %v4849_v32 }
 0x31d   : > { %v4904_v43 = vadd.f32 %v4903_v6, %v4902_v37 }
 0x31e   : > { %v4852_v45 = vpop.f32.mrb[14].mxu0  ;;  %v1719_v59 = vadd.f32 %v4851_v39, %v4607_v49 }
 0x31f   : > { %v1819_v44 = vadd.f32 %v4904_v43, %v1714_v38  ;;  %v4905_v47 = vpop.f32.mrb[12].mxu1  ;;  %v4853_v48 = vpop.f32.mrb[15].mxu0 }
 0x320   : > { %v4906_v58 = vpop.f32.mrb[13].mxu1  ;;  %v4854_v60 = vadd.f32 %v4853_v48, %v4852_v45 }
 0x321   : > { %v4907_v21 = vadd.f32 %v4906_v58, %v4905_v47 }
 0x322   : > { %v4855_v14 = vpop.f32.mrb[16].mxu0  ;;  %v1724_v41 = vadd.f32 %v4854_v60, %v4607_v49 }
 0x323   : > { %v1824_v28 = vadd.f32 %v4907_v21, %v1719_v59  ;;  %v4908_v13 = vpop.f32.mrb[14].mxu1  ;;  %v4856_v22 = vpop.f32.mrb[17].mxu0 }
 0x324   : > { %v4909_v25 = vpop.f32.mrb[15].mxu1  ;;  %v4857_v16 = vadd.f32 %v4856_v22, %v4855_v14 }
 0x325   : > { %v4910_v42 = vadd.f32 %v4909_v25, %v4908_v13 }
 0x326   : > { %v4946_v51 = vpop.f32.mrb[18].mxu0  ;;  %v1729_v4 = vadd.f32 %v4857_v16, %v4607_v49 }
 0x327   : > { %v1829_v17 = vadd.f32 %v4910_v42, %v1724_v41  ;;  %v4911_v34 = vpop.f32.mrb[16].mxu1  ;;  %v4947_v61 = vpop.f32.mrb[19].mxu0 }
 0x328   : > { %v4912_v52 = vpop.f32.mrb[17].mxu1  ;;  %v4948_v0 = vadd.f32 %v4947_v61, %v4946_v51 }
 0x329   : > { %v4913_v53 = vadd.f32 %v4912_v52, %v4911_v34 }
 0x32a   : > { %v1904_v7 = vadd.f32 %v4948_v0, %v1799_v18  ;;  %v4949_v30 = vpop.f32.mrb[20].mxu0 }
 0x32b   : > { %v1834_v19 = vadd.f32 %v4913_v53, %v1729_v4  ;;  %v4950_v23 = vpop.f32.mrb[21].mxu0 }
 0x32c   : > { %v5002_v9 = vpop.f32.mrb[18].mxu1  ;;  %v4951_v1 = vadd.f32 %v4950_v23, %v4949_v30 }
 0x32d   : > { %v5003_v15 = vpop.f32.mrb[19].mxu1 }
 0x32e   : > { %v5004_v24 = vadd.f32 %v5003_v15, %v5002_v9  ;;  %v1909_v32 = vadd.f32 %v4951_v1, %v1804_v62  ;;  %v4952_v37 = vpop.f32.mrb[22].mxu0 }
 0x32f   : > { %v4953_v6 = vpop.f32.mrb[23].mxu0 }
 0x330   : > { %v5005_v36 = vpop.f32.mrb[20].mxu1  ;;  %v2009_v38 = vadd.f32 %v5004_v24, %v1904_v7  ;;  %v4954_v39 = vadd.f32 %v4953_v6, %v4952_v37 }
 0x331   : > { %v5006_v43 = vpop.f32.mrb[21].mxu1 }
 0x332   : > { %v5007_v45 = vadd.f32 %v5006_v43, %v5005_v36  ;;  %v1914_v47 = vadd.f32 %v4954_v39, %v1809_v54  ;;  %v4955_v49 = vpop.f32.mrb[24].mxu0 }
 0x333   : > { %v4956_v58 = vpop.f32.mrb[25].mxu0 }
 0x334   : > { %v5008_v48 = vpop.f32.mrb[22].mxu1  ;;  %v2014_v59 = vadd.f32 %v5007_v45, %v1909_v32  ;;  %v4957_v18 = vadd.f32 %v4956_v58, %v4955_v49 }
 0x335   : > { %v5009_v60 = vpop.f32.mrb[23].mxu1 }
 0x336   : > { %v5010_v21 = vadd.f32 %v5009_v60, %v5008_v48  ;;  %v1919_v14 = vadd.f32 %v4957_v18, %v1814_v31  ;;  %v4958_v13 = vpop.f32.mrb[26].mxu0 }
 0x337   : > { %v4959_v25 = vpop.f32.mrb[27].mxu0 }
 0x338   : > { %v5011_v22 = vpop.f32.mrb[24].mxu1  ;;  %v2019_v62 = vadd.f32 %v5010_v21, %v1914_v47  ;;  %v4960_v41 = vadd.f32 %v4959_v25, %v4958_v13 }
 0x339   : > { %v5012_v16 = vpop.f32.mrb[25].mxu1 }
 0x33a   : > { %v5013_v42 = vadd.f32 %v5012_v16, %v5011_v22  ;;  %v1924_v34 = vadd.f32 %v4960_v41, %v1819_v44  ;;  %v4961_v51 = vpop.f32.mrb[28].mxu0 }
 0x33b   : > { %v4962_v61 = vpop.f32.mrb[29].mxu0 }
 0x33c   : > { %v5014_v52 = vpop.f32.mrb[26].mxu1  ;;  %v2024_v54 = vadd.f32 %v5013_v42, %v1919_v14  ;;  %v4963_v4 = vadd.f32 %v4962_v61, %v4961_v51 }
 0x33d   : > { %v5015_v53 = vpop.f32.mrb[27].mxu1 }
 0x33e   : > { %v5016_v0 = vadd.f32 %v5015_v53, %v5014_v52  ;;  %v1929_v7 = vadd.f32 %v4963_v4, %v1824_v28  ;;  %v4964_v30 = vpop.f32.mrb[30].mxu0 }
 0x33f   : > { %v4965_v23 = vpop.f32.mrb[31].mxu0 }
 0x340   : > { %v5017_v9 = vpop.f32.mrb[28].mxu1  ;;  %v2029_v31 = vadd.f32 %v5016_v0, %v1924_v34  ;;  %v4966_v1 = vadd.f32 %v4965_v23, %v4964_v30 }
 0x341   : > { %v5018_v15 = vpop.f32.mrb[29].mxu1 }
 0x342   : > { %v5019_v24 = vadd.f32 %v5018_v15, %v5017_v9  ;;  %v1934_v32 = vadd.f32 %v4966_v1, %v1829_v17  ;;  %v4967_v37 = vpop.f32.mrb[32].mxu0 }
 0x343   : > { %v4968_v6 = vpop.f32.mrb[33].mxu0 }
 0x344   : > { %v5020_v36 = vpop.f32.mrb[30].mxu1  ;;  %v2034_v44 = vadd.f32 %v5019_v24, %v1929_v7  ;;  %v4969_v39 = vadd.f32 %v4968_v6, %v4967_v37 }
 0x345   : > { %v5021_v43 = vpop.f32.mrb[31].mxu1 }
 0x346   : > { %v5022_v45 = vadd.f32 %v5021_v43, %v5020_v36  ;;  %v1939_v47 = vadd.f32 %v4969_v39, %v1834_v19  ;;  %v5476_v49 = vpop.f32.mrb[34].mxu0 }
 0x347   : > { %v7577_v58 = vadd.f32 %v5476_v49, %v2014_v59  ;;  %v2113_v28 = vpop.f32.mrb[35].mxu0 }
 0x348   : > { %v5023_v48 = vpop.f32.mrb[32].mxu1  ;;  %v2039_v18 = vadd.f32 %v5022_v45, %v1934_v32  ;;  %v7579_v21 = vadd.f32 %v2113_v28, %v2009_v38 }
 0x349   : > { %v5024_v60 = vpop.f32.mrb[33].mxu1  ;;  %v2189_v17 = vmul.f32 %v7577_v58, %v7577_v58  ;;  %v2168_v13 = vsel %vm8717_vm0, %v7577_v58, 0.0 }
 0x34a   : > { %v5025_v14 = vadd.f32 %v5024_v60, %v5023_v48  ;;  %v2167_v19 = vsel %vm8717_vm0, %v7579_v21, 0.0  ;;  %v2188_v59 = vmul.f32 %v7579_v21, %v7579_v21  ;;  %v5479_v22 = vpop.f32.mrb[36].mxu0 }
 0x34b   : > { %v7589_v25 = vadd.f32 %v5479_v22, %v2024_v54  ;;  %v2123_v41 = vpop.f32.mrb[37].mxu0  ;;  %v2197_v38 = vsel %vm8717_vm0, %v2189_v17, 0.0  ;;  %v2169_v51 = vadd.f32 %v2168_v13, %v2167_v19 }
 0x34c   : > { %v2044_v16 = vadd.f32 %v5025_v14, %v1939_v47  ;;  %v2196_v42 = vsel %vm8717_vm0, %v2188_v59, 0.0  ;;  %v7593_v34 = vadd.f32 %v2123_v41, %v2019_v62 }
 0x34d   : > { %v2191_v52 = vmul.f32 %v7589_v25, %v7589_v25  ;;  %v2198_v53 = vadd.f32 %v2197_v38, %v2196_v42  ;;  %v2172_v62 = vsel %vm8717_vm0, %v7589_v25, 0.0 }
 0x34e   : > { %v2170_v61 = vsel %vm8717_vm0, %v7593_v34, 0.0  ;;  %v2190_v4 = vmul.f32 %v7593_v34, %v7593_v34  ;;  %v5482_v54 = vpop.f32.mrb[38].mxu0 }
 0x34f   : > { %v2171_v0 = vadd.f32 %v2170_v61, %v2169_v51  ;;  %v7601_v7 = vadd.f32 %v5482_v54, %v2034_v44  ;;  %v2133_v30 = vpop.f32.mrb[39].mxu0  ;;  %v2201_v24 = vsel %vm8717_vm0, %v2191_v52, 0.0 }
 0x350   : > { %v2199_v9 = vsel %vm8717_vm0, %v2190_v4, 0.0  ;;  %v7606_v23 = vadd.f32 %v2133_v30, %v2029_v31 }
 0x351   : > { %v2200_v1 = vadd.f32 %v2199_v9, %v2198_v53  ;;  %v2173_v15 = vadd.f32 %v2172_v62, %v2171_v0  ;;  %v2193_v32 = vmul.f32 %v7601_v7, %v7601_v7  ;;  %v2176_v45 = vsel %vm8717_vm0, %v7601_v7, 0.0 }
 0x352   : > { %v2174_v37 = vsel %vm8717_vm0, %v7606_v23, 0.0  ;;  %v2192_v36 = vmul.f32 %v7606_v23, %v7606_v23  ;;  %v5485_v6 = vpop.f32.mrb[40].mxu0 }
 0x353   : > { %v2175_v44 = vadd.f32 %v2174_v37, %v2173_v15  ;;  %v2202_v39 = vadd.f32 %v2201_v24, %v2200_v1  ;;  %v7615_v43 = vadd.f32 %v5485_v6, %v2044_v16  ;;  %v2143_v31 = vpop.f32.mrb[41].mxu0  ;;  %v2205_v60 = vsel %vm8717_vm0, %v2193_v32, 0.0  ;;  %v7636_v32 = vld [vmem:[#allocation2] sm:$0xff]  ;;  %v2162_v6 = vld [vmem:[%s8697_s22 + $0x10] sm:$0xff] }
 0x354   : > { %v2203_v47 = vsel %vm8717_vm0, %v2192_v36, 0.0  ;;  %v7620_v49 = vadd.f32 %v2143_v31, %v2039_v18  ;;  %v2160_v37 = vld [vmem:[%s8697_s22] sm:$0xff]  ;;  %v2161_v36 = vld [vmem:[%s8697_s22 + $0x8] sm:$0xff] }
 0x355   : > { %v2204_v48 = vadd.f32 %v2203_v47, %v2202_v39  ;;  %v2177_v28 = vadd.f32 %v2176_v45, %v2175_v44  ;;  %v2195_v17 = vmul.f32 %v7615_v43, %v7615_v43  ;;  %v2180_v22 = vsel %vm8717_vm0, %v7615_v43, 0.0  ;;  %v2163_v39 = vld [vmem:[%s8697_s22 + $0x18] sm:$0xff] }
 0x356   : > { %v2178_v14 = vsel %vm8717_vm0, %v7620_v49, 0.0  ;;  %v2194_v13 = vmul.f32 %v7620_v49, %v7620_v49  ;;  %v5933_v44 = vpack.c.bf16 %v2161_v36, %v2160_v37  ;;  %v5936_v31 = vpack.c.bf16 %v2163_v39, %v2162_v6  ;;  %v2764_v36 = vld [vmem:[%s8777_s3 + $0x20] sm:$0xff]  ;;  %v2765_v6 = vld [vmem:[%s8777_s3 + $0x28] sm:$0xff] }
 0x357   : > { %v2179_v19 = vadd.f32 %v2178_v14, %v2177_v28  ;;  %v2206_v59 = vadd.f32 %v2205_v60, %v2204_v48  ;;  %v2209_v38 = vsel %vm8717_vm0, %v2195_v17, 0.0  ;;  %v5948_v39 = vpack.c.bf16 %v2765_v6, %v2764_v36  ;;  %v2771_v36 = vld [vmem:[%s8777_s3 + $0x58] sm:$0xff]  ;;  %v2816_v6 = vld [vmem:[%s8777_s3 + $0x1c0] sm:$0xff] }
 0x358   : > { %v2207_v18 = vsel %vm8717_vm0, %v2194_v13, 0.0 }
 0x359   : > { %v2181_v41 = vadd.f32 %v2180_v22, %v2179_v19  ;;  %v2208_v16 = vadd.f32 %v2207_v18, %v2206_v59  ;;  %v2777_v18 = vld [vmem:[%s8777_s3 + $0x88] sm:$0xff] }
 0x35b   : > { %v2182_v42 = vrot.slane %v2181_v41, 4  ;;  %v2210_v51 = vadd.f32 %v2209_v38, %v2208_v16  ;;  %v2760_v16 = vld [vmem:[%s8777_s3] sm:$0xff] }
 0x35c   : > { %v5940_v38 = vpack.c.bf16 %v2761_v63, %v2760_v16 }
 0x35d   : > { %v2183_v52 = vadd.f32 %v2182_v42, %v2181_v41  ;;  %v2211_v61 = vrot.slane %v2210_v51, 4  ;;  %v2778_v42 = vld [vmem:[%s8777_s3 + $0x90] sm:$0xff] }
 0x35f   : > { %v2184_v4 = vrot.slane %v2183_v52, 2  ;;  %v2212_v54 = vadd.f32 %v2211_v61, %v2210_v51  ;;  %v2779_v51 = vld [vmem:[%s8777_s3 + $0x98] sm:$0xff]  ;;  %v2762_v61 = vld [vmem:[%s8777_s3 + $0x10] sm:$0xff] }
 0x361   : > { %v2185_v53 = vadd.f32 %v2184_v4, %v2183_v52  ;;  %v2213_v0 = vrot.slane %v2212_v54, 2  ;;  %v5942_v52 = vpack.c.bf16 %v2779_v51, %v2778_v42  ;;  %v2763_v4 = vld [vmem:[%s8777_s3 + $0x18] sm:$0xff]  ;;  %v2785_v42 = vld [vmem:[%s8777_s3 + $0xc8] sm:$0xff] }
 0x363   : > { %v2186_v30 = vrot.slane %v2185_v53, 1  ;;  %v2214_v62 = vadd.f32 %v2213_v0, %v2212_v54  ;;  %v2808_v54 = vld [vmem:[%s8777_s3 + $0x180] sm:$0xff]  ;;  %v2809_v0 = vld [vmem:[%s8777_s3 + $0x188] sm:$0xff] }
 0x365   : > { %v2215_v9 = vrot.slane %v2214_v62, 1  ;;  %v2187_v1 = vadd.f32 %v2186_v30, %v2185_v53  ;;  %v5944_v53 = vpack.c.bf16 %v2763_v4, %v2762_v61  ;;  %v2792_v30 = vld [vmem:[%s8777_s3 + $0x100] sm:$0xff]  ;;  %v2769_v61 = vld [vmem:[%s8777_s3 + $0x48] sm:$0xff]  ;;  %v2814_v4 = vld [vmem:[%s8777_s3 + $0x1b0] sm:$0xff] }
 0x367   : > { %v2216_v15 = vadd.f32 %v2215_v9, %v2214_v62  ;;  %v2793_v62 = vld [vmem:[%s8777_s3 + $0x108] sm:$0xff]  ;;  %v5970_v9 = vpack.c.bf16 %v2809_v0, %v2808_v54  ;;  %v2798_v0 = vld [vmem:[%s8777_s3 + $0x130] sm:$0xff] }
 0x369   : > { %v2217_v24 = vsel %vm8775_vm2, %v2187_v1, %v2216_v15  ;;  %v5972_v1 = vpack.c.bf16 %v2793_v62, %v2792_v30  ;;  %v2780_v15 = vld [vmem:[%s8777_s3 + $0xa0] sm:$0xff]  ;;  %v2799_v30 = vld [vmem:[%s8777_s3 + $0x138] sm:$0xff] }
 0x36a   : > { %5503 = vmatmul.mubr.msk.f32.vlgmr.msra.gmra.mrb[34].mxu1 %vm8717_vm0, %v2217_v24  ;;  %v2781_v24 = vld [vmem:[%s8777_s3 + $0xa8] sm:$0xff] }
 0x36b   : > { %5513 = vmatprep.mubr.msk.f32.mxu1 %vm8773_vm14, %v7636_v32  ;;  %5934 = vmatpush3.bf16.msra.mxu1 %v5933_v44  ;;  %vm8776_vm14 = vcmask 261120   ;;  %v5946_v37 = vpack.c.bf16 %v2781_v24, %v2780_v15  ;;  %v2810_v44 = vld [vmem:[%s8777_s3 + $0x190] sm:$0xff]  ;;  %v2787_v15 = vld [vmem:[%s8777_s3 + $0xd8] sm:$0xff] }
 0x36c   : > { %5935 = vmatprep.subr.bf16.mxu1 %v6451_v3  ;;  %v2776_v3 = vld [vmem:[%s8777_s3 + $0x80] sm:$0xff] }
 0x36d   : > { %v5938_v41 = vpack.c.bf16 %v2777_v18, %v2776_v3  ;;  %v2813_v3 = vld [vmem:[%s8777_s3 + $0x1a8] sm:$0xff]  ;;  %v2796_v18 = vld [vmem:[%s8777_s3 + $0x120] sm:$0xff] }
 0x36f   : > { %5937 = vmatpush3.bf16.msra.mxu1 %v5936_v31  ;;  %5939 = vmatprep.subr.bf16.mxu0 %v5938_v41  ;;  %v2811_v31 = vld [vmem:[%s8777_s3 + $0x198] sm:$0xff]  ;;  %v2797_v41 = vld [vmem:[%s8777_s3 + $0x128] sm:$0xff] }
 0x370   : > { %5941 = vmatpush3.bf16.msra.mxu0 %v5940_v38  ;;  %5971 = vmatprep.subr.bf16.mxu1 %v5970_v9  ;;  %v5980_v63 = vpack.c.bf16 %v2797_v41, %v2796_v18  ;;  %v2784_v38 = vld [vmem:[%s8777_s3 + $0xc0] sm:$0xff]  ;;  %v5984_v9 = vpack.c.bf16 %v2799_v30, %v2798_v0  ;;  %v2803_v18 = vld [vmem:[%s8777_s3 + $0x158] sm:$0xff]  ;;  %v2805_v0 = vld [vmem:[%s8777_s3 + $0x168] sm:$0xff] }
 0x371   : > { %5943 = vmatprep.subr.bf16.mxu0 %v5942_v52  ;;  %v5954_v51 = vpack.c.bf16 %v2785_v42, %v2784_v38  ;;  %v2768_v52 = vld [vmem:[%s8777_s3 + $0x40] sm:$0xff]  ;;  %v2791_v38 = vld [vmem:[%s8777_s3 + $0xf8] sm:$0xff] }
 0x372   : > { %v5956_v54 = vpack.c.bf16 %v2769_v61, %v2768_v52  ;;  %v2775_v52 = vld [vmem:[%s8777_s3 + $0x78] sm:$0xff]  ;;  %v2820_v61 = vld [vmem:[%s8777_s3 + $0x1e0] sm:$0xff] }
 0x374   : > { %5945 = vmatpush3.bf16.msra.mxu0 %v5944_v53  ;;  %v2815_v53 = vld [vmem:[%s8777_s3 + $0x1b8] sm:$0xff] }
 0x375   : > { %5947 = vmatprep.subr.bf16.mxu0 %v5946_v37  ;;  %v5982_v62 = vpack.c.bf16 %v2815_v53, %v2814_v4  ;;  %v2770_v37 = vld [vmem:[%s8777_s3 + $0x50] sm:$0xff]  ;;  %v2804_v53 = vld [vmem:[%s8777_s3 + $0x160] sm:$0xff] }
 0x378   : > { %5949 = vmatpush3.bf16.msra.mxu0 %v5948_v39  ;;  %v2817_v39 = vld [vmem:[%s8777_s3 + $0x1c8] sm:$0xff] }
 0x43d   : > { %v2287_v45 = vpop.f32.mrb[34].mxu1 }
 0x43e   : > { %v2291_v47 = vmul.f32 0.0078125, %v2287_v45  ;;  %v5504_v48 = vpop.f32.mrb[35].mxu1  ;;  %v2794_v45 = vld [vmem:[%s8777_s3 + $0x110] sm:$0xff] }
 0x43f   : > { %v5974_v48 = vpack.c.bf16 %v2811_v31, %v2810_v44  ;;  %v5960_v44 = vpack.c.bf16 %v2771_v36, %v2770_v37  ;;  %v2800_v31 = vld [vmem:[%s8777_s3 + $0x140] sm:$0xff]  ;;  %v2822_v37 = vld [vmem:[%s8777_s3 + $0x1f0] sm:$0xff]  ;;  %v2823_v36 = vld [vmem:[%s8777_s3 + $0x1f8] sm:$0xff] }
 0x440   : > { %v2292_v28 = vmul.f32 %v2291_v47, %v2291_v47  ;;  %v2302_v19 = vrot.slane %v2291_v47, %v6748_v26 }
 0x442   : > { %v2294_v60 = vrot.slane %v2292_v28, 7 }
 0x444   : > { %v2296_v17 = vsub.f32 %v2291_v47, %v2294_v60  ;;  %v2795_v47 = vld [vmem:[%s8777_s3 + $0x118] sm:$0xff]  ;;  %v2782_v60 = vld [vmem:[%s8777_s3 + $0xb0] sm:$0xff] }
 0x445   : > { %v5976_v28 = vpack.c.bf16 %v2795_v47, %v2794_v45  ;;  %v2801_v45 = vld [vmem:[%s8777_s3 + $0x148] sm:$0xff]  ;;  %v5986_v47 = vpack.c.bf16 %v2817_v39, %v2816_v6  ;;  %v2824_v6 = vld [vmem:[%s8777_s3 + $0x200] sm:$0xff] }
 0x446   : > { %v2297_v14 = vadd.f32 1e-05, %v2296_v17  ;;  %v2783_v17 = vld [vmem:[%s8777_s3 + $0xb8] sm:$0xff]  ;;  %v2825_v39 = vld [vmem:[%s8777_s3 + $0x208] sm:$0xff] }
 0x448   : > { %6312 = vrsqrt.f32 %v2297_v14  ;;  %v5950_v14 = vpack.c.bf16 %v2783_v17, %v2782_v60  ;;  %v2789_v60 = vld [vmem:[%s8777_s3 + $0xe8] sm:$0xff] }
 0x44a   : > { %5951 = vmatprep.subr.bf16.mxu0 %v5950_v14  ;;  %v2772_v14 = vld [vmem:[%s8777_s3 + $0x60] sm:$0xff] }
 0x452   : > { %v6313_v13 = vpop.eup %6312 }
 0x453   : > { %v2306_v59 = vrot.slane %v6313_v13, %v6751_v27  ;;  %v2766_v13 = vld [vmem:[%s8777_s3 + $0x30] sm:$0xff] }
 0x455   : > { %v2307_v22 = vsel %vm8775_vm2, %v2302_v19, %v2306_v59  ;;  %v2767_v19 = vld [vmem:[%s8777_s3 + $0x38] sm:$0xff]  ;;  %v2812_v59 = vld [vmem:[%s8777_s3 + $0x1a0] sm:$0xff]  ;;  %vm8780_vm2 = vnez %v8764_v46 }
 0x456   : > { %5514 = vmatmul.mubr.msk.f32.vlgmr.msra.gmra.mrb[36].mxu1 %vm8776_vm14, %v2307_v22  ;;  %v5952_v22 = vpack.c.bf16 %v2767_v19, %v2766_v13  ;;  %v5978_v16 = vpack.c.bf16 %v2813_v3, %v2812_v59  ;;  %v2773_v13 = vld [vmem:[%s8777_s3 + $0x68] sm:$0xff]  ;;  %v2818_v19 = vld [vmem:[%s8777_s3 + $0x1d0] sm:$0xff]  ;;  %vm8781_vm14 = vnez %v8770_v11  ;;  %v6383_v46 = vld [vmem:[%s6661_s1 + $0x20] sm:$0xff] }
 0x457   : > { %5973 = vmatpush3.bf16.msra.mxu1 %v5972_v1  ;;  %v2786_v1 = vld [vmem:[%s8777_s3 + $0xd0] sm:$0xff]  ;;  %v5964_v59 = vpack.c.bf16 %v2773_v13, %v2772_v14  ;;  %v2827_v13 = vld [vmem:[%s8777_s3 + $0x218] sm:$0xff] }
 0x458   : > { %5975 = vmatprep.subr.bf16.mxu1 %v5974_v48  ;;  %5953 = vmatpush3.bf16.msra.mxu0 %v5952_v22  ;;  %v5958_v24 = vpack.c.bf16 %v2787_v15, %v2786_v1  ;;  %v5988_v48 = vpack.c.bf16 %v2801_v45, %v2800_v31  ;;  %v2819_v22 = vld [vmem:[%s8777_s3 + $0x1d8] sm:$0xff]  ;;  %v2802_v3 = vld [vmem:[%s8777_s3 + $0x150] sm:$0xff]  ;;  %v2840_v1 = vld [vmem:[%s8777_s3 + $0x280] sm:$0xff] }
 0x459   : > { %5955 = vmatprep.subr.bf16.mxu0 %v5954_v51  ;;  %v5990_v41 = vpack.c.bf16 %v2819_v22, %v2818_v19  ;;  %v2774_v51 = vld [vmem:[%s8777_s3 + $0x70] sm:$0xff]  ;;  %v2841_v15 = vld [vmem:[%s8777_s3 + $0x288] sm:$0xff]  ;;  %v2807_v45 = vld [vmem:[%s8777_s3 + $0x178] sm:$0xff] }
 0x45a   : > { %v5968_v4 = vpack.c.bf16 %v2775_v52, %v2774_v51  ;;  %v2806_v31 = vld [vmem:[%s8777_s3 + $0x170] sm:$0xff]  ;;  %v2872_v19 = vld [vmem:[%s8777_s3 + $0x380] sm:$0xff]  ;;  %v2847_v51 = vld [vmem:[%s8777_s3 + $0x2b8] sm:$0xff] }
 0x45b   : > { %5977 = vmatpush3.bf16.msra.mxu1 %v5976_v28  ;;  %v2788_v28 = vld [vmem:[%s8777_s3 + $0xe0] sm:$0xff] }
 0x45c   : > { %5979 = vmatprep.subr.bf16.mxu1 %v5978_v16  ;;  %5957 = vmatpush3.bf16.msra.mxu0 %v5956_v54  ;;  %v5962_v17 = vpack.c.bf16 %v2789_v60, %v2788_v28  ;;  %v5992_v16 = vpack.c.bf16 %v2803_v18, %v2802_v3  ;;  %v2821_v54 = vld [vmem:[%s8777_s3 + $0x1e8] sm:$0xff]  ;;  %v2842_v28 = vld [vmem:[%s8777_s3 + $0x290] sm:$0xff]  ;;  %v2843_v60 = vld [vmem:[%s8777_s3 + $0x298] sm:$0xff] }
 0x45d   : > { %5959 = vmatprep.subr.bf16.mxu0 %v5958_v24  ;;  %v5994_v30 = vpack.c.bf16 %v2821_v54, %v2820_v61  ;;  %v6002_v24 = vpack.c.bf16 %v2841_v15, %v2840_v1  ;;  %v6006_v14 = vpack.c.bf16 %v2843_v60, %v2842_v28  ;;  %v2844_v18 = vld [vmem:[%s8777_s3 + $0x2a0] sm:$0xff]  ;;  %v2831_v54 = vld [vmem:[%s8777_s3 + $0x238] sm:$0xff]  ;;  %v2833_v1 = vld [vmem:[%s8777_s3 + $0x248] sm:$0xff] }
 0x45e   : > { %v2850_v15 = vld [vmem:[%s8777_s3 + $0x2d0] sm:$0xff]  ;;  %v2837_v28 = vld [vmem:[%s8777_s3 + $0x268] sm:$0xff] }
 0x45f   : > { %5981 = vmatpush3.bf16.msra.mxu1 %v5980_v63  ;;  %v2790_v63 = vld [vmem:[%s8777_s3 + $0xf0] sm:$0xff] }
 0x460   : > { %5983 = vmatprep.subr.bf16.mxu1 %v5982_v62  ;;  %5961 = vmatpush3.bf16.msra.mxu0 %v5960_v44  ;;  %v5966_v42 = vpack.c.bf16 %v2791_v38, %v2790_v63  ;;  %v5996_v62 = vpack.c.bf16 %v2805_v0, %v2804_v53  ;;  %v5998_v44 = vpack.c.bf16 %v2823_v36, %v2822_v37  ;;  %v2829_v63 = vld [vmem:[%s8777_s3 + $0x228] sm:$0xff]  ;;  %v2848_v53 = vld [vmem:[%s8777_s3 + $0x2c0] sm:$0xff]  ;;  %v2854_v60 = vld [vmem:[%s8777_s3 + $0x2f0] sm:$0xff] }
 0x461   : > { %5963 = vmatprep.subr.bf16.mxu0 %v5962_v17  ;;  %v2826_v17 = vld [vmem:[%s8777_s3 + $0x210] sm:$0xff]  ;;  %v2849_v0 = vld [vmem:[%s8777_s3 + $0x2c8] sm:$0xff] }
 0x462   : > { %v6008_v22 = vpack.c.bf16 %v2827_v13, %v2826_v17  ;;  %v2855_v17 = vld [vmem:[%s8777_s3 + $0x2f8] sm:$0xff] }
 0x463   : > { %5985 = vmatpush3.bf16.msra.mxu1 %v5984_v9  ;;  %v2496_v9 = vld [vmem:[#allocation2 + $0x7] sm:$0xff]  ;;  %v6030_v13 = vpack.c.bf16 %v2855_v17, %v2854_v60 }
 0x464   : > { %5987 = vmatprep.subr.bf16.mxu1 %v5986_v47  ;;  %5965 = vmatpush3.bf16.msra.mxu0 %v5964_v59  ;;  %v6004_v47 = vpack.c.bf16 %v2825_v39, %v2824_v6  ;;  %v2873_v59 = vld [vmem:[%s8777_s3 + $0x388] sm:$0xff]  ;;  %v2834_v6 = vld [vmem:[%s8777_s3 + $0x250] sm:$0xff]  ;;  %v2852_v39 = vld [vmem:[%s8777_s3 + $0x2e0] sm:$0xff] }
 0x465   : > { %5967 = vmatprep.subr.bf16.mxu0 %v5966_v42  ;;  %v6034_v3 = vpack.c.bf16 %v2873_v59, %v2872_v19  ;;  %v2846_v42 = vld [vmem:[%s8777_s3 + $0x2b0] sm:$0xff]  ;;  %v2839_v59 = vld [vmem:[%s8777_s3 + $0x278] sm:$0xff] }
 0x466   : > { %v6014_v61 = vpack.c.bf16 %v2847_v51, %v2846_v42  ;;  %v2838_v19 = vld [vmem:[%s8777_s3 + $0x270] sm:$0xff] }
 0x467   : > { %5989 = vmatpush3.bf16.msra.mxu1 %v5988_v48  ;;  %v6000_v48 = vpack.c.bf16 %v2807_v45, %v2806_v31  ;;  %v2853_v31 = vld [vmem:[%s8777_s3 + $0x2e8] sm:$0xff] }
 0x468   : > { %5991 = vmatprep.subr.bf16.mxu1 %v5990_v41  ;;  %5969 = vmatpush3.bf16.msra.mxu0 %v5968_v4  ;;  %v2845_v41 = vld [vmem:[%s8777_s3 + $0x2a8] sm:$0xff]  ;;  %v2830_v4 = vld [vmem:[%s8777_s3 + $0x230] sm:$0xff] }
 0x469   : > { %6003 = vmatprep.subr.bf16.mxu0 %v6002_v24  ;;  %v6010_v38 = vpack.c.bf16 %v2845_v41, %v2844_v18  ;;  %v2851_v24 = vld [vmem:[%s8777_s3 + $0x2d8] sm:$0xff]  ;;  %v6032_v18 = vpack.c.bf16 %v2839_v59, %v2838_v19 }
 0x46a   : > { %v6022_v36 = vpack.c.bf16 %v2851_v24, %v2850_v15 }
 0x46b   : > { %5993 = vmatpush3.bf16.msra.mxu1 %v5992_v16  ;;  %4744 = vmatmul.mubr.msk.f32.vlgmr.msra.gmra.mrb[42].mxu0 %vm6957_vm3, %v2496_v9  ;;  %v2828_v16 = vld [vmem:[%s8777_s3 + $0x220] sm:$0xff] }
 0x46c   : > { %5995 = vmatprep.subr.bf16.mxu1 %v5994_v30  ;;  %6005 = vmatpush3.bf16.msra.mxu0 %v6004_v47  ;;  %v6012_v52 = vpack.c.bf16 %v2829_v63, %v2828_v16  ;;  %v6016_v30 = vpack.c.bf16 %v2831_v54, %v2830_v4  ;;  %v2832_v9 = vld [vmem:[%s8777_s3 + $0x240] sm:$0xff]  ;;  %v6026_v47 = vpack.c.bf16 %v2853_v31, %v2852_v39 }
 0x46d   : > { %6007 = vmatprep.subr.bf16.mxu0 %v6006_v14  ;;  %v6020_v37 = vpack.c.bf16 %v2833_v1, %v2832_v9  ;;  %v4610_v16 = vld [vmem:[%s8778_s4] ss:$0 sm:$0xff] }
 0x46f   : > { %5997 = vmatpush3.bf16.msra.mxu1 %v5996_v62  ;;  %v6018_v62 = vpack.c.bf16 %v2849_v0, %v2848_v53 }
 0x470   : > { %5999 = vmatprep.subr.bf16.mxu1 %v5998_v44  ;;  %6009 = vmatpush3.bf16.msra.mxu0 %v6008_v22  ;;  %v2835_v44 = vld [vmem:[%s8777_s3 + $0x258] sm:$0xff]  ;;  %v2888_v22 = vld [vmem:[%s8777_s3 + $0x400] sm:$0xff] }
 0x471   : > { %6011 = vmatprep.subr.bf16.mxu0 %v6010_v38  ;;  %v6024_v45 = vpack.c.bf16 %v2835_v44, %v2834_v6 }
 0x473   : > { %6001 = vmatpush3.bf16.msra.mxu1 %v6000_v48  ;;  %v2836_v48 = vld [vmem:[%s8777_s3 + $0x260] sm:$0xff] }
 0x474   : > { %6035 = vmatprep.subr.bf16.mxu1 %v6034_v3  ;;  %6013 = vmatpush3.bf16.msra.mxu0 %v6012_v52  ;;  %v6028_v14 = vpack.c.bf16 %v2837_v28, %v2836_v48  ;;  %v2889_v3 = vld [vmem:[%s8777_s3 + $0x408] sm:$0xff]  ;;  %v2165_v52 = vld [vmem:[%s8779_s2] sm:$0x1]  ;;  %s701_s2 = sand.u32 1, %s6441_s30  }
 0x475   : > { %6015 = vmatprep.subr.bf16.mxu0 %v6014_v61  ;;  %v7960_v41 = vpack.c.bf16 %v2889_v3, %v2888_v22  ;;  %s4593_s27 = sshll.u32 %s701_s2, 6 }
 0x476   : > { %s703_s29 = scalar_lea.vmem [#allocation4], %s4593_s27 }
 0x477   : > { %s4527_s20 = sshll.u32 %s703_s29, 4  ;;  %s8627_s20 = int_to_ptr.vmem [resolvable:$true] %s4527_s20 }
 0x478   : > { %6017 = vmatpush3.bf16.msra.mxu0 %v6016_v30  ;;  %s6387_s28 = scalar_lea.vmem %s8627_s20, 1024  ;;  %p6394_p0 = scmp.lt.s32.totalorder %s8627_s20, %s6392_s6 }
 0x479   : > { %6019 = vmatprep.subr.bf16.mxu0 %v6018_v62  ;;  %p6388_p11 = scmp.ne.s32.totalorder %s8627_s20, %s6387_s28  ;;  %p6395_p1 = scmp.lt.s32.totalorder %s6393_s24, %s6387_s28 }
 0x47b   : > { %p6389_p12 = pnand %p6388_p11, %p6615_p5  ;;  %p6396_p2 = por %p6395_p1, %p6394_p0 }
 0x47c   : > { %6021 = vmatpush3.bf16.msra.mxu0 %v6020_v37 }
 0x47d   : > { %6023 = vmatprep.subr.bf16.mxu0 %v6022_v36  ;;  %p6390_p13 = pneg %p6389_p12 }
 0x47f   : > { %p6397_p3 = pnand %p6396_p2, %p6390_p13 }
 0x480   : > { %6025 = vmatpush3.bf16.msra.mxu0 %v6024_v45 }
 0x481   : > { %6027 = vmatprep.subr.bf16.mxu0 %v6026_v47 }
 0x484   : > { %6029 = vmatpush3.bf16.msra.mxu0 %v6028_v14 }
 0x485   : > { %6031 = vmatprep.subr.bf16.mxu0 %v6030_v13 }
 0x488   : > { %6033 = vmatpush3.bf16.msra.mxu0 %v6032_v18 }
 0x489   : > { %6067 = vmatprep.subr.bf16.mxu0 %v7960_v41 }
 0x529   : > { %v2377_v63 = vpop.f32.mrb[36].mxu1 }
 0x52a   : > { %v2387_v38 = vmul.f32 %v4610_v16, %v2377_v63  ;;  %v5515_v42 = vpop.f32.mrb[37].mxu1 }
 0x52c   : > { %v2389_v51 = vrot.slane %v2387_v38, 1  ;;  %v2396_v61 = vrot.slane %v2387_v38, %v6751_v27 }
 0x52e   : > { %v2391_v4 = vmul.f32 %v2389_v51, %v2377_v63  ;;  %v2397_v53 = vmul.f32 %v2396_v61, %v7579_v21  ;;  %v2398_v0 = vmul.f32 %v2396_v61, %v7577_v58  ;;  %v2399_v30 = vmul.f32 %v2396_v61, %v7593_v34 }
 0x52f   : > { %v2400_v62 = vmul.f32 %v2396_v61, %v7589_v25  ;;  %v2401_v1 = vmul.f32 %v2396_v61, %v7606_v23  ;;  %v2402_v15 = vmul.f32 %v2396_v61, %v7601_v7  ;;  %v2403_v24 = vmul.f32 %v2396_v61, %v7620_v49 }
 0x530   : > { %v2392_v54 = vsub.f32 %v2165_v52, %v2391_v4  ;;  %v2404_v21 = vmul.f32 %v2396_v61, %v7615_v43 }
 0x532   : > { %v2409_v9 = vrot.slane %v2392_v54, %v6748_v26 }
 0x534   : > { %v2411_v37 = vadd.f32 %v2409_v9, %v2397_v53  ;;  %v2412_v27 = vadd.f32 %v2409_v9, %v2398_v0  ;;  %v2413_v36 = vadd.f32 %v2409_v9, %v2399_v30  ;;  %v2414_v6 = vadd.f32 %v2409_v9, %v2400_v62 }
 0x535   : > { %v2415_v44 = vadd.f32 %v2409_v9, %v2401_v1  ;;  %v2416_v58 = vadd.f32 %v2409_v9, %v2402_v15  ;;  %v2417_v39 = vadd.f32 %v2409_v9, %v2403_v24  ;;  %v2418_v45 = vadd.f32 %v2409_v9, %v2404_v21 }
 0x536   : > { %v4611_v34 = vmul.f32 -1.442695, %v2411_v37  ;;  %v4612_v31 = vmul.f32 -1.442695, %v2412_v27  ;;  %v4613_v25 = vmul.f32 -1.442695, %v2413_v36 }
 0x537   : > { %v4614_v26 = vmul.f32 -1.442695, %v2414_v6  ;;  %v4615_v23 = vmul.f32 -1.442695, %v2415_v44  ;;  %v4616_v7 = vmul.f32 -1.442695, %v2416_v58 }
 0x538   : > { %6314 = vpow2.f32 %v4611_v34  ;;  %v4617_v49 = vmul.f32 -1.442695, %v2417_v39  ;;  %v4618_v47 = vmul.f32 -1.442695, %v2418_v45 }
 0x539   : > { %6316 = vpow2.f32 %v4612_v31 }
 0x53a   : > { %6318 = vpow2.f32 %v4613_v25 }
 0x53b   : > { %6320 = vpow2.f32 %v4614_v26  ;;  %v2858_v26 = vld [vmem:[%s8777_s3 + $0x310] sm:$0xff] }
 0x53c   : > { %6322 = vpow2.f32 %v4615_v23  ;;  %v2859_v23 = vld [vmem:[%s8777_s3 + $0x318] sm:$0xff] }
 0x53d   : > { %6324 = vpow2.f32 %v4616_v7  ;;  %v2876_v7 = vld [vmem:[%s8777_s3 + $0x3a0] sm:$0xff] }
 0x53e   : > { %6326 = vpow2.f32 %v4617_v49  ;;  %v5096_v11 = vpop.f32.mrb[42].mxu0 }
 0x53f   : > { %6328 = vpow2.f32 %v4618_v47 }
 0x542   : > { %v6315_v43 = vpop.eup %6314 }
 0x543   : > { %v6317_v48 = vpop.eup %6316  ;;  %v2443_v28 = vadd.f32 1.0, %v6315_v43  ;;  %v2877_v43 = vld [vmem:[%s8777_s3 + $0x3a8] sm:$0xff] }
 0x544   : > { %v6319_v60 = vpop.eup %6318  ;;  %v2444_v17 = vadd.f32 1.0, %v6317_v48  ;;  %v6040_v48 = vpack.c.bf16 %v2859_v23, %v2858_v26  ;;  %v2869_v23 = vld [vmem:[%s8777_s3 + $0x368] sm:$0xff] }
 0x545   : > { %v6321_v14 = vpop.eup %6320  ;;  %v2445_v13 = vadd.f32 1.0, %v6319_v60  ;;  %6330 = vrcp.f32 %v2443_v28  ;;  %v2860_v28 = vld [vmem:[%s8777_s3 + $0x320] sm:$0xff] }
 0x546   : > { %v6323_v19 = vpop.eup %6322  ;;  %v2446_v59 = vadd.f32 1.0, %v6321_v14  ;;  %6332 = vrcp.f32 %v2444_v17  ;;  %v6042_v17 = vpack.c.bf16 %v2877_v43, %v2876_v7  ;;  %v2861_v14 = vld [vmem:[%s8777_s3 + $0x328] sm:$0xff]  ;;  %v2886_v7 = vld [vmem:[%s8777_s3 + $0x3f0] sm:$0xff] }
 0x547   : > { %v6325_v22 = vpop.eup %6324  ;;  %v2447_v3 = vadd.f32 1.0, %v6323_v19  ;;  %6334 = vrcp.f32 %v2445_v13  ;;  %v2878_v13 = vld [vmem:[%s8777_s3 + $0x3b0] sm:$0xff] }
 0x548   : > { %v6327_v18 = vpop.eup %6326  ;;  %v2448_v16 = vadd.f32 1.0, %v6325_v22  ;;  %6336 = vrcp.f32 %v2446_v59  ;;  %v2879_v22 = vld [vmem:[%s8777_s3 + $0x3b8] sm:$0xff] }
 0x549   : > { %v6329_v63 = vpop.eup %6328  ;;  %v2449_v38 = vadd.f32 1.0, %v6327_v18  ;;  %6338 = vrcp.f32 %v2447_v3  ;;  %v6044_v3 = vpack.c.bf16 %v2861_v14, %v2860_v28  ;;  %v2862_v18 = vld [vmem:[%s8777_s3 + $0x330] sm:$0xff]  ;;  %v2887_v28 = vld [vmem:[%s8777_s3 + $0x3f8] sm:$0xff] }
 0x54a   : > { %v2450_v42 = vadd.f32 1.0, %v6329_v63  ;;  %6340 = vrcp.f32 %v2448_v16  ;;  %v6046_v63 = vpack.c.bf16 %v2879_v22, %v2878_v13  ;;  %v6062_v13 = vpack.c.bf16 %v2887_v28, %v2886_v7  ;;  %v2870_v22 = vld [vmem:[%s8777_s3 + $0x370] sm:$0xff]  ;;  %v3856_v7 = vld [vmem:[%s8690_s15 + $0x8] sm:$0xff] }
 0x54b   : > { %6342 = vrcp.f32 %v2449_v38  ;;  %v2863_v38 = vld [vmem:[%s8777_s3 + $0x338] sm:$0xff] }
 0x54c   : > { %6344 = vrcp.f32 %v2450_v42  ;;  %v2880_v42 = vld [vmem:[%s8777_s3 + $0x3c0] sm:$0xff] }
 0x54f   : > { %v6331_v51 = vpop.eup %6330 }
 0x550   : > { %v6333_v52 = vpop.eup %6332  ;;  %v2467_v61 = vmul.f32 %v6331_v51, %v2411_v37 }
 0x551   : > { %v6335_v4 = vpop.eup %6334  ;;  %v2468_v54 = vmul.f32 %v6333_v52, %v2412_v27  ;;  %v2856_v27 = vld [vmem:[%s8777_s3 + $0x300] sm:$0xff] }
 0x552   : > { %v6337_v53 = vpop.eup %6336  ;;  %v2469_v0 = vmul.f32 %v6335_v4, %v2413_v36  ;;  %2488 = vst.msk [vmem:[#allocation2 + $0x10] sm:$0xff] %vm8717_vm0, %v2467_v61  ;;  %v2857_v36 = vld [vmem:[%s8777_s3 + $0x308] sm:$0xff]  ;;  %v6048_v4 = vpack.c.bf16 %v2863_v38, %v2862_v18  ;;  %v2891_v38 = vld [vmem:[%s8777_s3 + $0x418] sm:$0xff] }
 0x553   : > { %v6339_v30 = vpop.eup %6338  ;;  %v2470_v62 = vmul.f32 %v6337_v53, %v2414_v6  ;;  %2489 = vst.msk [vmem:[#allocation2 + $0x18] sm:$0xff] %vm8717_vm0, %v2468_v54  ;;  %v6036_v25 = vpack.c.bf16 %v2857_v36, %v2856_v27  ;;  %v2881_v61 = vld [vmem:[%s8777_s3 + $0x3c8] sm:$0xff]  ;;  %v2864_v54 = vld [vmem:[%s8777_s3 + $0x340] sm:$0xff]  ;;  %v2867_v36 = vld [vmem:[%s8777_s3 + $0x358] sm:$0xff] }
 0x554   : > { %v6341_v9 = vpop.eup %6340  ;;  %v2471_v1 = vmul.f32 %v6339_v30, %v2415_v44  ;;  %2490 = vst.msk [vmem:[#allocation2 + $0x20] sm:$0xff] %vm8717_vm0, %v2469_v0  ;;  %v2874_v44 = vld [vmem:[%s8777_s3 + $0x390] sm:$0xff]  ;;  %v6050_v0 = vpack.c.bf16 %v2881_v61, %v2880_v42  ;;  %v2865_v30 = vld [vmem:[%s8777_s3 + $0x348] sm:$0xff] }
 0x555   : > { %v6343_v15 = vpop.eup %6342  ;;  %v2472_v24 = vmul.f32 %v6341_v9, %v2416_v58  ;;  %2491 = vst.msk [vmem:[#allocation2 + $0x28] sm:$0xff] %vm8717_vm0, %v2470_v62  ;;  %v2875_v58 = vld [vmem:[%s8777_s3 + $0x398] sm:$0xff]  ;;  %v2882_v62 = vld [vmem:[%s8777_s3 + $0x3d0] sm:$0xff] }
 0x556   : > { %v6345_v21 = vpop.eup %6344  ;;  %v2473_v37 = vmul.f32 %v6343_v15, %v2417_v39  ;;  %2492 = vst.msk [vmem:[#allocation2 + $0x30] sm:$0xff] %vm8717_vm0, %v2471_v1  ;;  %v2883_v15 = vld [vmem:[%s8777_s3 + $0x3d8] sm:$0xff] }
 0x557   : > { %v2474_v6 = vmul.f32 %v6345_v21, %v2418_v45  ;;  %2493 = vst.msk [vmem:[#allocation2 + $0x38] sm:$0xff] %vm8717_vm0, %v2472_v24  ;;  %v6038_v45 = vpack.c.bf16 %v2875_v58, %v2874_v44  ;;  %v6052_v24 = vpack.c.bf16 %v2865_v30, %v2864_v54  ;;  %v2866_v21 = vld [vmem:[%s8777_s3 + $0x350] sm:$0xff]  ;;  %v6054_v27 = vpack.c.bf16 %v2883_v15, %v2882_v62  ;;  %v2892_v54 = vld [vmem:[%s8777_s3 + $0x420] sm:$0xff]  ;;  %v2895_v30 = vld [vmem:[%s8777_s3 + $0x438] sm:$0xff] }
 0x558   : > { %2494 = vst.msk [vmem:[#allocation2 + $0x40] sm:$0xff] %vm8717_vm0, %v2473_v37  ;;  %v2902_v62 = vld [vmem:[%s8777_s3 + $0x470] sm:$0xff] }
 0x559   : > { %2495 = vst.msk [vmem:[#allocation2 + $0x48] sm:$0xff] %vm8717_vm0, %v2474_v6  ;;  %v7999_v39 = vld [vmem:[#allocation2 + $0x10] sm:$0xff]  ;;  %v2884_v6 = vld [vmem:[%s8777_s3 + $0x3e0] sm:$0xff]  ;;  %vm8782_vm0 = vnez %v8772_v20  ;;  %v5097_v20 = vpop.f32.mrb[43].mxu0 }
 0x55a   : > { %v2560_v34 = vld [vmem:[#allocation2 + $0xf] sm:$0xff]  ;;  %2979 = vmatprep.mubr.f32.mxu0 %v7999_v39  ;;  %v8017_v49 = vld [vmem:[#allocation2 + $0x18] sm:$0xff] }
 0x55b   : > { %v2536_v31 = vld [vmem:[#allocation2 + $0x9] sm:$0xff]  ;;  %4752 = vmatprep.mubr.msk.f32.mxu1 %vm6957_vm3, %v2560_v34  ;;  %4745 = vmatmul.mubr.msk.f32.gmra.mrb[44].mxu0 %vm7120_vm4, %v2560_v34  ;;  %v8019_v47 = vld [vmem:[#allocation2 + $0x17] sm:$0xff]  ;;  %v8045_v19 = vld [vmem:[#allocation2 + $0x20] sm:$0xff] }
 0x55c   : > { %4753 = vmatmul.mubr.msk.f32.vlgmr.msra.gmra.mrb[38].mxu1 %vm7126_vm5, %v2536_v31  ;;  %2984 = vmatprep.mubr.f32.mxu0 %v8017_v49  ;;  %v8031_v60 = vld [vmem:[#allocation2 + $0x11] sm:$0xff]  ;;  %v8047_v59 = vld [vmem:[#allocation2 + $0x1f] sm:$0xff]  ;;  %v8073_v51 = vld [vmem:[#allocation2 + $0x28] sm:$0xff]  ;;  %v6056_v31 = vpack.c.bf16 %v2867_v36, %v2866_v21 }
 0x55d   : > { %4754 = vmatprep.mubr.msk.f32.mxu1 %vm7120_vm4, %v8019_v47  ;;  %6037 = vmatpush3.bf16.msra.mxu1 %v6036_v25  ;;  %v8059_v16 = vld [vmem:[#allocation2 + $0x19] sm:$0xff]  ;;  %v8075_v52 = vld [vmem:[#allocation2 + $0x27] sm:$0xff]  ;;  %v8101_v9 = vld [vmem:[#allocation2 + $0x30] sm:$0xff] }
 0x55e   : > { %6039 = vmatprep.subr.bf16.mxu1 %v6038_v45  ;;  %v8087_v53 = vld [vmem:[#allocation2 + $0x21] sm:$0xff]  ;;  %v8103_v1 = vld [vmem:[#allocation2 + $0x2f] sm:$0xff]  ;;  %v8129_v44 = vld [vmem:[#allocation2 + $0x38] sm:$0xff] }
 0x55f   : > { %4746 = vmatmul.mubr.msk.f32.gmra.mrb[46].mxu0 %vm7181_vm7, %v8019_v47  ;;  %v8115_v37 = vld [vmem:[#allocation2 + $0x29] sm:$0xff]  ;;  %v8131_v58 = vld [vmem:[#allocation2 + $0x37] sm:$0xff]  ;;  %v2868_v25 = vld [vmem:[%s8777_s3 + $0x360] sm:$0xff] }
 0x560   : > { %4755 = vmatmul.mubr.msk.f32.gmra.mrb[40].mxu1 %vm7168_vm6, %v8031_v60  ;;  %2989 = vmatprep.mubr.f32.mxu0 %v8045_v19  ;;  %v2885_v34 = vld [vmem:[%s8777_s3 + $0x3e8] sm:$0xff]  ;;  %v8143_v45 = vld [vmem:[#allocation2 + $0x31] sm:$0xff]  ;;  %v8157_v43 = vld [vmem:[#allocation2 + $0x40] sm:$0xff] }
 0x561   : > { %4756 = vmatprep.mubr.msk.f32.mxu1 %vm7181_vm7, %v8047_v59  ;;  %6041 = vmatpush3.bf16.msra.mxu1 %v6040_v48  ;;  %v6058_v26 = vpack.c.bf16 %v2885_v34, %v2884_v6  ;;  %v8159_v48 = vld [vmem:[#allocation2 + $0x3f] sm:$0xff]  ;;  %v8182_v18 = vld [vmem:[#allocation2 + $0x47] sm:$0xff]  ;;  %v2631_v6 = vld [vmem:[#allocation2 + $0x4f] sm:$0xff] }
 0x562   : > { %6043 = vmatprep.subr.bf16.mxu1 %v6042_v17  ;;  %v6060_v17 = vpack.c.bf16 %v2869_v23, %v2868_v25  ;;  %v8168_v14 = vld [vmem:[#allocation2 + $0x39] sm:$0xff]  ;;  %v8196_v61 = vld [vmem:[#allocation2 + $0x41] sm:$0xff]  ;;  %v2607_v15 = vld [vmem:[#allocation2 + $0x49] sm:$0xff] }
 0x563   : > { %4747 = vmatmul.mubr.msk.f32.gmra.mrb[48].mxu0 %vm7245_vm9, %v8047_v59  ;;  %v3438_v36 = vld [vmem:[%s8684_s9 + $0x18] sm:$0xff]  ;;  %v3595_v25 = vld [vmem:[%s8686_s11 + $0x20] sm:$0xff] }
 0x564   : > { %4757 = vmatmul.mubr.msk.f32.gmra.mrb[42].mxu1 %vm7230_vm8, %v8059_v16  ;;  %2994 = vmatprep.mubr.f32.mxu0 %v8073_v51  ;;  %v3594_v34 = vld [vmem:[%s8686_s11 + $0x18] sm:$0xff] }
 0x565   : > { %4758 = vmatprep.mubr.msk.f32.mxu1 %vm7245_vm9, %v8075_v52  ;;  %6045 = vmatpush3.bf16.msra.mxu1 %v6044_v3  ;;  %v2871_v3 = vld [vmem:[%s8777_s3 + $0x378] sm:$0xff] }
 0x566   : > { %6047 = vmatprep.subr.bf16.mxu1 %v6046_v63  ;;  %v2890_v63 = vld [vmem:[%s8777_s3 + $0x410] sm:$0xff]  ;;  %v6064_v42 = vpack.c.bf16 %v2871_v3, %v2870_v22  ;;  %v3859_v3 = vld [vmem:[%s8690_s15 + $0x20] sm:$0xff] }
 0x567   : > { %4748 = vmatmul.mubr.msk.f32.gmra.mrb[50].mxu0 %vm7289_vm10, %v8075_v52 }
 0x568   : > { %4759 = vmatmul.mubr.msk.f32.gmra.mrb[44].mxu1 %vm7293_vm11, %v8087_v53  ;;  %2999 = vmatprep.mubr.f32.mxu0 %v8101_v9 }
 0x569   : > { %4760 = vmatprep.mubr.msk.f32.mxu1 %vm7289_vm10, %v8103_v1  ;;  %6049 = vmatpush3.bf16.msra.mxu1 %v6048_v4  ;;  %v6070_v4 = vpack.c.bf16 %v2891_v38, %v2890_v63  ;;  %v3861_v38 = vld [vmem:[%s8690_s15 + $0x30] sm:$0xff] }
 0x56a   : > { %6051 = vmatprep.subr.bf16.mxu1 %v6050_v0 }
 0x56b   : > { %4749 = vmatmul.mubr.msk.f32.gmra.mrb[52].mxu0 %vm7320_vm12, %v8103_v1 }
 0x56c   : > { %4761 = vmatmul.mubr.msk.f32.gmra.mrb[46].mxu1 %vm7324_vm13, %v8115_v37  ;;  %3004 = vmatprep.mubr.f32.mxu0 %v8129_v44 }
 0x56d   : > { %4762 = vmatprep.mubr.msk.f32.mxu1 %vm7320_vm12, %v8131_v58  ;;  %6053 = vmatpush3.bf16.msra.mxu1 %v6052_v24  ;;  %v2654_v24 = vld [vmem:[#allocation2 + $0x48] sm:$0xff] }
 0x56e   : > { %6055 = vmatprep.subr.bf16.mxu1 %v6054_v27  ;;  %v3437_v27 = vld [vmem:[%s8684_s9 + $0x10] sm:$0xff] }
 0x56f   : > { %4750 = vmatmul.mubr.msk.f32.gmra.mrb[54].mxu0 %vm8780_vm2, %v8131_v58  ;;  %v6102_v5 = vpack.c.bf16 %v3438_v36, %v3437_v27 }
 0x570   : > { %4763 = vmatmul.mubr.msk.f32.gmra.mrb[48].mxu1 %vm7355_vm15, %v8143_v45  ;;  %3009 = vmatprep.mubr.f32.mxu0 %v8157_v43 }
 0x571   : > { %4764 = vmatprep.mubr.msk.f32.mxu1 %vm8780_vm2, %v8159_v48  ;;  %6057 = vmatpush3.bf16.msra.mxu1 %v6056_v31 }
 0x572   : > { %6059 = vmatprep.subr.bf16.mxu1 %v6058_v26  ;;  %v3855_v26 = vld [vmem:[%s8690_s15] sm:$0xff] }
 0x573   : > { %4751 = vmatmul.mubr.msk.f32.gmra.mrb[56].mxu0 %vm7381_vm1, %v8159_v48  ;;  %v6138_v28 = vpack.c.bf16 %v3856_v7, %v3855_v26 }
 0x574   : > { %4765 = vmatmul.mubr.msk.f32.gmra.mrb[50].mxu1 %vm8781_vm14, %v8168_v14  ;;  %4768 = vmatprep.mubr.msk.f32.mxu0 %vm7126_vm5, %v8031_v60  ;;  %v2893_v60 = vld [vmem:[%s8777_s3 + $0x428] sm:$0xff] }
 0x575   : > { %4766 = vmatprep.mubr.msk.f32.mxu1 %vm7381_vm1, %v8182_v18  ;;  %6061 = vmatpush3.bf16.msra.mxu1 %v6060_v17  ;;  %v6074_v0 = vpack.c.bf16 %v2893_v60, %v2892_v54  ;;  %v3736_v54 = vld [vmem:[%s8688_s13 + $0x8] sm:$0xff] }
 0x576   : > { %6063 = vmatprep.subr.bf16.mxu1 %v6062_v13  ;;  %v3598_v13 = vld [vmem:[%s8686_s11 + $0x38] sm:$0xff] }
 0x577   : > { %3185 = vmatmul.mubr.f32.vlgmr.msra.gmra.mrb[58].mxu0 %v7999_v39  ;;  %v2894_v39 = vld [vmem:[%s8777_s3 + $0x430] sm:$0xff] }
 0x578   : > { %4767 = vmatmul.mubr.msk.f32.gmra.mrb[52].mxu1 %vm8782_vm0, %v8196_v61  ;;  %6069 = vmatpush3.bf16.msra.mxu0 %v7960_v41  ;;  %v6078_v41 = vpack.c.bf16 %v2895_v30, %v2894_v39 }
 0x579   : > { %4769 = vmatprep.mubr.msk.f32.mxu0 %vm7168_vm6, %v8059_v16  ;;  %6065 = vmatpush3.bf16.msra.mxu1 %v6064_v42  ;;  %v3862_v42 = vld [vmem:[%s8690_s15 + $0x38] sm:$0xff] }
 0x57a   : > { %3289 = vmatprep.mubr.f32.mxu1 %v8017_v49  ;;  %6071 = vmatprep.subr.bf16.mxu0 %v6070_v4 }
 0x57b   : > { %3190 = vmatmul.mubr.f32.gmra.mrb[60].mxu0 %v8017_v49  ;;  %v2896_v49 = vld [vmem:[%s8777_s3 + $0x440] sm:$0xff] }
 0x57c   : > { %4776 = vmatmul.mubr.msk.f32.vlgmr.msra.gmra.mrb[54].mxu1 %vm6957_vm3, %v8019_v47  ;;  %6073 = vmatpush3.bf16.msra.mxu0 %v6070_v4  ;;  %v6082_v47 = vpack.c.bf16 %v2897_v29, %v2896_v49  ;;  %v3735_v4 = vld [vmem:[%s8688_s13] sm:$0xff] }
 0x57d   : > { %4770 = vmatprep.mubr.msk.f32.mxu0 %vm7230_vm8, %v8087_v53  ;;  %3294 = vmatprep.mubr.f32.mxu1 %v8045_v19  ;;  %v8399_v60 = vpack.c.bf16 %v3736_v54, %v3735_v4 }
 0x57e   : > { %6075 = vmatprep.subr.bf16.mxu0 %v6074_v0 }
 0x57f   : > { %3195 = vmatmul.mubr.f32.gmra.mrb[62].mxu0 %v8045_v19  ;;  %v2898_v19 = vld [vmem:[%s8777_s3 + $0x450] sm:$0xff] }
 0x580   : > { %4777 = vmatmul.mubr.msk.f32.gmra.mrb[56].mxu1 %vm7120_vm4, %v8047_v59  ;;  %6077 = vmatpush3.bf16.msra.mxu0 %v6074_v0  ;;  %v6086_v59 = vpack.c.bf16 %v2899_v55, %v2898_v19  ;;  %v4619_v0 = vld [vmem:[%s8683_s8] ss:$0 sm:$0xff] }
 0x581   : > { %4771 = vmatprep.mubr.msk.f32.mxu0 %vm7293_vm11, %v8115_v37  ;;  %3299 = vmatprep.mubr.f32.mxu1 %v8073_v51 }
 0x582   : > { %6079 = vmatprep.subr.bf16.mxu0 %v6078_v41 }
 0x583   : > { %3200 = vmatmul.mubr.f32.gmra.mrb[64].mxu0 %v8073_v51  ;;  %v2900_v51 = vld [vmem:[%s8777_s3 + $0x460] sm:$0xff] }
 0x584   : > { %4778 = vmatmul.mubr.msk.f32.gmra.mrb[58].mxu1 %vm7181_vm7, %v8075_v52  ;;  %6081 = vmatpush3.bf16.msra.mxu0 %v6078_v41  ;;  %v6090_v52 = vpack.c.bf16 %v2901_v2, %v2900_v51 }
 0x585   : > { %4772 = vmatprep.mubr.msk.f32.mxu0 %vm7324_vm13, %v8143_v45  ;;  %3304 = vmatprep.mubr.f32.mxu1 %v8101_v9 }
 0x586   : > { %6083 = vmatprep.subr.bf16.mxu0 %v6082_v47 }
 0x587   : > { %3205 = vmatmul.mubr.f32.gmra.mrb[66].mxu0 %v8101_v9  ;;  %v6094_v9 = vpack.c.bf16 %v2903_v40, %v2902_v62 }
 0x588   : > { %4779 = vmatmul.mubr.msk.f32.gmra.mrb[60].mxu1 %vm7245_vm9, %v8103_v1  ;;  %6085 = vmatpush3.bf16.msra.mxu0 %v6082_v47  ;;  %v3435_v1 = vld [vmem:[%s8684_s9] sm:$0xff]  ;;  %vm8791_vm9 = vcmask 523264  }
 0x589   : > { %4773 = vmatprep.mubr.msk.f32.mxu0 %vm7355_vm15, %v8168_v14  ;;  %3309 = vmatprep.mubr.f32.mxu1 %v8129_v44  ;;  %v6098_v21 = vpack.c.bf16 %v3436_v57, %v3435_v1 }
 0x58a   : > { %6087 = vmatprep.subr.bf16.mxu0 %v6086_v59 }
 0x58b   : > { %3210 = vmatmul.mubr.f32.gmra.mrb[68].mxu0 %v8129_v44 }
 0x58c   : > { %4780 = vmatmul.mubr.msk.f32.gmra.mrb[62].mxu1 %vm7289_vm10, %v8131_v58  ;;  %6089 = vmatpush3.bf16.msra.mxu0 %v6086_v59  ;;  %v3593_v58 = vld [vmem:[%s8686_s11 + $0x10] sm:$0xff]  ;;  %vm8792_vm10 = vmmov %vm8791_vm9 }
 0x58d   : > { %4774 = vmatprep.mubr.msk.f32.mxu0 %vm8781_vm14, %v8196_v61  ;;  %3314 = vmatprep.mubr.f32.mxu1 %v8157_v43  ;;  %v6110_v31 = vpack.c.bf16 %v3594_v34, %v3593_v58 }
 0x58e   : > { %6091 = vmatprep.subr.bf16.mxu0 %v6090_v52 }
 0x58f   : > { %3215 = vmatmul.mubr.f32.gmra.mrb[70].mxu0 %v8157_v43  ;;  %v3857_v43 = vld [vmem:[%s8690_s15 + $0x10] sm:$0xff] }
 0x590   : > { %4781 = vmatmul.mubr.msk.f32.gmra.mrb[64].mxu1 %vm7320_vm12, %v8159_v48  ;;  %6093 = vmatpush3.bf16.msra.mxu0 %v6090_v52  ;;  %v3858_v48 = vld [vmem:[%s8690_s15 + $0x18] sm:$0xff]  ;;  %vm8794_vm12 = vmmov %vm8791_vm9 }
 0x591   : > { %4775 = vmatprep.mubr.msk.f32.mxu0 %vm8782_vm0, %v2607_v15  ;;  %3319 = vmatprep.mubr.f32.mxu1 %v2654_v24  ;;  %v6142_v17 = vpack.c.bf16 %v3858_v48, %v3857_v43 }
 0x592   : > { %6095 = vmatprep.subr.bf16.mxu0 %v6094_v9 }
 0x593   : > { %3220 = vmatmul.mubr.f32.gmra.mrb[72].mxu0 %v2654_v24 }
 0x594   : > { %4782 = vmatmul.mubr.msk.f32.gmra.mrb[66].mxu1 %vm8780_vm2, %v8182_v18  ;;  %6097 = vmatpush3.bf16.msra.mxu0 %v6094_v9  ;;  %v3860_v18 = vld [vmem:[%s8690_s15 + $0x28] sm:$0xff]  ;;  %vm8797_vm2 = vmmov %vm8791_vm9 }
 0x595   : > { %5548 = vmatprep.mubr.msk.f32.mxu0 %vm7126_vm5, %v8059_v16  ;;  %3324 = vmatprep.mubr.f32.mxu1 %v7636_v32  ;;  %v6386_v32 = vld [vmem:[%s6661_s1 + $0x38] sm:$0xff]  ;;  %v5098_v16 = vadd.f32 %v5097_v20, %v5096_v11  ;;  %v6146_v63 = vpack.c.bf16 %v3860_v18, %v3859_v3  ;;  %s4695_s1 = sshll.u32 %s6598_s5, 10  ;;  %s8634_s5 = scalar_lea.sflag [#allocation5], %s701_s2 }
 0x596   : > { %6099 = vmatprep.subr.bf16.mxu0 %v6098_v21  ;;  %s8625_s4 = scalar_lea.hbm %s8698_s23, %s4695_s1 }
 0x597   : > { %5549 = vmatmul.mubr.msk.f32.vlgmr.msra.gmra.mrb[74].mxu0 %vm7168_vm6, %v8087_v53  ;;  %v3591_v53 = vld [vmem:[%s8686_s11] sm:$0xff]  ;;  %v2977_v29 = vadd.f32 %v5098_v16, %v4619_v0 }
 0x598   : > { %4783 = vmatmul.mubr.msk.f32.gmra.mrb[68].mxu1 %vm7381_vm1, %v2631_v6  ;;  %6101 = vmatpush3.bf16.msra.mxu0 %v6098_v21  ;;  %vm8783_vm1 = vcmask 261120  }
 0x599   : > { %5551 = vmatprep.mubr.msk.f32.mxu0 %vm7230_vm8, %v8115_v37  ;;  %6103 = vmatprep.subr.bf16.mxu0 %v6102_v5  ;;  %vm8784_vm3 = vmmov %vm8783_vm1  ;;  %v3592_v37 = vld [vmem:[%s8686_s11 + $0x8] sm:$0xff] }
 0x59a   : > { %vm8785_vm4 = vmmov %vm8783_vm1  ;;  %v6106_v44 = vpack.c.bf16 %v3592_v37, %v3591_v53 }
 0x59b   : > { %5552 = vmatmul.mubr.msk.f32.gmra.mrb[76].mxu0 %vm7293_vm11, %v8143_v45  ;;  %vm8786_vm5 = vmmov %vm8783_vm1  ;;  %v3596_v45 = vld [vmem:[%s8686_s11 + $0x28] sm:$0xff] }
 0x59c   : > { %5554 = vmatprep.mubr.msk.f32.mxu0 %vm7324_vm13, %v8168_v14  ;;  %6105 = vmatpush3.bf16.msra.mxu0 %v6102_v5  ;;  %vm8787_vm6 = vmmov %vm8783_vm1  ;;  %v6114_v23 = vpack.c.bf16 %v3596_v45, %v3595_v25  ;;  %v3597_v14 = vld [vmem:[%s8686_s11 + $0x30] sm:$0xff] }
 0x59d   : > { %vm8788_vm7 = vmmov %vm8783_vm1  ;;  %6107 = vmatprep.subr.bf16.mxu1 %v6106_v44  ;;  %v6118_v22 = vpack.c.bf16 %v3598_v13, %v3597_v14  ;;  %6139 = vmatprep.subr.bf16.mxu0 %v6138_v28 }
 0x59e   : > { %6109 = vmatpush3.bf16.msra.mxu1 %v6106_v44  ;;  %vm8793_vm11 = vmmov %vm8791_vm9 }
 0x59f   : > { %5555 = vmatmul.mubr.msk.f32.gmra.mrb[78].mxu0 %vm7355_vm15, %v8196_v61  ;;  %6111 = vmatprep.subr.bf16.mxu1 %v6110_v31  ;;  %v6150_v61 = vpack.c.bf16 %v3862_v42, %v3861_v38  ;;  %vm8795_vm13 = vmmov %vm8791_vm9 }
 0x5a0   : > { %5557 = vmatprep.mubr.msk.f32.mxu0 %vm8781_vm14, %v2607_v15  ;;  %vm8796_vm15 = vmmov %vm8791_vm9 }
 0x5a1   : > { %vm8798_vm14 = vmmov %vm8797_vm2 }
 0x5a2   : > { %6113 = vmatpush3.bf16.msra.mxu1 %v6110_v31 }
 0x5a3   : > { %5558 = vmatmul.mubr.msk.f32.gmra.mrb[80].mxu0 %vm8782_vm0, %v2671_v56  ;;  %vm8789_vm0 = vmmov %vm8783_vm1  ;;  %6115 = vmatprep.subr.bf16.mxu1 %v6114_v23 }
 0x5a4   : > { %5568 = vmatprep.mubr.msk.f32.mxu0 %vm8783_vm1, %v6379_v35  ;;  %vm8790_vm8 = vmmov %vm8789_vm0 }
 0x5a5   : > { %vm8799_vm1 = vmmov %vm8797_vm2 }
 0x5a6   : > { %6117 = vmatpush3.bf16.msra.mxu1 %v6114_v23 }
 0x5a7   : > { %5569 = vmatmul.mubr.msk.f32.vlgmr.msra.gmra.mrb[74].mxu0 %vm8784_vm3, %v6380_v33  ;;  %6119 = vmatprep.subr.bf16.mxu1 %v6118_v22  ;;  %vm8800_vm3 = vmmov %vm8799_vm1 }
 0x5a8   : > { %5571 = vmatprep.mubr.msk.f32.mxu0 %vm8785_vm4, %v6381_v8  ;;  %6141 = vmatpush3.bf16.msra.mxu0 %v6138_v28  ;;  %vm8801_vm4 = vmmov %vm8799_vm1 }
 0x5a9   : > { %6143 = vmatprep.subr.bf16.mxu0 %v6142_v17 }
 0x5aa   : > { %6121 = vmatpush3.bf16.msra.mxu1 %v6118_v22 }
 0x5ab   : > { %5572 = vmatmul.mubr.msk.f32.gmra.mrb[76].mxu0 %vm8786_vm5, %v6382_v12  ;;  %6123 = vmatprep.subr.bf16.mxu1 %v8399_v60  ;;  %vm8802_vm5 = vmmov %vm8799_vm1 }
 0x5ac   : > { %5574 = vmatprep.mubr.msk.f32.mxu0 %vm8787_vm6, %v6383_v46  ;;  %6145 = vmatpush3.bf16.msra.mxu0 %v6142_v17  ;;  %vm8803_vm6 = vmmov %vm8799_vm1 }
 0x5ad   : > { %6147 = vmatprep.subr.bf16.mxu0 %v6146_v63 }
 0x5af   : > { %5575 = vmatmul.mubr.msk.f32.gmra.mrb[78].mxu0 %vm8788_vm7, %v6384_v50  ;;  %vm8804_vm7 = vmmov %vm8799_vm1 }
 0x5b0   : > { %5577 = vmatprep.mubr.msk.f32.mxu0 %vm8789_vm0, %v6385_v10  ;;  %6149 = vmatpush3.bf16.msra.mxu0 %v6146_v63  ;;  %vm8805_vm0 = vmmov %vm8799_vm1 }
 0x5b1   : > { %6151 = vmatprep.subr.bf16.mxu0 %v6150_v61 }
 0x5b3   : > { %5578 = vmatmul.mubr.msk.f32.gmra.mrb[80].mxu0 %vm8790_vm8, %v6386_v32  ;;  %vm8806_vm8 = vmmov %vm8805_vm0 }
 0x5b4   : > { %6153 = vmatpush3.bf16.msra.mxu0 %v6150_v61 }
 0x62e   : > { %v5099_v39 = vpop.f32.mrb[44].mxu0 }
 0x62f   : > { %v5152_v30 = vpop.f32.mrb[38].mxu1  ;;  %v5100_v41 = vpop.f32.mrb[45].mxu0 }
 0x630   : > { %v5153_v49 = vpop.f32.mrb[39].mxu1  ;;  %v5101_v47 = vadd.f32 %v5100_v41, %v5099_v39 }
 0x631   : > { %v5154_v19 = vadd.f32 %v5153_v49, %v5152_v30 }
 0x632   : > { %v5102_v59 = vpop.f32.mrb[46].mxu0  ;;  %v2982_v62 = vadd.f32 %v5101_v47, %v4619_v0 }
 0x633   : > { %v3082_v55 = vadd.f32 %v5154_v19, %v2977_v29  ;;  %v5155_v51 = vpop.f32.mrb[40].mxu1  ;;  %v5103_v2 = vpop.f32.mrb[47].mxu0 }
 0x634   : > { %v5156_v52 = vpop.f32.mrb[41].mxu1  ;;  %v5104_v40 = vadd.f32 %v5103_v2, %v5102_v59 }
 0x635   : > { %v5157_v9 = vadd.f32 %v5156_v52, %v5155_v51 }
 0x636   : > { %v5105_v57 = vpop.f32.mrb[48].mxu0  ;;  %v2987_v27 = vadd.f32 %v5104_v40, %v4619_v0 }
 0x637   : > { %v3087_v1 = vadd.f32 %v5157_v9, %v2982_v62  ;;  %v5158_v15 = vpop.f32.mrb[42].mxu1  ;;  %v5106_v24 = vpop.f32.mrb[49].mxu0 }
 0x638   : > { %v5159_v21 = vpop.f32.mrb[43].mxu1  ;;  %v5107_v36 = vadd.f32 %v5106_v24, %v5105_v57 }
 0x639   : > { %v5160_v5 = vadd.f32 %v5159_v21, %v5158_v15 }
 0x63a   : > { %v5108_v56 = vpop.f32.mrb[50].mxu0  ;;  %v2992_v12 = vadd.f32 %v5107_v36, %v4619_v0 }
 0x63b   : > { %v3092_v6 = vadd.f32 %v5160_v5, %v2987_v27  ;;  %v5161_v35 = vpop.f32.mrb[44].mxu1  ;;  %v5109_v33 = vpop.f32.mrb[51].mxu0 }
 0x63c   : > { %v5162_v8 = vpop.f32.mrb[45].mxu1  ;;  %v5110_v46 = vadd.f32 %v5109_v33, %v5108_v56 }
 0x63d   : > { %v5163_v50 = vadd.f32 %v5162_v8, %v5161_v35 }
 0x63e   : > { %v5111_v11 = vpop.f32.mrb[52].mxu0  ;;  %v2997_v53 = vadd.f32 %v5110_v46, %v4619_v0 }
 0x63f   : > { %v3097_v10 = vadd.f32 %v5163_v50, %v2992_v12  ;;  %v5164_v20 = vpop.f32.mrb[46].mxu1  ;;  %v5112_v32 = vpop.f32.mrb[53].mxu0 }
 0x640   : > { %v5165_v16 = vpop.f32.mrb[47].mxu1  ;;  %v5113_v37 = vadd.f32 %v5112_v32, %v5111_v11 }
 0x641   : > { %v5166_v44 = vadd.f32 %v5165_v16, %v5164_v20 }
 0x642   : > { %v5114_v34 = vpop.f32.mrb[54].mxu0  ;;  %v3002_v26 = vadd.f32 %v5113_v37, %v4619_v0 }
 0x643   : > { %v3102_v58 = vadd.f32 %v5166_v44, %v2997_v53  ;;  %v5167_v31 = vpop.f32.mrb[48].mxu1  ;;  %v5115_v25 = vpop.f32.mrb[55].mxu0 }
 0x644   : > { %v5168_v45 = vpop.f32.mrb[49].mxu1  ;;  %v5116_v23 = vadd.f32 %v5115_v25, %v5114_v34 }
 0x645   : > { %v5169_v7 = vadd.f32 %v5168_v45, %v5167_v31 }
 0x646   : > { %v5117_v48 = vpop.f32.mrb[56].mxu0  ;;  %v3007_v13 = vadd.f32 %v5116_v23, %v4619_v0 }
 0x647   : > { %v3107_v43 = vadd.f32 %v5169_v7, %v3002_v26  ;;  %v5170_v28 = vpop.f32.mrb[50].mxu1  ;;  %v5118_v17 = vpop.f32.mrb[57].mxu0 }
 0x648   : > { %v5171_v14 = vpop.f32.mrb[51].mxu1  ;;  %v5119_v22 = vadd.f32 %v5118_v17, %v5117_v48 }
 0x649   : > { %v5172_v3 = vadd.f32 %v5171_v14, %v5170_v28 }
 0x64a   : > { %v5208_v38 = vpop.f32.mrb[58].mxu0  ;;  %v3012_v4 = vadd.f32 %v5119_v22, %v4619_v0 }
 0x64b   : > { %v3112_v18 = vadd.f32 %v5172_v3, %v3007_v13  ;;  %v5173_v63 = vpop.f32.mrb[52].mxu1  ;;  %v5209_v61 = vpop.f32.mrb[59].mxu0 }
 0x64c   : > { %v5174_v42 = vpop.f32.mrb[53].mxu1  ;;  %v5210_v39 = vadd.f32 %v5209_v61, %v5208_v38 }
 0x64d   : > { %v5175_v54 = vadd.f32 %v5174_v42, %v5173_v63 }
 0x64e   : > { %v3187_v41 = vadd.f32 %v5210_v39, %v3082_v55  ;;  %v5211_v49 = vpop.f32.mrb[60].mxu0 }
 0x64f   : > { %v3117_v30 = vadd.f32 %v5175_v54, %v3012_v4  ;;  %v5264_v29 = vpop.f32.mrb[54].mxu1  ;;  %v5212_v47 = vpop.f32.mrb[61].mxu0 }
 0x650   : > { %v5213_v19 = vadd.f32 %v5212_v47, %v5211_v49  ;;  %v5265_v59 = vpop.f32.mrb[55].mxu1 }
 0x651   : > { %v5266_v51 = vadd.f32 %v5265_v59, %v5264_v29  ;;  %v4628_v29 = vld [vmem:[%s8685_s10] ss:$0 sm:$0xff] }
 0x652   : > { %v3192_v2 = vadd.f32 %v5213_v19, %v3087_v1  ;;  %v5214_v52 = vpop.f32.mrb[62].mxu0  ;;  %v3737_v19 = vld [vmem:[%s8688_s13 + $0x10] sm:$0xff] }
 0x653   : > { %v5267_v62 = vpop.f32.mrb[56].mxu1  ;;  %v5215_v40 = vpop.f32.mrb[63].mxu0  ;;  %v3292_v9 = vadd.f32 %v5266_v51, %v3187_v41 }
 0x654   : > { %v5216_v57 = vadd.f32 %v5215_v40, %v5214_v52  ;;  %v5268_v15 = vpop.f32.mrb[57].mxu1 }
 0x655   : > { %v5269_v24 = vadd.f32 %v5268_v15, %v5267_v62  ;;  %v3740_v15 = vld [vmem:[%s8688_s13 + $0x28] sm:$0xff] }
 0x656   : > { %v3197_v21 = vadd.f32 %v5216_v57, %v3092_v6  ;;  %v5217_v0 = vpop.f32.mrb[64].mxu0 }
 0x657   : > { %v5270_v27 = vpop.f32.mrb[58].mxu1  ;;  %v5218_v36 = vpop.f32.mrb[65].mxu0  ;;  %v3297_v5 = vadd.f32 %v5269_v24, %v3192_v2 }
 0x658   : > { %v5219_v55 = vadd.f32 %v5218_v36, %v5217_v0  ;;  %v5271_v56 = vpop.f32.mrb[59].mxu1 }
 0x659   : > { %v5272_v35 = vadd.f32 %v5271_v56, %v5270_v27  ;;  %v3741_v56 = vld [vmem:[%s8688_s13 + $0x30] sm:$0xff] }
 0x65a   : > { %v3202_v33 = vadd.f32 %v5219_v55, %v3097_v10  ;;  %v5220_v8 = vpop.f32.mrb[66].mxu0 }
 0x65b   : > { %v5273_v12 = vpop.f32.mrb[60].mxu1  ;;  %v5221_v46 = vpop.f32.mrb[67].mxu0  ;;  %v3302_v1 = vadd.f32 %v5272_v35, %v3197_v21 }
 0x65c   : > { %v5222_v50 = vadd.f32 %v5221_v46, %v5220_v8  ;;  %v5274_v11 = vpop.f32.mrb[61].mxu1 }
 0x65d   : > { %v5275_v20 = vadd.f32 %v5274_v11, %v5273_v12 }
 0x65e   : > { %v3207_v32 = vadd.f32 %v5222_v50, %v3102_v58  ;;  %v5223_v16 = vpop.f32.mrb[68].mxu0 }
 0x65f   : > { %v5276_v53 = vpop.f32.mrb[62].mxu1  ;;  %v5224_v37 = vpop.f32.mrb[69].mxu0  ;;  %v3307_v6 = vadd.f32 %v5275_v20, %v3202_v33 }
 0x660   : > { %v5225_v44 = vadd.f32 %v5224_v37, %v5223_v16  ;;  %v5277_v34 = vpop.f32.mrb[63].mxu1  ;;  %v8497_v16 = vld [vmem:[%s8687_s12] ss:$0 sm:$0xff] }
 0x661   : > { %v5278_v31 = vadd.f32 %v5277_v34, %v5276_v53 }
 0x662   : > { %v3212_v25 = vadd.f32 %v5225_v44, %v3107_v43  ;;  %v5226_v45 = vpop.f32.mrb[70].mxu0 }
 0x663   : > { %v5279_v26 = vpop.f32.mrb[64].mxu1  ;;  %v5227_v23 = vpop.f32.mrb[71].mxu0  ;;  %v3312_v10 = vadd.f32 %v5278_v31, %v3207_v32  ;;  %v4647_v32 = vld [vmem:[%s8691_s16] ss:$0 sm:$0xff] }
 0x664   : > { %v5228_v7 = vadd.f32 %v5227_v23, %v5226_v45  ;;  %v5280_v48 = vpop.f32.mrb[65].mxu1 }
 0x665   : > { %v5281_v28 = vadd.f32 %v5280_v48, %v5279_v26 }
 0x666   : > { %v3217_v17 = vadd.f32 %v5228_v7, %v3112_v18  ;;  %v5229_v14 = vpop.f32.mrb[72].mxu0 }
 0x667   : > { %v5282_v13 = vpop.f32.mrb[66].mxu1  ;;  %v5230_v22 = vpop.f32.mrb[73].mxu0  ;;  %v3317_v58 = vadd.f32 %v5281_v28, %v3212_v25 }
 0x668   : > { %v5231_v3 = vadd.f32 %v5230_v22, %v5229_v14  ;;  %v5283_v63 = vpop.f32.mrb[67].mxu1 }
 0x669   : > { %v5284_v38 = vadd.f32 %v5283_v63, %v5282_v13 }
 0x66a   : > { %v3222_v42 = vadd.f32 %v5231_v3, %v3117_v30  ;;  %v3738_v30 = vld [vmem:[%s8688_s13 + $0x18] sm:$0xff] }
 0x66b   : > { %v5285_v61 = vpop.f32.mrb[68].mxu1  ;;  %v3322_v4 = vadd.f32 %v5284_v38, %v3217_v17  ;;  %v6126_v40 = vpack.c.bf16 %v3738_v30, %v3737_v19 }
 0x66c   : > { %v5286_v54 = vpop.f32.mrb[69].mxu1 }
 0x66d   : > { %v5287_v43 = vadd.f32 %v5286_v54, %v5285_v61 }
 0x66f   : > { %v3327_v39 = vadd.f32 %v5287_v43, %v3222_v42 }
 0x67a   : > { %v5570_v41 = vpop.f32.mrb[74].mxu0 }
 0x67b   : > { %v6218_v49 = vadd.f32 %v5570_v41, %v3297_v5  ;;  %v3529_v18 = vpop.f32.mrb[75].mxu0 }
 0x67c   : > { %v6219_v47 = vadd.f32 %v3529_v18, %v3292_v9  ;;  %v3739_v9 = vld [vmem:[%s8688_s13 + $0x20] sm:$0xff] }
 0x67d   : > { %v8416_v2 = vadd.f32 %v6218_v49, %v4628_v29  ;;  %v6130_v5 = vpack.c.bf16 %v3740_v15, %v3739_v9  ;;  %v4638_v49 = vld [vmem:[%s8689_s14] ss:$0 sm:$0xff] }
 0x67e   : > { %v8414_v59 = vadd.f32 %v6219_v47, %v4628_v29  ;;  %v5573_v51 = vpop.f32.mrb[76].mxu0 }
 0x67f   : > { %v6220_v52 = vadd.f32 %v5573_v51, %v3307_v6  ;;  %v3539_v62 = vpop.f32.mrb[77].mxu0 }
 0x680   : > { %v6221_v57 = vadd.f32 %v3539_v62, %v3302_v1  ;;  %5596 = vmatprep.mubr.msk.f32.mxu1 %vm8791_vm9, %v8414_v59  ;;  %5652 = vmatprep.mubr.msk.f32.mxu0 %vm8792_vm10, %v8414_v59  ;;  %vm8807_vm9 = vmmov %vm8805_vm0 }
 0x681   : > { %5597 = vmatmul.mubr.msk.f32.vlgmr.msra.gmra.mrb[70].mxu1 %vm8793_vm11, %v8416_v2  ;;  %5653 = vmatmul.mubr.msk.f32.vlgmr.msra.gmra.mrb[82].mxu0 %vm8794_vm12, %v8416_v2  ;;  %v8435_v0 = vadd.f32 %v6220_v52, %v4628_v29  ;;  %vm8808_vm10 = vmmov %vm8805_vm0 }
 0x682   : > { %v8432_v24 = vadd.f32 %v6221_v57, %v4628_v29  ;;  %6125 = vmatpush3.bf16.msra.mxu1 %v8399_v60  ;;  %v5576_v21 = vpop.f32.mrb[78].mxu0  ;;  %v3742_v60 = vld [vmem:[%s8688_s13 + $0x38] sm:$0xff]  ;;  %vm8809_vm11 = vmmov %vm8805_vm0 }
 0x683   : > { %v6222_v27 = vadd.f32 %v5576_v21, %v3317_v58  ;;  %v3549_v36 = vpop.f32.mrb[79].mxu0  ;;  %6127 = vmatprep.subr.bf16.mxu1 %v6126_v40  ;;  %v6134_v1 = vpack.c.bf16 %v3742_v60, %v3741_v56  ;;  %vm8810_vm12 = vmmov %vm8805_vm0 }
 0x684   : > { %v6223_v55 = vadd.f32 %v3549_v36, %v3312_v10  ;;  %5599 = vmatprep.mubr.msk.f32.mxu1 %vm8795_vm13, %v8432_v24  ;;  %5655 = vmatprep.mubr.msk.f32.mxu0 %vm8796_vm15, %v8432_v24  ;;  %vm8811_vm13 = vmmov %vm8805_vm0 }
 0x685   : > { %5600 = vmatmul.mubr.msk.f32.gmra.mrb[72].mxu1 %vm8797_vm2, %v8435_v0  ;;  %5656 = vmatmul.mubr.msk.f32.gmra.mrb[84].mxu0 %vm8798_vm14, %v8435_v0  ;;  %v8453_v8 = vadd.f32 %v6222_v27, %v4628_v29  ;;  %vm8812_vm15 = vmmov %vm8805_vm0 }
 0x686   : > { %v8451_v35 = vadd.f32 %v6223_v55, %v4628_v29  ;;  %6129 = vmatpush3.bf16.msra.mxu1 %v6126_v40  ;;  %v5579_v33 = vpop.f32.mrb[80].mxu0  ;;  %vm8813_vm2 = vmmov %vm8805_vm0 }
 0x687   : > { %v6224_v12 = vadd.f32 %v5579_v33, %v3327_v39  ;;  %v3559_v46 = vpop.f32.mrb[81].mxu0  ;;  %6131 = vmatprep.subr.bf16.mxu1 %v6130_v5  ;;  %vm8814_vm14 = vmmov %vm8805_vm0 }
 0x688   : > { %v6225_v50 = vadd.f32 %v3559_v46, %v3322_v4  ;;  %5602 = vmatprep.mubr.msk.f32.mxu1 %vm8799_vm1, %v8451_v35  ;;  %5658 = vmatprep.mubr.msk.f32.mxu0 %vm8800_vm3, %v8451_v35  ;;  %vm8815_vm1 = vmmov %vm8805_vm0 }
 0x689   : > { %5603 = vmatmul.mubr.msk.f32.gmra.mrb[74].mxu1 %vm8801_vm4, %v8453_v8  ;;  %5659 = vmatmul.mubr.msk.f32.gmra.mrb[86].mxu0 %vm8802_vm5, %v8453_v8  ;;  %v8465_v20 = vadd.f32 %v6224_v12, %v4628_v29  ;;  %vm8816_vm3 = vmmov %vm8805_vm0 }
 0x68a   : > { %v8463_v11 = vadd.f32 %v6225_v50, %v4628_v29  ;;  %6133 = vmatpush3.bf16.msra.mxu1 %v6130_v5  ;;  %vm8510_vm4 = vmpackc.low %vm8816_vm3, %vm8816_vm3 }
 0x68b   : > { %6135 = vmatprep.subr.bf16.mxu1 %v6134_v1  ;;  %vm8819_vm5 = vmmov %vm8805_vm0 }
 0x68c   : > { %5605 = vmatprep.mubr.msk.f32.mxu1 %vm8803_vm6, %v8463_v11  ;;  %5661 = vmatprep.mubr.msk.f32.mxu0 %vm8804_vm7, %v8463_v11  ;;  %vm8820_vm6 = vmmov %vm8805_vm0 }
 0x68d   : > { %5606 = vmatmul.mubr.msk.f32.gmra.mrb[76].mxu1 %vm8805_vm0, %v8465_v20  ;;  %5662 = vmatmul.mubr.msk.f32.gmra.mrb[88].mxu0 %vm8806_vm8, %v8465_v20  ;;  %vm8821_vm7 = vmmov %vm8805_vm0 }
 0x68e   : > { %6137 = vmatpush3.bf16.msra.mxu1 %v6134_v1  ;;  %5624 = vmatprep.mubr.msk.f32.mxu1 %vm8807_vm9, %v8414_v59  ;;  %vm8822_vm8 = vmmov %vm8805_vm0 }
 0x68f   : > { %vm8823_vm9 = vmmov %vm8805_vm0 }
 0x690   : > { %vm8832_vm3 = vmmov %vm8805_vm0 }
 0x691   : > { %5625 = vmatmul.mubr.msk.f32.vlgmr.msra.gmra.mrb[78].mxu1 %vm8808_vm10, %v8416_v2  ;;  %vm8824_vm10 = vmmov %vm8805_vm0 }
 0x692   : > { %5627 = vmatprep.mubr.msk.f32.mxu1 %vm8809_vm11, %v8432_v24  ;;  %vm8825_vm11 = vmmov %vm8805_vm0 }
 0x695   : > { %5628 = vmatmul.mubr.msk.f32.gmra.mrb[80].mxu1 %vm8810_vm12, %v8435_v0  ;;  %vm8826_vm12 = vmmov %vm8805_vm0 }
 0x696   : > { %5630 = vmatprep.mubr.msk.f32.mxu1 %vm8811_vm13, %v8451_v35  ;;  %vm8827_vm13 = vmmov %vm8805_vm0 }
 0x699   : > { %5631 = vmatmul.mubr.msk.f32.gmra.mrb[82].mxu1 %vm8812_vm15, %v8453_v8  ;;  %vm8828_vm15 = vmmov %vm8805_vm0 }
 0x69a   : > { %5633 = vmatprep.mubr.msk.f32.mxu1 %vm8813_vm2, %v8463_v11  ;;  %vm8829_vm2 = vmmov %vm8805_vm0 }
 0x69d   : > { %5634 = vmatmul.mubr.msk.f32.gmra.mrb[84].mxu1 %vm8814_vm14, %v8465_v20  ;;  %vm8830_vm14 = vmmov %vm8805_vm0 }
 0x754   : > { %v8499_v53 = vpop.f32.mrb[70].mxu1  ;;  %v5654_v37 = vpop.f32.mrb[82].mxu0 }
 0x755   : > { %v3942_v6 = vadd.f32 %v5654_v37, %v4647_v32  ;;  %v3696_v44 = vpop.f32.mrb[71].mxu1  ;;  %v3936_v34 = vpop.f32.mrb[83].mxu0  ;;  %v3702_v1 = vadd.f32 %v8499_v53, %v8497_v16 }
 0x756   : > { %v3697_v31 = vadd.f32 %v8497_v16, %v3696_v44  ;;  %v3937_v25 = vadd.f32 %v4647_v32, %v3936_v34 }
 0x758   : > { %v3975_v45 = vmul.f32 0.125, %v3697_v31  ;;  %v6178_v26 = vpack.c.bf16 %v3942_v6, %v3937_v25  ;;  %v8502_v23 = vpop.f32.mrb[72].mxu1  ;;  %v5657_v10 = vpop.f32.mrb[84].mxu0 }
 0x759   : > { %v3952_v7 = vadd.f32 %v5657_v10, %v4647_v32  ;;  %v3706_v48 = vpop.f32.mrb[73].mxu1  ;;  %v3946_v28 = vpop.f32.mrb[85].mxu0  ;;  %v3712_v37 = vadd.f32 %v8502_v23, %v8497_v16 }
 0x75a   : > { %v3947_v17 = vadd.f32 %v4647_v32, %v3946_v28  ;;  %5680 = vmatprep.mubr.msk.f32.mxu1 %vm8815_vm1, %v3975_v45  ;;  %6179 = vmatprep.subr.bf16.mxu0 %v6178_v26  ;;  %v3707_v50 = vadd.f32 %v8497_v16, %v3706_v48  ;;  %vm8831_vm1 = vmmov %vm8805_vm0 }
 0x75b   : > { %6181 = vmatpush3.bf16.msra.mxu0 %v6178_v26  ;;  %v3978_v34 = vmul.f32 0.125, %v3712_v37 }
 0x75c   : > { %v6182_v14 = vpack.c.bf16 %v3952_v7, %v3947_v17  ;;  %v5604_v13 = vpop.f32.mrb[74].mxu1  ;;  %v5660_v22 = vpop.f32.mrb[86].mxu0  ;;  %v3977_v6 = vmul.f32 0.125, %v3707_v50 }
 0x75d   : > { %v3962_v58 = vadd.f32 %v5660_v22, %v4647_v32  ;;  %v3716_v3 = vpop.f32.mrb[75].mxu1  ;;  %v3956_v63 = vpop.f32.mrb[87].mxu0  ;;  %v3722_v31 = vadd.f32 %v5604_v13, %v8497_v16 }
 0x75e   : > { %v3957_v38 = vadd.f32 %v4647_v32, %v3956_v63  ;;  %6183 = vmatprep.subr.bf16.mxu0 %v6182_v14  ;;  %v3717_v44 = vadd.f32 %v8497_v16, %v3716_v3 }
 0x75f   : > { %6185 = vmatpush3.bf16.msra.mxu0 %v6182_v14  ;;  %v3980_v53 = vmul.f32 0.125, %v3722_v31 }
 0x760   : > { %v6186_v42 = vpack.c.bf16 %v3962_v58, %v3957_v38  ;;  %v5607_v61 = vpop.f32.mrb[76].mxu1  ;;  %v5663_v4 = vpop.f32.mrb[88].mxu0  ;;  %v3979_v25 = vmul.f32 0.125, %v3717_v44 }
 0x761   : > { %v3972_v54 = vadd.f32 %v5663_v4, %v4647_v32  ;;  %v3726_v43 = vpop.f32.mrb[77].mxu1  ;;  %v3966_v39 = vpop.f32.mrb[89].mxu0  ;;  %v3732_v26 = vadd.f32 %v5607_v61, %v8497_v16 }
 0x762   : > { %v3967_v41 = vadd.f32 %v4647_v32, %v3966_v39  ;;  %6187 = vmatprep.subr.bf16.mxu0 %v6186_v42  ;;  %v3976_v32 = vmul.f32 0.125, %v3702_v1  ;;  %v3727_v45 = vadd.f32 %v8497_v16, %v3726_v43 }
 0x763   : > { %6189 = vmatpush3.bf16.msra.mxu0 %v6186_v42  ;;  %v3982_v10 = vmul.f32 0.125, %v3732_v26 }
 0x764   : > { %v6190_v29 = vpack.c.bf16 %v3972_v54, %v3967_v41  ;;  %v5626_v18 = vpop.f32.mrb[78].mxu1  ;;  %v3981_v23 = vmul.f32 0.125, %v3727_v45 }
 0x765   : > { %v3822_v47 = vadd.f32 %v5626_v18, %v4638_v49  ;;  %v3816_v19 = vpop.f32.mrb[79].mxu1 }
 0x766   : > { %v3817_v30 = vadd.f32 %v4638_v49, %v3816_v19  ;;  %6191 = vmatprep.subr.bf16.mxu0 %v6190_v29 }
 0x767   : > { %6193 = vmatpush3.bf16.msra.mxu0 %v6190_v29 }
 0x768   : > { %v6154_v52 = vpack.c.bf16 %v3822_v47, %v3817_v30  ;;  %v5629_v62 = vpop.f32.mrb[80].mxu1 }
 0x769   : > { %v3832_v40 = vadd.f32 %v5629_v62, %v4638_v49  ;;  %v3826_v57 = vpop.f32.mrb[81].mxu1 }
 0x76a   : > { %v3827_v9 = vadd.f32 %v4638_v49, %v3826_v57  ;;  %6156 = vmatprep.subr.msk.bf16.mxu1 %vm8510_vm4, %v6154_v52 }
 0x76b   : > { %6159 = vmatpush3.bf16.xpose.msk.msra.mxu1 %vm8510_vm4, %v6154_v52 }
 0x76c   : > { %v6160_v15 = vpack.c.bf16 %v3832_v40, %v3827_v9  ;;  %v5632_v21 = vpop.f32.mrb[82].mxu1 }
 0x76d   : > { %v3842_v27 = vadd.f32 %v5632_v21, %v4638_v49  ;;  %v3836_v36 = vpop.f32.mrb[83].mxu1 }
 0x76e   : > { %v3837_v5 = vadd.f32 %v4638_v49, %v3836_v36  ;;  %6162 = vmatprep.subr.msk.bf16.mxu1 %vm8510_vm4, %v6160_v15 }
 0x770   : > { %v6166_v55 = vpack.c.bf16 %v3842_v27, %v3837_v5  ;;  %v5635_v56 = vpop.f32.mrb[84].mxu1 }
 0x771   : > { %v3852_v60 = vadd.f32 %v5635_v56, %v4638_v49  ;;  %v3846_v33 = vpop.f32.mrb[85].mxu1 }
 0x772   : > { %v3847_v12 = vadd.f32 %v4638_v49, %v3846_v33 }
 0x773   : > { %6165 = vmatpush3.bf16.xpose.msk.msra.mxu1 %vm8510_vm4, %v6160_v15 }
 0x774   : > { %v6172_v46 = vpack.c.bf16 %v3852_v60, %v3847_v12  ;;  %6168 = vmatprep.subr.msk.bf16.mxu1 %vm8510_vm4, %v6166_v55 }
 0x77b   : > { %6171 = vmatpush3.bf16.xpose.msk.msra.mxu1 %vm8510_vm4, %v6166_v55 }
 0x77c   : > { %6174 = vmatprep.subr.msk.bf16.mxu1 %vm8510_vm4, %v6172_v46 }
 0x783   : > { %6177 = vmatpush3.bf16.xpose.msk.msra.mxu1 %vm8510_vm4, %v6172_v46  ;;  %vm8833_vm4 = vmmov %vm8805_vm0 }
 0x78a   : > { %5681 = vmatmul.mubr.msk.f32.vlgmr.msra.gmra.mrb[86].mxu1 %vm8819_vm5, %v3976_v32  ;;  %vm8834_vm5 = vmmov %vm8805_vm0 }
 0x78b   : > { %5683 = vmatprep.mubr.msk.f32.mxu1 %vm8820_vm6, %v3977_v6  ;;  %vm8835_vm6 = vmmov %vm8805_vm0 }
 0x78e   : > { %5684 = vmatmul.mubr.msk.f32.gmra.mrb[88].mxu1 %vm8821_vm7, %v3978_v34  ;;  %vm8836_vm7 = vmmov %vm8805_vm0 }
 0x78f   : > { %5686 = vmatprep.mubr.msk.f32.mxu1 %vm8805_vm0, %v3979_v25 }
 0x792   : > { %5687 = vmatmul.mubr.msk.f32.gmra.mrb[90].mxu1 %vm8822_vm8, %v3980_v53  ;;  %vm8837_vm8 = vmmov %vm8805_vm0 }
 0x793   : > { %5689 = vmatprep.mubr.msk.f32.mxu1 %vm8823_vm9, %v3981_v23  ;;  %vm8838_vm9 = vmmov %vm8805_vm0 }
 0x796   : > { %5690 = vmatmul.mubr.msk.f32.gmra.mrb[92].mxu1 %vm8824_vm10, %v3982_v10  ;;  %vm8839_vm10 = vmmov %vm8805_vm0 }
 0x85d   : > { %v5682_v7 = vpop.f32.mrb[86].mxu1 }
 0x85e   : > { %v4097_v48 = vpop.f32.mrb[87].mxu1  ;;  %v4139_v13 = vsel %vm8826_vm12, %v5682_v7, -inf  ;;  %vm8841_vm12 = vmmov %vm8805_vm0 }
 0x85f   : > { %v4136_v28 = vsel %vm8825_vm11, %v4097_v48, -inf  ;;  %vm8840_vm11 = vmmov %vm8805_vm0 }
 0x860   : > { %4137 = vmax.xlane.f32.xlu0 %v4136_v28  ;;  %v4355_v28 = vld [vmem:[%s8692_s17 + $0x10] sm:$0xff] }
 0x861   : > { %v5685_v17 = vpop.f32.mrb[88].mxu1 }
 0x862   : > { %v4107_v14 = vpop.f32.mrb[89].mxu1  ;;  %v4145_v3 = vsel %vm8828_vm15, %v5685_v17, -inf  ;;  %vm8843_vm15 = vmmov %vm8805_vm0 }
 0x863   : > { %v4142_v22 = vsel %vm8827_vm13, %v4107_v14, -inf  ;;  %vm8842_vm13 = vmmov %vm8805_vm0 }
 0x864   : > { %4140 = vmax.xlane.f32.xlu0 %v4139_v13  ;;  %4143 = vmax.xlane.f32.xlu1 %v4142_v22  ;;  %v4357_v22 = vld [vmem:[%s8692_s17 + $0x20] sm:$0xff] }
 0x865   : > { %v5688_v16 = vpop.f32.mrb[90].mxu1 }
 0x866   : > { %v4117_v58 = vpop.f32.mrb[91].mxu1  ;;  %v4151_v61 = vsel %vm8830_vm14, %v5688_v16, -inf  ;;  %vm8845_vm14 = vmmov %vm8805_vm0 }
 0x867   : > { %v4148_v63 = vsel %vm8829_vm2, %v4117_v58, -inf  ;;  %vm8844_vm2 = vmmov %vm8805_vm0 }
 0x868   : > { %4146 = vmax.xlane.f32.xlu1 %v4145_v3  ;;  %4149 = vmax.xlane.f32.xlu0 %v4148_v63  ;;  %v4359_v3 = vld [vmem:[%s8692_s17 + $0x30] sm:$0xff]  ;;  %v4360_v63 = vld [vmem:[%s8692_s17 + $0x38] sm:$0xff] }
 0x869   : > { %v5691_v38 = vpop.f32.mrb[92].mxu1 }
 0x86a   : > { %v4127_v42 = vpop.f32.mrb[93].mxu1  ;;  %v4157_v54 = vsel %vm8832_vm3, %v5691_v38, -inf  ;;  %vm8847_vm3 = vmmov %vm8805_vm0 }
 0x86b   : > { %v4154_v4 = vsel %vm8831_vm1, %v4127_v42, -inf  ;;  %vm8846_vm1 = vmmov %vm8805_vm0 }
 0x86c   : > { %4152 = vmax.xlane.f32.xlu1 %v4151_v61  ;;  %4155 = vmax.xlane.f32.xlu0 %v4154_v4 }
 0x870   : > { %4158 = vmax.xlane.f32.xlu1 %v4157_v54 }
 0x8ed   : > { %v4138_v43 = vpop.xlane.xlu0 %4137 }
 0x8ee   : > { %v4160_v39 = vsub.f32 %v4097_v48, %v4138_v43  ;;  %v4354_v48 = vld [vmem:[%s8692_s17 + $0x8] sm:$0xff] }
 0x8f0   : > { %v4168_v41 = vmul.f32 1.442695, %v4160_v39 }
 0x8f1   : > { %v4141_v49 = vpop.xlane.xlu0 %4140  ;;  %v4144_v29 = vpop.xlane.xlu1 %4143 }
 0x8f2   : > { %6346 = vpow2.f32 %v4168_v41  ;;  %v4161_v18 = vsub.f32 %v5682_v7, %v4141_v49  ;;  %v4162_v47 = vsub.f32 %v4107_v14, %v4144_v29  ;;  %v4353_v7 = vld [vmem:[%s8692_s17] sm:$0xff]  ;;  %v4356_v14 = vld [vmem:[%s8692_s17 + $0x18] sm:$0xff] }
 0x8f3   : > { %v6198_v13 = vpack.c.bf16 %v4356_v14, %v4355_v28 }
 0x8f4   : > { %v4170_v19 = vmul.f32 1.442695, %v4161_v18  ;;  %v4172_v30 = vmul.f32 1.442695, %v4162_v47 }
 0x8f5   : > { %v4147_v51 = vpop.xlane.xlu1 %4146  ;;  %v4150_v52 = vpop.xlane.xlu0 %4149 }
 0x8f6   : > { %6348 = vpow2.f32 %v4170_v19  ;;  %v4163_v62 = vsub.f32 %v5685_v17, %v4147_v51  ;;  %v4164_v40 = vsub.f32 %v4117_v58, %v4150_v52  ;;  %v6194_v17 = vpack.c.bf16 %v4354_v48, %v4353_v7 }
 0x8f7   : > { %6350 = vpow2.f32 %v4172_v30 }
 0x8f8   : > { %v4174_v57 = vmul.f32 1.442695, %v4163_v62  ;;  %v4176_v9 = vmul.f32 1.442695, %v4164_v40  ;;  %6195 = vmatprep.subr.bf16.mxu0 %v6194_v17  ;;  %6210 = vmatprep.subr.bf16.mxu1 %v6194_v17 }
 0x8f9   : > { %v4153_v15 = vpop.xlane.xlu1 %4152  ;;  %v4156_v21 = vpop.xlane.xlu0 %4155  ;;  %6214 = vmatpush3.bf16.msra.mxu1 %v6194_v17 }
 0x8fa   : > { %6352 = vpow2.f32 %v4174_v57  ;;  %v4165_v27 = vsub.f32 %v5688_v16, %v4153_v15  ;;  %v4166_v36 = vsub.f32 %v4127_v42, %v4156_v21  ;;  %v4358_v16 = vld [vmem:[%s8692_s17 + $0x28] sm:$0xff]  ;;  %6211 = vmatprep.subr.bf16.mxu1 %v6198_v13 }
 0x8fb   : > { %6354 = vpow2.f32 %v4176_v9  ;;  %v6202_v58 = vpack.c.bf16 %v4358_v16, %v4357_v22 }
 0x8fc   : > { %v6347_v5 = vpop.eup %6346  ;;  %v4178_v55 = vmul.f32 1.442695, %v4165_v27  ;;  %v4180_v56 = vmul.f32 1.442695, %v4166_v36 }
 0x8fd   : > { %5708 = vmatprep.mubr.msk.f32.mxu0 %vm8833_vm4, %v6347_v5  ;;  %v4159_v60 = vpop.xlane.xlu1 %4158  ;;  %v4184_v33 = vsel %vm8834_vm5, %v6347_v5, 0.0  ;;  %6215 = vmatpush3.bf16.msra.mxu1 %v6198_v13  ;;  %vm8848_vm4 = vmmov %vm8805_vm0 }
 0x8fe   : > { %6356 = vpow2.f32 %v4178_v55  ;;  %v4167_v12 = vsub.f32 %v5691_v38, %v4159_v60  ;;  %4185 = vadd.xlane.f32.xlu0 %v4184_v33  ;;  %6212 = vmatprep.subr.bf16.mxu1 %v6202_v58  ;;  %v6206_v38 = vpack.c.bf16 %v4360_v63, %v4359_v3  ;;  %vm8849_vm5 = vmmov %vm8805_vm0 }
 0x8ff   : > { %6358 = vpow2.f32 %v4180_v56 }
 0x900   : > { %v6349_v46 = vpop.eup %6348  ;;  %v4182_v1 = vmul.f32 1.442695, %v4167_v12 }
 0x901   : > { %v6351_v50 = vpop.eup %6350  ;;  %5709 = vmatmul.mubr.msk.f32.vlgmr.msra.gmra.mrb[90].mxu0 %vm8835_vm6, %v6349_v46  ;;  %v4187_v32 = vsel %vm8836_vm7, %v6349_v46, 0.0  ;;  %6216 = vmatpush3.bf16.msra.mxu1 %v6202_v58  ;;  %vm8850_vm6 = vmmov %vm8805_vm0 }
 0x902   : > { %6360 = vpow2.f32 %v4182_v1  ;;  %5711 = vmatprep.mubr.msk.f32.mxu0 %vm8805_vm0, %v6351_v50  ;;  %4188 = vadd.xlane.f32.xlu1 %v4187_v32  ;;  %v4190_v37 = vsel %vm8837_vm8, %v6351_v50, 0.0  ;;  %vm8851_vm7 = vmmov %vm8805_vm0  ;;  %v4680_v32 = vld [vmem:[%s8693_s18] ss:$0 sm:$0xff] }
 0x903   : > { %4191 = vadd.xlane.f32.xlu0 %v4190_v37  ;;  %6197 = vmatpush3.bf16.msra.mxu0 %v6194_v17  ;;  %vm8852_vm8 = vmmov %vm8805_vm0 }
 0x904   : > { %v6353_v6 = vpop.eup %6352  ;;  %6199 = vmatprep.subr.bf16.mxu0 %v6198_v13  ;;  %6213 = vmatprep.subr.bf16.mxu1 %v6206_v38 }
 0x905   : > { %v6355_v44 = vpop.eup %6354  ;;  %5712 = vmatmul.mubr.msk.f32.gmra.mrb[92].mxu0 %vm8838_vm9, %v6353_v6  ;;  %v4193_v34 = vsel %vm8839_vm10, %v6353_v6, 0.0  ;;  %6217 = vmatpush3.bf16.msra.mxu1 %v6206_v38  ;;  %vm8853_vm9 = vmmov %vm8805_vm0 }
 0x906   : > { %5714 = vmatprep.mubr.msk.f32.mxu0 %vm8840_vm11, %v6355_v44  ;;  %4194 = vadd.xlane.f32.xlu1 %v4193_v34  ;;  %v4196_v31 = vsel %vm8841_vm12, %v6355_v44, 0.0  ;;  %vm8854_vm10 = vmmov %vm8805_vm0 }
 0x907   : > { %4197 = vadd.xlane.f32.xlu0 %v4196_v31  ;;  %6201 = vmatpush3.bf16.msra.mxu0 %v6198_v13  ;;  %vm8855_vm11 = vmmov %vm8805_vm0 }
 0x908   : > { %v6357_v25 = vpop.eup %6356  ;;  %6203 = vmatprep.subr.bf16.mxu0 %v6202_v58  ;;  %vm8856_vm12 = vmmov %vm8805_vm0 }
 0x909   : > { %v6359_v45 = vpop.eup %6358  ;;  %5715 = vmatmul.mubr.msk.f32.gmra.mrb[94].mxu0 %vm8842_vm13, %v6357_v25  ;;  %v4199_v53 = vsel %vm8843_vm15, %v6357_v25, 0.0  ;;  %vm8857_vm13 = vmmov %vm8805_vm0 }
 0x90a   : > { %5717 = vmatprep.mubr.msk.f32.mxu0 %vm8844_vm2, %v6359_v45  ;;  %v4202_v26 = vsel %vm8845_vm14, %v6359_v45, 0.0  ;;  %vm8858_vm15 = vmmov %vm8805_vm0 }
 0x90b   : > { %4200 = vadd.xlane.f32.xlu0 %v4199_v53  ;;  %4203 = vadd.xlane.f32.xlu1 %v4202_v26  ;;  %vm8859_vm2 = vmmov %vm8805_vm0 }
 0x90c   : > { %v6361_v23 = vpop.eup %6360  ;;  %6205 = vmatpush3.bf16.msra.mxu0 %v6202_v58  ;;  %vm8860_vm14 = vmmov %vm8805_vm0 }
 0x90d   : > { %5718 = vmatmul.mubr.msk.f32.gmra.mrb[96].mxu0 %vm8846_vm1, %v6361_v23  ;;  %v4205_v10 = vsel %vm8847_vm3, %v6361_v23, 0.0  ;;  %6207 = vmatprep.subr.bf16.mxu0 %v6206_v38  ;;  %vm8861_vm1 = vmmov %vm8805_vm0 }
 0x90e   : > { %vm8862_vm3 = vmmov %vm8805_vm0 }
 0x90f   : > { %4206 = vadd.xlane.f32.xlu1 %v4205_v10 }
 0x910   : > { %6209 = vmatpush3.bf16.msra.mxu0 %v6206_v38 }
 0x98b   : > { %v4186_v42 = vpop.xlane.xlu0 %4185 }
 0x98c   : > { %6362 = vrcp.f32 %v4186_v42 }
 0x98f   : > { %v4189_v61 = vpop.xlane.xlu1 %4188 }
 0x990   : > { %v4192_v4 = vpop.xlane.xlu0 %4191  ;;  %6364 = vrcp.f32 %v4189_v61 }
 0x991   : > { %6366 = vrcp.f32 %v4192_v4 }
 0x993   : > { %v4195_v54 = vpop.xlane.xlu1 %4194 }
 0x994   : > { %v4198_v43 = vpop.xlane.xlu0 %4197  ;;  %6368 = vrcp.f32 %v4195_v54 }
 0x995   : > { %6370 = vrcp.f32 %v4198_v43 }
 0x996   : > { %v6363_v29 = vpop.eup %6362 }
 0x998   : > { %v4204_v39 = vpop.xlane.xlu1 %4203  ;;  %v4201_v41 = vpop.xlane.xlu0 %4200 }
 0x999   : > { %6372 = vrcp.f32 %v4201_v41 }
 0x99a   : > { %v6365_v19 = vpop.eup %6364  ;;  %6374 = vrcp.f32 %v4204_v39 }
 0x99b   : > { %v6367_v62 = vpop.eup %6366 }
 0x99c   : > { %v4207_v18 = vpop.xlane.xlu1 %4206 }
 0x99d   : > { %6376 = vrcp.f32 %v4207_v18 }
 0x99e   : > { %v6369_v57 = vpop.eup %6368 }
 0x99f   : > { %v6371_v27 = vpop.eup %6370 }
 0x9a3   : > { %v6373_v5 = vpop.eup %6372 }
 0x9a4   : > { %v6375_v33 = vpop.eup %6374 }
 0x9a7   : > { %v6377_v46 = vpop.eup %6376 }
 0x9d4   : > { %v5710_v49 = vpop.f32.mrb[90].mxu0 }
 0x9d5   : > { %v4298_v47 = vpop.f32.mrb[91].mxu0  ;;  %v4346_v51 = vmul.f32 %v6365_v19, %v5710_v49 }
 0x9d6   : > { %v4345_v30 = vmul.f32 %v6363_v29, %v4298_v47 }
 0x9d8   : > { %v5713_v52 = vpop.f32.mrb[92].mxu0  ;;  %5736 = vmatprep.mubr.msk.f32.mxu0 %vm8848_vm4, %v4345_v30 }
 0x9d9   : > { %v4308_v40 = vpop.f32.mrb[93].mxu0  ;;  %5737 = vmatmul.mubr.msk.f32.vlgmr.msra.gmra.mrb[98].mxu0 %vm8849_vm5, %v4346_v51  ;;  %v4348_v15 = vmul.f32 %v6369_v57, %v5713_v52 }
 0x9da   : > { %v4347_v9 = vmul.f32 %v6367_v62, %v4308_v40 }
 0x9dc   : > { %v5716_v21 = vpop.f32.mrb[94].mxu0  ;;  %5739 = vmatprep.mubr.msk.f32.mxu0 %vm8850_vm6, %v4347_v9 }
 0x9dd   : > { %v4318_v36 = vpop.f32.mrb[95].mxu0  ;;  %5740 = vmatmul.mubr.msk.f32.gmra.mrb[100].mxu0 %vm8851_vm7, %v4348_v15  ;;  %v4350_v56 = vmul.f32 %v6373_v5, %v5716_v21 }
 0x9de   : > { %v4349_v55 = vmul.f32 %v6371_v27, %v4318_v36 }
 0x9e0   : > { %v5719_v60 = vpop.f32.mrb[96].mxu0  ;;  %5742 = vmatprep.mubr.msk.f32.mxu0 %vm8805_vm0, %v4349_v55 }
 0x9e1   : > { %v4328_v12 = vpop.f32.mrb[97].mxu0  ;;  %5743 = vmatmul.mubr.msk.f32.gmra.mrb[102].mxu0 %vm8852_vm8, %v4350_v56  ;;  %v4352_v50 = vmul.f32 %v6377_v46, %v5719_v60 }
 0x9e2   : > { %v4351_v1 = vmul.f32 %v6375_v33, %v4328_v12 }
 0x9e4   : > { %5745 = vmatprep.mubr.msk.f32.mxu1 %vm8853_vm9, %v4351_v1 }
 0x9e5   : > { %5746 = vmatmul.mubr.msk.f32.vlgmr.msra.gmra.mrb[94].mxu1 %vm8854_vm10, %v4352_v50 }
 0xaac   : > { %v5738_v37 = vpop.f32.mrb[98].mxu0 }
 0xaad   : > { %v4464_v6 = vadd.f32 %v5738_v37, %v4680_v32  ;;  %v4458_v44 = vpop.f32.mrb[99].mxu0 }
 0xaae   : > { %v4459_v34 = vadd.f32 %v4680_v32, %v4458_v44 }
 0xaaf   : > { %v4498_v31 = vadd.f32 %v4464_v6, %v8416_v2 }
 0xab0   : > { %v4497_v25 = vadd.f32 %v4459_v34, %v8414_v59  ;;  %v5741_v45 = vpop.f32.mrb[100].mxu0 }
 0xab1   : > { %4506 = vst.msk [vmem:[%s703_s29 + $0x8] sm:$0xff] %vm8855_vm11, %v4498_v31  ;;  %v4474_v53 = vadd.f32 %v5741_v45, %v4680_v32  ;;  %v4468_v26 = vpop.f32.mrb[101].mxu0 }
 0xab2   : > { %4505 = vst.msk [vmem:[%s703_s29] sm:$0xff] %vm8856_vm12, %v4497_v25  ;;  %v4469_v23 = vadd.f32 %v4680_v32, %v4468_v26 }
 0xab3   : > { %v4500_v10 = vadd.f32 %v4474_v53, %v8435_v0 }
 0xab4   : > { %v4499_v7 = vadd.f32 %v4469_v23, %v8432_v24  ;;  %v5744_v48 = vpop.f32.mrb[102].mxu0 }
 0xab5   : > { %4508 = vst.msk [vmem:[%s703_s29 + $0x18] sm:$0xff] %vm8857_vm13, %v4500_v10  ;;  %v4484_v2 = vadd.f32 %v5744_v48, %v4680_v32  ;;  %v4478_v28 = vpop.f32.mrb[103].mxu0 }
 0xab6   : > { %4507 = vst.msk [vmem:[%s703_s29 + $0x10] sm:$0xff] %vm8858_vm15, %v4499_v7  ;;  %v4479_v59 = vadd.f32 %v4680_v32, %v4478_v28 }
 0xab7   : > { %v4502_v17 = vadd.f32 %v4484_v2, %v8453_v8 }
 0xab8   : > { %v4501_v14 = vadd.f32 %v4479_v59, %v8451_v35  ;;  %v5747_v13 = vpop.f32.mrb[94].mxu1 }
 0xab9   : > { %4510 = vst.msk [vmem:[%s703_s29 + $0x28] sm:$0xff] %vm8859_vm2, %v4502_v17  ;;  %v4494_v24 = vadd.f32 %v5747_v13, %v4680_v32  ;;  %v4488_v0 = vpop.f32.mrb[95].mxu1 }
 0xaba   : > { %4509 = vst.msk [vmem:[%s703_s29 + $0x20] sm:$0xff] %vm8860_vm14, %v4501_v14  ;;  %v4489_v22 = vadd.f32 %v4680_v32, %v4488_v0 }
 0xabb   : > { %v4504_v16 = vadd.f32 %v4494_v24, %v8465_v20 }
 0xabc   : > { %v4503_v35 = vadd.f32 %v4489_v22, %v8463_v11 }
 0xabd   : > { %4512 = vst.msk [vmem:[%s703_s29 + $0x38] sm:$0xff] %vm8861_vm1, %v4504_v16 }
 0xabe   : > { %4511 = vst.msk [vmem:[%s703_s29 + $0x30] sm:$0xff] %vm8862_vm3, %v4503_v35 }
 0xabf   : > { %6400 = shalt.err (!%p6397_p3)
}
 0xac0   : > { %s6401_s2 = scalar_lea.hbm %s8625_s4, 1024  ;;  %s6405_s1 = scalar_lea.hbm %s8698_s23, 2048 }
 0xac1   : > { %p6402_p4 = scmp.ne.s32.totalorder %s8625_s4, %s6401_s2  ;;  %p6406_p9 = scmp.lt.u32.totalorder %s8625_s4, %s8698_s23 }
 0xac2   : > { %p6407_p10 = scmp.lt.u32.totalorder %s6405_s1, %s6401_s2  ;;  %p6409_p12 = scmp.lt.u32.totalorder %s6401_s2, %s8625_s4 }
 0xac3   : > { %p6403_p7 = pnand %p6402_p4, %p6615_p5 }
 0xac4   : > { %p6408_p11 = por %p6407_p10, %p6406_p9 }
 0xac5   : > { %p6404_p8 = pneg %p6403_p7 }
 0xac6   : > { %p6410_p13 = por %p6409_p12, %p6408_p11 }
 0xac8   : > { %p6411_p0 = pnand %p6410_p13, %p6404_p8 }
 0xaca   : > { %6414 = shalt.err (!%p6411_p0)
}
 0xacb   : > { %s6455_s28 = smov 128   ;;  %s6456_s19 = smov 8  }
 0xacc   : > { %6234 = dma.vmem_to_hbm [thread:$0]  (%p6615_p5), %s8627_s20, 1024, %s8625_s4, %s8634_s5, %s6455_s28, %s6455_s28, %s6456_s19  }
 0xacd PF: > { %s8863_s6 = sld [smem:[#allocation7_spill]]  ;;  %p6240_p1 = scmp.ge.s32.totalorder %s6449_s25, 2 }
 0xacf   : > { %p6237_p2 = pnand %p6240_p1, %p6619_p6 }
 0xad3   : > { %s4542_s27 = sand.u32 1, %s8863_s6  }
 0xad4   : > { %s4543_s2 = scalar_lea.sflag [#allocation5], %s4542_s27 }
 0xad5   : > { %6432 = dma.done.wait (!%p6237_p2), %s4543_s2, 1024  }
 0xad6   : > { %6434 = vsyncadd (!%p6237_p2), %s4543_s2, 4294966272  ;;  %s8865_s25 = sld [smem:[#allocation9_spill]]  ;;  %s8866_s29 = sld [smem:[#allocation8_spill]] }
 0xad7   : > { %s8867_s24 = sld [smem:[#allocation10_spill]]  ;;  %s8868_s4 = smov %s6441_s30 }
 0xadc   : > { %p33_p3 = scmp.ge.s32.totalorder %s8865_s25, 4   ;;  %s8869_s30 = smov %s8866_s29 }
 0xade   :  { %35 = sbr.rel (!%p33_p3) target bundleno = 14 (0xe), region = 147 }
 0xae5   :  { %4548 = vsyncpa [#allocation5], 1 }
 0xae6   :  { %4550 = vsyncpa [#allocation5 + $0x1], 1 }

</bundles_post_ra>
